<compile_context>
chip_gen: v7x
topology: tpu7x:2x2x1
jax: 0.10.0
libtpu: 0.0.40
codegen_flags: <defaults>
</compile_context>

<pallas_src>
import numpy as np
import jax
import jax.numpy as jnp
from jax import lax
from jax.experimental import pallas as pl
from jax.experimental.pallas import tpu as pltpu


def _round_up(n, m):
    return ((n + m - 1) // m) * m


def _sentence_attn_kernel(
    x_ref,                                # (S, TB, Hp)  bf16 time-major input slab
    len_ref,                              # (1, 1, TB)   int32 sentence lengths
    h0f_ref, h0b_ref,                     # (TB, Hp) f32 initial hidden, fwd / bwd
    wih_f_ref, whh_f_ref, bih_f_ref, bhn_f_ref,   # fwd GRU: (Hp,3Hp) bf16 x2, (1,3Hp), (1,Hp) f32
    wih_b_ref, whh_b_ref, bih_b_ref, bhn_b_ref,   # bwd GRU
    fcw_ref, fcb_ref,                     # fc halves: (2,Hp,Hp) bf16, (1,Hp) f32
    attw_ref, attb_ref, ctx_ref,          # attention: (Hp,Hp) bf16, (1,Hp), (1,Hp) f32
    out_ref,                              # (TB, Hp) f32 attended sentence vectors
    hnf_ref, hnb_ref,                     # (TB, Hp) f32 final hidden per direction
    scores_ref,                           # (1, S, TB) f32 attention weights (lane-dense)
    gi_f, gi_b,                           # VMEM scratch (S,TB,3Hp) bf16: hoisted input projections
    outs_f, outs_b,                       # VMEM scratch (S,TB,Hp) bf16: per-direction GRU outputs
):
    S, TB, H3 = gi_f.shape
    Hp = H3 // 3
    SB = S * TB

    # ---- hoisted input projection: ONE fused (S*TB,Hp)x(Hp,3Hp) bf16 matmul per direction
    x2 = x_ref[...].reshape(SB, Hp)                                    # bf16
    gi_f[...] = (jnp.dot(x2, wih_f_ref[...], preferred_element_type=jnp.float32)
                 + bih_f_ref[...]).astype(jnp.bfloat16).reshape(S, TB, H3)
    gi_b[...] = (jnp.dot(x2, wih_b_ref[...], preferred_element_type=jnp.float32)
                 + bih_b_ref[...]).astype(jnp.bfloat16).reshape(S, TB, H3)

    b_hn_f = bhn_f_ref[...]
    b_hn_b = bhn_b_ref[...]

    # ---- fused bidirectional recurrence: one (TB,Hp)x(Hp,3Hp) bf16 matmul per direction/step
    def gru_step(h, gi, whh_ref, b_hn):
        gh = jnp.dot(h.astype(jnp.bfloat16), whh_ref[...],
                     preferred_element_type=jnp.float32)               # (TB, 3Hp) f32
        gi32 = gi.astype(jnp.float32)
        r = jax.nn.sigmoid(gi32[:, 0:Hp] + gh[:, 0:Hp])
        z = jax.nn.sigmoid(gi32[:, Hp:2 * Hp] + gh[:, Hp:2 * Hp])
        n = jnp.tanh(gi32[:, 2 * Hp:] + r * (gh[:, 2 * Hp:] + b_hn))
        return (1.0 - z) * n + z * h                                   # f32 carry

    def step(t, carry):
        h_f, h_b = carry
        tb = S - 1 - t
        h_f = gru_step(h_f, gi_f[t], whh_f_ref, b_hn_f)
        h_b = gru_step(h_b, gi_b[tb], whh_b_ref, b_hn_b)
        outs_f[t] = h_f.astype(jnp.bfloat16)
        outs_b[tb] = h_b.astype(jnp.bfloat16)
        return h_f, h_b

    unroll = True if S <= 16 else 6
    h_f, h_b = lax.fori_loop(0, S, step, (h0f_ref[...], h0b_ref[...]), unroll=unroll)
    hnf_ref[...] = h_f
    hnb_ref[...] = h_b

    # ---- fc -> relu (two accumulating bf16 matmuls, no lane-axis concat); dropout = identity
    of2 = outs_f[...].reshape(SB, Hp)                                  # bf16
    ob2 = outs_b[...].reshape(SB, Hp)                                  # bf16
    fc2 = jnp.maximum(
        jnp.dot(of2, fcw_ref[0], preferred_element_type=jnp.float32)
        + jnp.dot(ob2, fcw_ref[1], preferred_element_type=jnp.float32)
        + fcb_ref[...],
        0.0)                                                           # (SB, Hp) f32

    # ---- attention: u = tanh(W a + b); score = u . ctx ; masked softmax ; weighted sum
    u2 = jnp.tanh(
        jnp.dot(fc2.astype(jnp.bfloat16), attw_ref[...],
                preferred_element_type=jnp.float32) + attb_ref[...])
    # TODO(synk): if the XLU is the binding unit here, move this dot-reduce onto the MXU.
    sc = jnp.sum(u2.reshape(S, TB, Hp) * ctx_ref[...], axis=-1)        # (S, TB) VPU+XLU

    lengths = len_ref[0]                                               # (1, TB)
    pos = lax.broadcasted_iota(jnp.int32, (S, TB), 0)
    valid = pos < lengths
    sc = jnp.where(valid, sc, jnp.float32(-1e30))
    m = jnp.max(sc, axis=0, keepdims=True)
    ex = jnp.exp(sc - m) * valid.astype(jnp.float32)
    denom = jnp.maximum(jnp.sum(ex, axis=0, keepdims=True), jnp.float32(1e-30))
    attn = ex / denom                                                  # exact softmax

    scores_ref[0] = attn
    fc3 = fc2.reshape(S, TB, Hp)
    out_ref[...] = jnp.sum(fc3 * attn[:, :, None], axis=0)             # (TB, Hp)


def sentence_attn_forward(x, hidden_state, lengths, params, *, batch_tile=128):
    """x: (B,S,H) f32; hidden_state: (2,B,H) f32; lengths: (B,) int.

    Returns (outputs (B,H), hidden_state (2,B,H), attn_scores (B,S)).
    """
    B, S, H = x.shape
    Hp = _round_up(H, 128)                 # lane-dense hidden (zero-padded)
    pad_h = Hp - H

    # Batch tiling: prefer >= 2 grid steps when the batch allows, so the
    # "parallel" grid axis can shard across v7x's two TensorCores and the
    # per-step VMEM footprint is halved. TB is always a multiple of 8.
    B_pad8 = _round_up(B, 8)
    TB = min(batch_tile, B_pad8)
    if B_pad8 // TB < 2 and B_pad8 >= 16:
        TB = _round_up((B_pad8 + 1) // 2, 8)
    B_pad = _round_up(B, TB)
    nb = B_pad // TB
    pad_b = B_pad - B

    # time-major input; pad batch + hidden and cast to bf16 in one pass.
    xp = jnp.transpose(x, (1, 0, 2))                                   # (S, B, H)
    xp = jnp.pad(xp, ((0, 0), (0, pad_b), (0, pad_h))).astype(jnp.bfloat16)
    h0f = jnp.pad(hidden_state[0], ((0, pad_b), (0, pad_h)))
    h0b = jnp.pad(hidden_state[1], ((0, pad_b), (0, pad_h)))
    lens3 = jnp.pad(lengths.astype(jnp.int32), (0, pad_b)).reshape(nb, 1, TB)

    def padHH(w):                          # (H,H) -> (Hp,Hp)
        return jnp.pad(w, ((0, pad_h), (0, pad_h)))

    def padH(v):                           # (H,) -> (Hp,)
        return jnp.pad(v, (0, pad_h))

    def fuse_gates(w):                     # (3H,H) torch -> (Hp, 3Hp) bf16, gates r|z|n
        gs = [padHH(w[g * H:(g + 1) * H, :].T) for g in range(3)]
        return jnp.concatenate(gs, axis=1).astype(jnp.bfloat16)

    def gate_bias(b_ih, b_hh):             # (1, 3Hp) f32: [b_r(sum) | b_z(sum) | b_in]
        return jnp.concatenate([padH(b_ih[0:H] + b_hh[0:H]),
                                padH(b_ih[H:2 * H] + b_hh[H:2 * H]),
                                padH(b_ih[2 * H:3 * H])]).reshape(1, 3 * Hp)

    def hn_bias(b_hh):                     # (1, Hp) f32: b_hh_n (inside r*(...))
        return padH(b_hh[2 * H:3 * H]).reshape(1, Hp)

    weights = (
        fuse_gates(params["w_ih_f"]), fuse_gates(params["w_hh_f"]),
        gate_bias(params["b_ih_f"], params["b_hh_f"]), hn_bias(params["b_hh_f"]),
        fuse_gates(params["w_ih_b"]), fuse_gates(params["w_hh_b"]),
        gate_bias(params["b_ih_b"], params["b_hh_b"]), hn_bias(params["b_hh_b"]),
        jnp.stack([padHH(params["fc_w"][:, 0:H].T),
                   padHH(params["fc_w"][:, H:2 * H].T)], axis=0).astype(jnp.bfloat16),
        padH(params["fc_b"]).reshape(1, Hp),
        padHH(params["attn_w"].T).astype(jnp.bfloat16),
        padH(params["attn_b"]).reshape(1, Hp),
        padH(params["ctx"]).reshape(1, Hp),
    )

    def const_spec(a):
        nd = a.ndim
        return pl.BlockSpec(a.shape, lambda i, nd=nd: (0,) * nd)       # resident weights

    in_specs = [
        pl.BlockSpec((S, TB, Hp), lambda i: (0, i, 0)),                # x (time-major tile)
        pl.BlockSpec((1, 1, TB), lambda i: (i, 0, 0)),                 # lengths
        pl.BlockSpec((TB, Hp), lambda i: (i, 0)),                      # h0 fwd
        pl.BlockSpec((TB, Hp), lambda i: (i, 0)),                      # h0 bwd
    ] + [const_spec(a) for a in weights]

    out_specs = [
        pl.BlockSpec((TB, Hp), lambda i: (i, 0)),                      # out
        pl.BlockSpec((TB, Hp), lambda i: (i, 0)),                      # hn fwd
        pl.BlockSpec((TB, Hp), lambda i: (i, 0)),                      # hn bwd
        pl.BlockSpec((1, S, TB), lambda i: (i, 0, 0)),                 # scores (lane-dense)
    ]
    out_shape = (
        jax.ShapeDtypeStruct((B_pad, Hp), jnp.float32),
        jax.ShapeDtypeStruct((B_pad, Hp), jnp.float32),
        jax.ShapeDtypeStruct((B_pad, Hp), jnp.float32),
        jax.ShapeDtypeStruct((nb, S, TB), jnp.float32),
    )

    scratch_shapes = (
        [pltpu.VMEM((S, TB, 3 * Hp), jnp.bfloat16) for _ in range(2)]  # gi_f, gi_b
        + [pltpu.VMEM((S, TB, Hp), jnp.bfloat16) for _ in range(2)]    # outs_f, outs_b
    )

    # VMEM budget: scratch + double-buffered x tile + weights + outputs, with headroom.
    slab = S * TB * Hp
    est = (2 * slab * 3 * 2 + 2 * slab * 2                 # gi scratch + outs scratch (bf16)
           + 2 * slab * 2                                  # double-buffered x tile (bf16)
           + 2 * (4 * Hp * 3 * Hp * 2 + 3 * Hp * Hp * 2 + 12 * Hp * 4)   # weights (x2 buffers)
           + 2 * (3 * TB * Hp * 4 + S * TB * 4 + TB * 4))  # outputs + lengths (x2 buffers)
    vmem_limit = int(min(100 * 1024 * 1024, max(32 * 1024 * 1024, 1.5 * est) + (2 << 20)))

    grid_spec = pltpu.PrefetchScalarGridSpec(
        num_scalar_prefetch=0,
        grid=(nb,),
        in_specs=in_specs,
        out_specs=out_specs,
        scratch_shapes=scratch_shapes,
    )

    out, hnf, hnb, scores = pl.pallas_call(
        _sentence_attn_kernel,
        grid_spec=grid_spec,
        out_shape=out_shape,
        compiler_params=pltpu.CompilerParams(
            dimension_semantics=("parallel",),
            vmem_limit_bytes=vmem_limit,
        ),
    )(xp, lens3, h0f, h0b, *weights)

    outputs = out[:B, :H]                                              # (B, H)
    hidden_out = jnp.stack([hnf[:B, :H], hnb[:B, :H]], axis=0)         # (2, B, H)
    attn_scores = jnp.transpose(scores, (0, 2, 1)).reshape(B_pad, S)[:B]   # (B, S)
    return outputs, hidden_out, attn_scores


def init_params(key, H):
    """Deterministic synthetic parameters (PyTorch-style uniform(-1/sqrt(H), 1/sqrt(H)))."""
    k = 1.0 / np.sqrt(H)
    names_shapes = [
        ("w_ih_f", (3 * H, H)), ("w_hh_f", (3 * H, H)), ("b_ih_f", (3 * H,)), ("b_hh_f", (3 * H,)),
        ("w_ih_b", (3 * H, H)), ("w_hh_b", (3 * H, H)), ("b_ih_b", (3 * H,)), ("b_hh_b", (3 * H,)),
        ("fc_w", (H, 2 * H)), ("fc_b", (H,)),
        ("attn_w", (H, H)), ("attn_b", (H,)), ("ctx", (H,)),
    ]
    keys = jax.random.split(key, len(names_shapes))
    return {name: jax.random.uniform(kk, shape, jnp.float32, -k, k)
            for kk, (name, shape) in zip(keys, names_shapes)}


def reference_forward(x, hidden_state, lengths, p):
    """Pure-JAX reference mirroring the PyTorch forward (eval mode)."""
    B, S, H = x.shape
    hp = jax.lax.Precision.HIGHEST

    def gru_scan(xs, h, w_ih, w_hh, b_ih, b_hh):
        def step(h, x_t):
            gi = jnp.dot(x_t, w_ih.T, precision=hp) + b_ih
            gh = jnp.dot(h, w_hh.T, precision=hp) + b_hh
            r = jax.nn.sigmoid(gi[:, :H] + gh[:, :H])
            z = jax.nn.sigmoid(gi[:, H:2 * H] + gh[:, H:2 * H])
            n = jnp.tanh(gi[:, 2 * H:] + r * gh[:, 2 * H:])
            h = (1.0 - z) * n + z * h
            return h, h
        return lax.scan(step, h, xs)

    xs = jnp.transpose(x, (1, 0, 2))                                          # (S, B, H)
    h_f, outs_f = gru_scan(xs, hidden_state[0], p["w_ih_f"], p["w_hh_f"], p["b_ih_f"], p["b_hh_f"])
    h_b, outs_b = gru_scan(xs[::-1], hidden_state[1], p["w_ih_b"], p["w_hh_b"], p["b_ih_b"], p["b_hh_b"])
    outs_b = outs_b[::-1]
    cat = jnp.transpose(jnp.concatenate([outs_f, outs_b], axis=-1), (1, 0, 2))  # (B, S, 2H)
    fc_out = jax.nn.relu(jnp.einsum("bsi,oi->bso", cat, p["fc_w"], precision=hp) + p["fc_b"])
    u = jnp.tanh(jnp.einsum("bsi,oi->bso", fc_out, p["attn_w"], precision=hp) + p["attn_b"])
    sc = jnp.einsum("bsh,h->bs", u, p["ctx"], precision=hp)
    mask = jnp.arange(S)[None, :] < lengths[:, None]
    sc = jnp.where(mask, sc, -1e9)
    ex = jnp.exp(sc - sc.max(axis=1, keepdims=True)) * mask.astype(jnp.float32)
    attn = ex / ex.sum(axis=1, keepdims=True)
    out = jnp.sum(attn[:, :, None] * fc_out, axis=1)
    hn = jnp.stack([h_f, h_b], axis=0)
    return out, hn, attn


if __name__ == "__main__":
    B, S, H = 2, 8, 32
    key = jax.random.PRNGKey(0)
    kx, kp = jax.random.split(key)
    params = init_params(kp, H)
    x = jax.random.normal(kx, (B, S, H), jnp.float32)
    hidden_state = jnp.zeros((2, B, H), jnp.float32)
    lengths = jnp.array([S, 5], dtype=jnp.int32)

    out, hn, attn = jax.block_until_ready(
        sentence_attn_forward(x, hidden_state, lengths, params))

    ref_out, ref_hn, ref_attn = reference_forward(x, hidden_state, lengths, params)

    assert out.shape == (B, H) and hn.shape == (2, B, H) and attn.shape == (B, S)
    np.testing.assert_allclose(np.asarray(out), np.asarray(ref_out), rtol=1e-2, atol=1e-2)
    np.testing.assert_allclose(np.asarray(hn), np.asarray(ref_hn), rtol=1e-2, atol=1e-2)
    np.testing.assert_allclose(np.asarray(attn), np.asarray(ref_attn), rtol=1e-2, atol=1e-2)
    print("KERNEL_OK")
</pallas_src>

<mosaic_0001>
module attributes {stable_mosaic.version = 11 : i64} {
  func.func @_sentence_attn_kernel(%arg0: i32, %arg1: memref<8x8x128xbf16, #tpu.memory_space<vmem>>, %arg2: memref<1x1x8xi32, #tpu.memory_space<vmem>>, %arg3: memref<8x128xf32, #tpu.memory_space<vmem>>, %arg4: memref<8x128xf32, #tpu.memory_space<vmem>>, %arg5: memref<128x384xbf16, #tpu.memory_space<vmem>>, %arg6: memref<128x384xbf16, #tpu.memory_space<vmem>>, %arg7: memref<1x384xf32, #tpu.memory_space<vmem>>, %arg8: memref<1x128xf32, #tpu.memory_space<vmem>>, %arg9: memref<128x384xbf16, #tpu.memory_space<vmem>>, %arg10: memref<128x384xbf16, #tpu.memory_space<vmem>>, %arg11: memref<1x384xf32, #tpu.memory_space<vmem>>, %arg12: memref<1x128xf32, #tpu.memory_space<vmem>>, %arg13: memref<2x128x128xbf16, #tpu.memory_space<vmem>>, %arg14: memref<1x128xf32, #tpu.memory_space<vmem>>, %arg15: memref<128x128xbf16, #tpu.memory_space<vmem>>, %arg16: memref<1x128xf32, #tpu.memory_space<vmem>>, %arg17: memref<1x128xf32, #tpu.memory_space<vmem>>, %arg18: memref<8x128xf32, #tpu.memory_space<vmem>>, %arg19: memref<8x128xf32, #tpu.memory_space<vmem>>, %arg20: memref<8x128xf32, #tpu.memory_space<vmem>>, %arg21: memref<1x8x8xf32, #tpu.memory_space<vmem>>, %arg22: memref<8x8x384xbf16, #tpu.memory_space<vmem>>, %arg23: memref<8x8x384xbf16, #tpu.memory_space<vmem>>, %arg24: memref<8x8x128xbf16, #tpu.memory_space<vmem>>, %arg25: memref<8x8x128xbf16, #tpu.memory_space<vmem>>) attributes {dimension_semantics = [#tpu.dimension_semantics<parallel>], iteration_bounds = array<i64: 1>, scalar_prefetch = 0 : i64, scratch_operands = 4 : i64, tpu.core_type = #tpu.core_type<tc>, window_params = [{transform_indices = @transform_0, window_bounds = array<i64: 8, 8, 128>}, {transform_indices = @transform_1, window_bounds = array<i64: 1, 1, 8>}, {transform_indices = @transform_2, window_bounds = array<i64: 8, 128>}, {transform_indices = @transform_3, window_bounds = array<i64: 8, 128>}, {pipeline_mode = #tpu.pipeline_mode<synchronous>, transform_indices = @transform_4, window_bounds = array<i64: 128, 384>}, {pipeline_mode = #tpu.pipeline_mode<synchronous>, transform_indices = @transform_5, window_bounds = array<i64: 128, 384>}, {pipeline_mode = #tpu.pipeline_mode<synchronous>, transform_indices = @transform_6, window_bounds = array<i64: 1, 384>}, {pipeline_mode = #tpu.pipeline_mode<synchronous>, transform_indices = @transform_7, window_bounds = array<i64: 1, 128>}, {pipeline_mode = #tpu.pipeline_mode<synchronous>, transform_indices = @transform_8, window_bounds = array<i64: 128, 384>}, {pipeline_mode = #tpu.pipeline_mode<synchronous>, transform_indices = @transform_9, window_bounds = array<i64: 128, 384>}, {pipeline_mode = #tpu.pipeline_mode<synchronous>, transform_indices = @transform_10, window_bounds = array<i64: 1, 384>}, {pipeline_mode = #tpu.pipeline_mode<synchronous>, transform_indices = @transform_11, window_bounds = array<i64: 1, 128>}, {pipeline_mode = #tpu.pipeline_mode<synchronous>, transform_indices = @transform_12, window_bounds = array<i64: 2, 128, 128>}, {pipeline_mode = #tpu.pipeline_mode<synchronous>, transform_indices = @transform_13, window_bounds = array<i64: 1, 128>}, {pipeline_mode = #tpu.pipeline_mode<synchronous>, transform_indices = @transform_14, window_bounds = array<i64: 128, 128>}, {pipeline_mode = #tpu.pipeline_mode<synchronous>, transform_indices = @transform_15, window_bounds = array<i64: 1, 128>}, {pipeline_mode = #tpu.pipeline_mode<synchronous>, transform_indices = @transform_16, window_bounds = array<i64: 1, 128>}, {transform_indices = @transform_17, window_bounds = array<i64: 8, 128>}, {transform_indices = @transform_18, window_bounds = array<i64: 8, 128>}, {transform_indices = @transform_19, window_bounds = array<i64: 8, 128>}, {transform_indices = @transform_20, window_bounds = array<i64: 1, 8, 8>}]} {
    %c0 = arith.constant 0 : index
    %c0_0 = arith.constant 0 : index
    %c0_1 = arith.constant 0 : index
    %0 = vector.load %arg1[%c0, %c0_0, %c0_1] : memref<8x8x128xbf16, #tpu.memory_space<vmem>>, vector<8x8x128xbf16>
    %1 = vector.shape_cast %0 : vector<8x8x128xbf16> to vector<64x128xbf16>
    %c0_2 = arith.constant 0 : index
    %c0_3 = arith.constant 0 : index
    %2 = vector.load %arg5[%c0_2, %c0_3] : memref<128x384xbf16, #tpu.memory_space<vmem>>, vector<128x384xbf16>
    %cst = arith.constant dense<0.000000e+00> : vector<64x384xf32>
    %3 = tpu.matmul %1, %2, %cst {dimension_numbers = #tpu.dot_dimension_numbers<[1], [0], [0], [1], [0, 0, 1, 1], [], []>} : vector<64x128xbf16>, vector<128x384xbf16>, vector<64x384xf32> -> vector<64x384xf32>
    %c0_4 = arith.constant 0 : index
    %c0_5 = arith.constant 0 : index
    %4 = vector.load %arg7[%c0_4, %c0_5] : memref<1x384xf32, #tpu.memory_space<vmem>>, vector<1x384xf32>
    %5 = vector.broadcast %4 : vector<1x384xf32> to vector<64x384xf32>
    %6 = arith.addf %3, %5 : vector<64x384xf32>
    %7 = arith.truncf %6 : vector<64x384xf32> to vector<64x384xbf16>
    %8 = vector.shape_cast %7 : vector<64x384xbf16> to vector<8x8x384xbf16>
    %c0_6 = arith.constant 0 : index
    %c0_7 = arith.constant 0 : index
    %c0_8 = arith.constant 0 : index
    %9 = vector.load %arg22[%c0_6, %c0_7, %c0_8] : memref<8x8x384xbf16, #tpu.memory_space<vmem>>, vector<8x8x384xbf16>
    tpu.vector_store %arg22[%c0_6, %c0_7, %c0_8], %8 {strides = array<i32>} : memref<8x8x384xbf16, #tpu.memory_space<vmem>>, vector<8x8x384xbf16>,
    %c0_9 = arith.constant 0 : index
    %c0_10 = arith.constant 0 : index
    %10 = vector.load %arg9[%c0_9, %c0_10] : memref<128x384xbf16, #tpu.memory_space<vmem>>, vector<128x384xbf16>
    %cst_11 = arith.constant dense<0.000000e+00> : vector<64x384xf32>
    %11 = tpu.matmul %1, %10, %cst_11 {dimension_numbers = #tpu.dot_dimension_numbers<[1], [0], [0], [1], [0, 0, 1, 1], [], []>} : vector<64x128xbf16>, vector<128x384xbf16>, vector<64x384xf32> -> vector<64x384xf32>
    %c0_12 = arith.constant 0 : index
    %c0_13 = arith.constant 0 : index
    %12 = vector.load %arg11[%c0_12, %c0_13] : memref<1x384xf32, #tpu.memory_space<vmem>>, vector<1x384xf32>
    %13 = vector.broadcast %12 : vector<1x384xf32> to vector<64x384xf32>
    %14 = arith.addf %11, %13 : vector<64x384xf32>
    %15 = arith.truncf %14 : vector<64x384xf32> to vector<64x384xbf16>
    %16 = vector.shape_cast %15 : vector<64x384xbf16> to vector<8x8x384xbf16>
    %c0_14 = arith.constant 0 : index
    %c0_15 = arith.constant 0 : index
    %c0_16 = arith.constant 0 : index
    %17 = vector.load %arg23[%c0_14, %c0_15, %c0_16] : memref<8x8x384xbf16, #tpu.memory_space<vmem>>, vector<8x8x384xbf16>
    tpu.vector_store %arg23[%c0_14, %c0_15, %c0_16], %16 {strides = array<i32>} : memref<8x8x384xbf16, #tpu.memory_space<vmem>>, vector<8x8x384xbf16>,
    %c0_17 = arith.constant 0 : index
    %c0_18 = arith.constant 0 : index
    %18 = vector.load %arg8[%c0_17, %c0_18] : memref<1x128xf32, #tpu.memory_space<vmem>>, vector<1x128xf32>
    %c0_19 = arith.constant 0 : index
    %c0_20 = arith.constant 0 : index
    %19 = vector.load %arg12[%c0_19, %c0_20] : memref<1x128xf32, #tpu.memory_space<vmem>>, vector<1x128xf32>
    %c0_21 = arith.constant 0 : index
    %c0_22 = arith.constant 0 : index
    %20 = vector.load %arg3[%c0_21, %c0_22] : memref<8x128xf32, #tpu.memory_space<vmem>>, vector<8x128xf32>
    %c0_23 = arith.constant 0 : index
    %c0_24 = arith.constant 0 : index
    %21 = vector.load %arg4[%c0_23, %c0_24] : memref<8x128xf32, #tpu.memory_space<vmem>>, vector<8x128xf32>
    %c0_i32 = arith.constant 0 : i32
    %c7_i32 = arith.constant 7 : i32
    %22 = arith.subi %c7_i32, %c0_i32 : i32
    %23 = arith.index_cast %c0_i32 : i32 to index
    %c0_25 = arith.constant 0 : index
    %c0_26 = arith.constant 0 : index
    %24 = vector.load %arg22[%23, %c0_25, %c0_26] : memref<8x8x384xbf16, #tpu.memory_space<vmem>>, vector<1x8x384xbf16>
    %25 = vector.shape_cast %24 : vector<1x8x384xbf16> to vector<8x384xbf16>
    %26 = arith.truncf %20 : vector<8x128xf32> to vector<8x128xbf16>
    %c0_27 = arith.constant 0 : index
    %c0_28 = arith.constant 0 : index
    %27 = vector.load %arg6[%c0_27, %c0_28] : memref<128x384xbf16, #tpu.memory_space<vmem>>, vector<128x384xbf16>
    %cst_29 = arith.constant dense<0.000000e+00> : vector<8x384xf32>
    %28 = tpu.matmul %26, %27, %cst_29 {dimension_numbers = #tpu.dot_dimension_numbers<[1], [0], [0], [1], [0, 0, 1, 1], [], []>} : vector<8x128xbf16>, vector<128x384xbf16>, vector<8x384xf32> -> vector<8x384xf32>
    %29 = arith.extf %25 : vector<8x384xbf16> to vector<8x384xf32>
    %30 = vector.extract_strided_slice %29 {offsets = [0, 0], sizes = [8, 128], strides = [1, 1]} : vector<8x384xf32> to vector<8x128xf32>
    %31 = vector.extract_strided_slice %28 {offsets = [0, 0], sizes = [8, 128], strides = [1, 1]} : vector<8x384xf32> to vector<8x128xf32>
    %32 = arith.addf %30, %31 : vector<8x128xf32>
    %33 = arith.negf %32 : vector<8x128xf32>
    %34 = math.exp %33 : vector<8x128xf32>
    %cst_30 = arith.constant 1.000000e+00 : f32
    %35 = vector.broadcast %cst_30 : f32 to vector<8x128xf32>
    %36 = arith.addf %35, %34 : vector<8x128xf32>
    %37 = arith.divf %35, %36 : vector<8x128xf32>
    %38 = vector.extract_strided_slice %29 {offsets = [0, 128], sizes = [8, 128], strides = [1, 1]} : vector<8x384xf32> to vector<8x128xf32>
    %39 = vector.extract_strided_slice %28 {offsets = [0, 128], sizes = [8, 128], strides = [1, 1]} : vector<8x384xf32> to vector<8x128xf32>
    %40 = arith.addf %38, %39 : vector<8x128xf32>
    %41 = arith.negf %40 : vector<8x128xf32>
    %42 = math.exp %41 : vector<8x128xf32>
    %cst_31 = arith.constant 1.000000e+00 : f32
    %43 = vector.broadcast %cst_31 : f32 to vector<8x128xf32>
    %44 = arith.addf %43, %42 : vector<8x128xf32>
    %45 = arith.divf %43, %44 : vector<8x128xf32>
    %46 = vector.extract_strided_slice %29 {offsets = [0, 256], sizes = [8, 128], strides = [1, 1]} : vector<8x384xf32> to vector<8x128xf32>
    %47 = vector.extract_strided_slice %28 {offsets = [0, 256], sizes = [8, 128], strides = [1, 1]} : vector<8x384xf32> to vector<8x128xf32>
    %48 = vector.broadcast %18 : vector<1x128xf32> to vector<8x128xf32>
    %49 = arith.addf %47, %48 : vector<8x128xf32>
    %50 = arith.mulf %37, %49 : vector<8x128xf32>
    %51 = arith.addf %46, %50 : vector<8x128xf32>
    %52 = math.tanh %51 : vector<8x128xf32>
    %cst_32 = arith.constant 1.000000e+00 : f32
    %53 = vector.broadcast %cst_32 : f32 to vector<8x128xf32>
    %54 = arith.subf %53, %45 : vector<8x128xf32>
    %55 = arith.mulf %54, %52 : vector<8x128xf32>
    %56 = arith.mulf %45, %20 : vector<8x128xf32>
    %57 = arith.addf %55, %56 : vector<8x128xf32>
    %58 = arith.index_cast %22 : i32 to index
    %c0_33 = arith.constant 0 : index
    %c0_34 = arith.constant 0 : index
    %59 = vector.load %arg23[%58, %c0_33, %c0_34] : memref<8x8x384xbf16, #tpu.memory_space<vmem>>, vector<1x8x384xbf16>
    %60 = vector.shape_cast %59 : vector<1x8x384xbf16> to vector<8x384xbf16>
    %61 = arith.truncf %21 : vector<8x128xf32> to vector<8x128xbf16>
    %c0_35 = arith.constant 0 : index
    %c0_36 = arith.constant 0 : index
    %62 = vector.load %arg10[%c0_35, %c0_36] : memref<128x384xbf16, #tpu.memory_space<vmem>>, vector<128x384xbf16>
    %cst_37 = arith.constant dense<0.000000e+00> : vector<8x384xf32>
    %63 = tpu.matmul %61, %62, %cst_37 {dimension_numbers = #tpu.dot_dimension_numbers<[1], [0], [0], [1], [0, 0, 1, 1], [], []>} : vector<8x128xbf16>, vector<128x384xbf16>, vector<8x384xf32> -> vector<8x384xf32>
    %64 = arith.extf %60 : vector<8x384xbf16> to vector<8x384xf32>
    %65 = vector.extract_strided_slice %64 {offsets = [0, 0], sizes = [8, 128], strides = [1, 1]} : vector<8x384xf32> to vector<8x128xf32>
    %66 = vector.extract_strided_slice %63 {offsets = [0, 0], sizes = [8, 128], strides = [1, 1]} : vector<8x384xf32> to vector<8x128xf32>
    %67 = arith.addf %65, %66 : vector<8x128xf32>
    %68 = arith.negf %67 : vector<8x128xf32>
    %69 = math.exp %68 : vector<8x128xf32>
    %cst_38 = arith.constant 1.000000e+00 : f32
    %70 = vector.broadcast %cst_38 : f32 to vector<8x128xf32>
    %71 = arith.addf %70, %69 : vector<8x128xf32>
    %72 = arith.divf %70, %71 : vector<8x128xf32>
    %73 = vector.extract_strided_slice %64 {offsets = [0, 128], sizes = [8, 128], strides = [1, 1]} : vector<8x384xf32> to vector<8x128xf32>
    %74 = vector.extract_strided_slice %63 {offsets = [0, 128], sizes = [8, 128], strides = [1, 1]} : vector<8x384xf32> to vector<8x128xf32>
    %75 = arith.addf %73, %74 : vector<8x128xf32>
    %76 = arith.negf %75 : vector<8x128xf32>
    %77 = math.exp %76 : vector<8x128xf32>
    %cst_39 = arith.constant 1.000000e+00 : f32
    %78 = vector.broadcast %cst_39 : f32 to vector<8x128xf32>
    %79 = arith.addf %78, %77 : vector<8x128xf32>
    %80 = arith.divf %78, %79 : vector<8x128xf32>
    %81 = vector.extract_strided_slice %64 {offsets = [0, 256], sizes = [8, 128], strides = [1, 1]} : vector<8x384xf32> to vector<8x128xf32>
    %82 = vector.extract_strided_slice %63 {offsets = [0, 256], sizes = [8, 128], strides = [1, 1]} : vector<8x384xf32> to vector<8x128xf32>
    %83 = vector.broadcast %19 : vector<1x128xf32> to vector<8x128xf32>
    %84 = arith.addf %82, %83 : vector<8x128xf32>
    %85 = arith.mulf %72, %84 : vector<8x128xf32>
    %86 = arith.addf %81, %85 : vector<8x128xf32>
    %87 = math.tanh %86 : vector<8x128xf32>
    %cst_40 = arith.constant 1.000000e+00 : f32
    %88 = vector.broadcast %cst_40 : f32 to vector<8x128xf32>
    %89 = arith.subf %88, %80 : vector<8x128xf32>
    %90 = arith.mulf %89, %87 : vector<8x128xf32>
    %91 = arith.mulf %80, %21 : vector<8x128xf32>
    %92 = arith.addf %90, %91 : vector<8x128xf32>
    %93 = arith.truncf %57 : vector<8x128xf32> to vector<8x128xbf16>
    %94 = arith.index_cast %c0_i32 : i32 to index
    %c0_41 = arith.constant 0 : index
    %c0_42 = arith.constant 0 : index
    %95 = vector.load %arg24[%94, %c0_41, %c0_42] : memref<8x8x128xbf16, #tpu.memory_space<vmem>>, vector<1x8x128xbf16>
    %96 = vector.shape_cast %95 : vector<1x8x128xbf16> to vector<8x128xbf16>
    %97 = vector.shape_cast %93 : vector<8x128xbf16> to vector<1x8x128xbf16>
    tpu.vector_store %arg24[%94, %c0_41, %c0_42], %97 {strides = array<i32>} : memref<8x8x128xbf16, #tpu.memory_space<vmem>>, vector<1x8x128xbf16>,
    %98 = arith.truncf %92 : vector<8x128xf32> to vector<8x128xbf16>
    %99 = arith.index_cast %22 : i32 to index
    %c0_43 = arith.constant 0 : index
    %c0_44 = arith.constant 0 : index
    %100 = vector.load %arg25[%99, %c0_43, %c0_44] : memref<8x8x128xbf16, #tpu.memory_space<vmem>>, vector<1x8x128xbf16>
    %101 = vector.shape_cast %100 : vector<1x8x128xbf16> to vector<8x128xbf16>
    %102 = vector.shape_cast %98 : vector<8x128xbf16> to vector<1x8x128xbf16>
    tpu.vector_store %arg25[%99, %c0_43, %c0_44], %102 {strides = array<i32>} : memref<8x8x128xbf16, #tpu.memory_space<vmem>>, vector<1x8x128xbf16>,
    %c1_i32 = arith.constant 1 : i32
    %c7_i32_45 = arith.constant 7 : i32
    %103 = arith.subi %c7_i32_45, %c1_i32 : i32
    %104 = arith.index_cast %c1_i32 : i32 to index
    %c0_46 = arith.constant 0 : index
    %c0_47 = arith.constant 0 : index
    %105 = vector.load %arg22[%104, %c0_46, %c0_47] : memref<8x8x384xbf16, #tpu.memory_space<vmem>>, vector<1x8x384xbf16>
    %106 = vector.shape_cast %105 : vector<1x8x384xbf16> to vector<8x384xbf16>
    %107 = arith.truncf %57 : vector<8x128xf32> to vector<8x128xbf16>
    %c0_48 = arith.constant 0 : index
    %c0_49 = arith.constant 0 : index
    %108 = vector.load %arg6[%c0_48, %c0_49] : memref<128x384xbf16, #tpu.memory_space<vmem>>, vector<128x384xbf16>
    %cst_50 = arith.constant dense<0.000000e+00> : vector<8x384xf32>
    %109 = tpu.matmul %107, %108, %cst_50 {dimension_numbers = #tpu.dot_dimension_numbers<[1], [0], [0], [1], [0, 0, 1, 1], [], []>} : vector<8x128xbf16>, vector<128x384xbf16>, vector<8x384xf32> -> vector<8x384xf32>
    %110 = arith.extf %106 : vector<8x384xbf16> to vector<8x384xf32>
    %111 = vector.extract_strided_slice %110 {offsets = [0, 0], sizes = [8, 128], strides = [1, 1]} : vector<8x384xf32> to vector<8x128xf32>
    %112 = vector.extract_strided_slice %109 {offsets = [0, 0], sizes = [8, 128], strides = [1, 1]} : vector<8x384xf32> to vector<8x128xf32>
    %113 = arith.addf %111, %112 : vector<8x128xf32>
    %114 = arith.negf %113 : vector<8x128xf32>
    %115 = math.exp %114 : vector<8x128xf32>
    %cst_51 = arith.constant 1.000000e+00 : f32
    %116 = vector.broadcast %cst_51 : f32 to vector<8x128xf32>
    %117 = arith.addf %116, %115 : vector<8x128xf32>
    %118 = arith.divf %116, %117 : vector<8x128xf32>
    %119 = vector.extract_strided_slice %110 {offsets = [0, 128], sizes = [8, 128], strides = [1, 1]} : vector<8x384xf32> to vector<8x128xf32>
    %120 = vector.extract_strided_slice %109 {offsets = [0, 128], sizes = [8, 128], strides = [1, 1]} : vector<8x384xf32> to vector<8x128xf32>
    %121 = arith.addf %119, %120 : vector<8x128xf32>
    %122 = arith.negf %121 : vector<8x128xf32>
    %123 = math.exp %122 : vector<8x128xf32>
    %cst_52 = arith.constant 1.000000e+00 : f32
    %124 = vector.broadcast %cst_52 : f32 to vector<8x128xf32>
    %125 = arith.addf %124, %123 : vector<8x128xf32>
    %126 = arith.divf %124, %125 : vector<8x128xf32>
    %127 = vector.extract_strided_slice %110 {offsets = [0, 256], sizes = [8, 128], strides = [1, 1]} : vector<8x384xf32> to vector<8x128xf32>
    %128 = vector.extract_strided_slice %109 {offsets = [0, 256], sizes = [8, 128], strides = [1, 1]} : vector<8x384xf32> to vector<8x128xf32>
    %129 = vector.broadcast %18 : vector<1x128xf32> to vector<8x128xf32>
    %130 = arith.addf %128, %129 : vector<8x128xf32>
    %131 = arith.mulf %118, %130 : vector<8x128xf32>
    %132 = arith.addf %127, %131 : vector<8x128xf32>
    %133 = math.tanh %132 : vector<8x128xf32>
    %cst_53 = arith.constant 1.000000e+00 : f32
    %134 = vector.broadcast %cst_53 : f32 to vector<8x128xf32>
    %135 = arith.subf %134, %126 : vector<8x128xf32>
    %136 = arith.mulf %135, %133 : vector<8x128xf32>
    %137 = arith.mulf %126, %57 : vector<8x128xf32>
    %138 = arith.addf %136, %137 : vector<8x128xf32>
    %139 = arith.index_cast %103 : i32 to index
    %c0_54 = arith.constant 0 : index
    %c0_55 = arith.constant 0 : index
    %140 = vector.load %arg23[%139, %c0_54, %c0_55] : memref<8x8x384xbf16, #tpu.memory_space<vmem>>, vector<1x8x384xbf16>
    %141 = vector.shape_cast %140 : vector<1x8x384xbf16> to vector<8x384xbf16>
    %142 = arith.truncf %92 : vector<8x128xf32> to vector<8x128xbf16>
    %c0_56 = arith.constant 0 : index
    %c0_57 = arith.constant 0 : index
    %143 = vector.load %arg10[%c0_56, %c0_57] : memref<128x384xbf16, #tpu.memory_space<vmem>>, vector<128x384xbf16>
    %cst_58 = arith.constant dense<0.000000e+00> : vector<8x384xf32>
    %144 = tpu.matmul %142, %143, %cst_58 {dimension_numbers = #tpu.dot_dimension_numbers<[1], [0], [0], [1], [0, 0, 1, 1], [], []>} : vector<8x128xbf16>, vector<128x384xbf16>, vector<8x384xf32> -> vector<8x384xf32>
    %145 = arith.extf %141 : vector<8x384xbf16> to vector<8x384xf32>
    %146 = vector.extract_strided_slice %145 {offsets = [0, 0], sizes = [8, 128], strides = [1, 1]} : vector<8x384xf32> to vector<8x128xf32>
    %147 = vector.extract_strided_slice %144 {offsets = [0, 0], sizes = [8, 128], strides = [1, 1]} : vector<8x384xf32> to vector<8x128xf32>
    %148 = arith.addf %146, %147 : vector<8x128xf32>
    %149 = arith.negf %148 : vector<8x128xf32>
    %150 = math.exp %149 : vector<8x128xf32>
    %cst_59 = arith.constant 1.000000e+00 : f32
    %151 = vector.broadcast %cst_59 : f32 to vector<8x128xf32>
    %152 = arith.addf %151, %150 : vector<8x128xf32>
    %153 = arith.divf %151, %152 : vector<8x128xf32>
    %154 = vector.extract_strided_slice %145 {offsets = [0, 128], sizes = [8, 128], strides = [1, 1]} : vector<8x384xf32> to vector<8x128xf32>
    %155 = vector.extract_strided_slice %144 {offsets = [0, 128], sizes = [8, 128], strides = [1, 1]} : vector<8x384xf32> to vector<8x128xf32>
    %156 = arith.addf %154, %155 : vector<8x128xf32>
    %157 = arith.negf %156 : vector<8x128xf32>
    %158 = math.exp %157 : vector<8x128xf32>
    %cst_60 = arith.constant 1.000000e+00 : f32
    %159 = vector.broadcast %cst_60 : f32 to vector<8x128xf32>
    %160 = arith.addf %159, %158 : vector<8x128xf32>
    %161 = arith.divf %159, %160 : vector<8x128xf32>
    %162 = vector.extract_strided_slice %145 {offsets = [0, 256], sizes = [8, 128], strides = [1, 1]} : vector<8x384xf32> to vector<8x128xf32>
    %163 = vector.extract_strided_slice %144 {offsets = [0, 256], sizes = [8, 128], strides = [1, 1]} : vector<8x384xf32> to vector<8x128xf32>
    %164 = vector.broadcast %19 : vector<1x128xf32> to vector<8x128xf32>
    %165 = arith.addf %163, %164 : vector<8x128xf32>
    %166 = arith.mulf %153, %165 : vector<8x128xf32>
    %167 = arith.addf %162, %166 : vector<8x128xf32>
    %168 = math.tanh %167 : vector<8x128xf32>
    %cst_61 = arith.constant 1.000000e+00 : f32
    %169 = vector.broadcast %cst_61 : f32 to vector<8x128xf32>
    %170 = arith.subf %169, %161 : vector<8x128xf32>
    %171 = arith.mulf %170, %168 : vector<8x128xf32>
    %172 = arith.mulf %161, %92 : vector<8x128xf32>
    %173 = arith.addf %171, %172 : vector<8x128xf32>
    %174 = arith.truncf %138 : vector<8x128xf32> to vector<8x128xbf16>
    %175 = arith.index_cast %c1_i32 : i32 to index
    %c0_62 = arith.constant 0 : index
    %c0_63 = arith.constant 0 : index
    %176 = vector.load %arg24[%175, %c0_62, %c0_63] : memref<8x8x128xbf16, #tpu.memory_space<vmem>>, vector<1x8x128xbf16>
    %177 = vector.shape_cast %176 : vector<1x8x128xbf16> to vector<8x128xbf16>
    %178 = vector.shape_cast %174 : vector<8x128xbf16> to vector<1x8x128xbf16>
    tpu.vector_store %arg24[%175, %c0_62, %c0_63], %178 {strides = array<i32>} : memref<8x8x128xbf16, #tpu.memory_space<vmem>>, vector<1x8x128xbf16>,
    %179 = arith.truncf %173 : vector<8x128xf32> to vector<8x128xbf16>
    %180 = arith.index_cast %103 : i32 to index
    %c0_64 = arith.constant 0 : index
    %c0_65 = arith.constant 0 : index
    %181 = vector.load %arg25[%180, %c0_64, %c0_65] : memref<8x8x128xbf16, #tpu.memory_space<vmem>>, vector<1x8x128xbf16>
    %182 = vector.shape_cast %181 : vector<1x8x128xbf16> to vector<8x128xbf16>
    %183 = vector.shape_cast %179 : vector<8x128xbf16> to vector<1x8x128xbf16>
    tpu.vector_store %arg25[%180, %c0_64, %c0_65], %183 {strides = array<i32>} : memref<8x8x128xbf16, #tpu.memory_space<vmem>>, vector<1x8x128xbf16>,
    %c2_i32 = arith.constant 2 : i32
    %c7_i32_66 = arith.constant 7 : i32
    %184 = arith.subi %c7_i32_66, %c2_i32 : i32
    %185 = arith.index_cast %c2_i32 : i32 to index
    %c0_67 = arith.constant 0 : index
    %c0_68 = arith.constant 0 : index
    %186 = vector.load %arg22[%185, %c0_67, %c0_68] : memref<8x8x384xbf16, #tpu.memory_space<vmem>>, vector<1x8x384xbf16>
    %187 = vector.shape_cast %186 : vector<1x8x384xbf16> to vector<8x384xbf16>
    %188 = arith.truncf %138 : vector<8x128xf32> to vector<8x128xbf16>
    %c0_69 = arith.constant 0 : index
    %c0_70 = arith.constant 0 : index
    %189 = vector.load %arg6[%c0_69, %c0_70] : memref<128x384xbf16, #tpu.memory_space<vmem>>, vector<128x384xbf16>
    %cst_71 = arith.constant dense<0.000000e+00> : vector<8x384xf32>
    %190 = tpu.matmul %188, %189, %cst_71 {dimension_numbers = #tpu.dot_dimension_numbers<[1], [0], [0], [1], [0, 0, 1, 1], [], []>} : vector<8x128xbf16>, vector<128x384xbf16>, vector<8x384xf32> -> vector<8x384xf32>
    %191 = arith.extf %187 : vector<8x384xbf16> to vector<8x384xf32>
    %192 = vector.extract_strided_slice %191 {offsets = [0, 0], sizes = [8, 128], strides = [1, 1]} : vector<8x384xf32> to vector<8x128xf32>
    %193 = vector.extract_strided_slice %190 {offsets = [0, 0], sizes = [8, 128], strides = [1, 1]} : vector<8x384xf32> to vector<8x128xf32>
    %194 = arith.addf %192, %193 : vector<8x128xf32>
    %195 = arith.negf %194 : vector<8x128xf32>
    %196 = math.exp %195 : vector<8x128xf32>
    %cst_72 = arith.constant 1.000000e+00 : f32
    %197 = vector.broadcast %cst_72 : f32 to vector<8x128xf32>
    %198 = arith.addf %197, %196 : vector<8x128xf32>
    %199 = arith.divf %197, %198 : vector<8x128xf32>
    %200 = vector.extract_strided_slice %191 {offsets = [0, 128], sizes = [8, 128], strides = [1, 1]} : vector<8x384xf32> to vector<8x128xf32>
    %201 = vector.extract_strided_slice %190 {offsets = [0, 128], sizes = [8, 128], strides = [1, 1]} : vector<8x384xf32> to vector<8x128xf32>
    %202 = arith.addf %200, %201 : vector<8x128xf32>
    %203 = arith.negf %202 : vector<8x128xf32>
    %204 = math.exp %203 : vector<8x128xf32>
    %cst_73 = arith.constant 1.000000e+00 : f32
    %205 = vector.broadcast %cst_73 : f32 to vector<8x128xf32>
    %206 = arith.addf %205, %204 : vector<8x128xf32>
    %207 = arith.divf %205, %206 : vector<8x128xf32>
    %208 = vector.extract_strided_slice %191 {offsets = [0, 256], sizes = [8, 128], strides = [1, 1]} : vector<8x384xf32> to vector<8x128xf32>
    %209 = vector.extract_strided_slice %190 {offsets = [0, 256], sizes = [8, 128], strides = [1, 1]} : vector<8x384xf32> to vector<8x128xf32>
    %210 = vector.broadcast %18 : vector<1x128xf32> to vector<8x128xf32>
    %211 = arith.addf %209, %210 : vector<8x128xf32>
    %212 = arith.mulf %199, %211 : vector<8x128xf32>
    %213 = arith.addf %208, %212 : vector<8x128xf32>
    %214 = math.tanh %213 : vector<8x128xf32>
    %cst_74 = arith.constant 1.000000e+00 : f32
    %215 = vector.broadcast %cst_74 : f32 to vector<8x128xf32>
    %216 = arith.subf %215, %207 : vector<8x128xf32>
    %217 = arith.mulf %216, %214 : vector<8x128xf32>
    %218 = arith.mulf %207, %138 : vector<8x128xf32>
    %219 = arith.addf %217, %218 : vector<8x128xf32>
    %220 = arith.index_cast %184 : i32 to index
    %c0_75 = arith.constant 0 : index
    %c0_76 = arith.constant 0 : index
    %221 = vector.load %arg23[%220, %c0_75, %c0_76] : memref<8x8x384xbf16, #tpu.memory_space<vmem>>, vector<1x8x384xbf16>
    %222 = vector.shape_cast %221 : vector<1x8x384xbf16> to vector<8x384xbf16>
    %223 = arith.truncf %173 : vector<8x128xf32> to vector<8x128xbf16>
    %c0_77 = arith.constant 0 : index
    %c0_78 = arith.constant 0 : index
    %224 = vector.load %arg10[%c0_77, %c0_78] : memref<128x384xbf16, #tpu.memory_space<vmem>>, vector<128x384xbf16>
    %cst_79 = arith.constant dense<0.000000e+00> : vector<8x384xf32>
    %225 = tpu.matmul %223, %224, %cst_79 {dimension_numbers = #tpu.dot_dimension_numbers<[1], [0], [0], [1], [0, 0, 1, 1], [], []>} : vector<8x128xbf16>, vector<128x384xbf16>, vector<8x384xf32> -> vector<8x384xf32>
    %226 = arith.extf %222 : vector<8x384xbf16> to vector<8x384xf32>
    %227 = vector.extract_strided_slice %226 {offsets = [0, 0], sizes = [8, 128], strides = [1, 1]} : vector<8x384xf32> to vector<8x128xf32>
    %228 = vector.extract_strided_slice %225 {offsets = [0, 0], sizes = [8, 128], strides = [1, 1]} : vector<8x384xf32> to vector<8x128xf32>
    %229 = arith.addf %227, %228 : vector<8x128xf32>
    %230 = arith.negf %229 : vector<8x128xf32>
    %231 = math.exp %230 : vector<8x128xf32>
    %cst_80 = arith.constant 1.000000e+00 : f32
    %232 = vector.broadcast %cst_80 : f32 to vector<8x128xf32>
    %233 = arith.addf %232, %231 : vector<8x128xf32>
    %234 = arith.divf %232, %233 : vector<8x128xf32>
    %235 = vector.extract_strided_slice %226 {offsets = [0, 128], sizes = [8, 128], strides = [1, 1]} : vector<8x384xf32> to vector<8x128xf32>
    %236 = vector.extract_strided_slice %225 {offsets = [0, 128], sizes = [8, 128], strides = [1, 1]} : vector<8x384xf32> to vector<8x128xf32>
    %237 = arith.addf %235, %236 : vector<8x128xf32>
    %238 = arith.negf %237 : vector<8x128xf32>
    %239 = math.exp %238 : vector<8x128xf32>
    %cst_81 = arith.constant 1.000000e+00 : f32
    %240 = vector.broadcast %cst_81 : f32 to vector<8x128xf32>
    %241 = arith.addf %240, %239 : vector<8x128xf32>
    %242 = arith.divf %240, %241 : vector<8x128xf32>
    %243 = vector.extract_strided_slice %226 {offsets = [0, 256], sizes = [8, 128], strides = [1, 1]} : vector<8x384xf32> to vector<8x128xf32>
    %244 = vector.extract_strided_slice %225 {offsets = [0, 256], sizes = [8, 128], strides = [1, 1]} : vector<8x384xf32> to vector<8x128xf32>
    %245 = vector.broadcast %19 : vector<1x128xf32> to vector<8x128xf32>
    %246 = arith.addf %244, %245 : vector<8x128xf32>
    %247 = arith.mulf %234, %246 : vector<8x128xf32>
    %248 = arith.addf %243, %247 : vector<8x128xf32>
    %249 = math.tanh %248 : vector<8x128xf32>
    %cst_82 = arith.constant 1.000000e+00 : f32
    %250 = vector.broadcast %cst_82 : f32 to vector<8x128xf32>
    %251 = arith.subf %250, %242 : vector<8x128xf32>
    %252 = arith.mulf %251, %249 : vector<8x128xf32>
    %253 = arith.mulf %242, %173 : vector<8x128xf32>
    %254 = arith.addf %252, %253 : vector<8x128xf32>
    %255 = arith.truncf %219 : vector<8x128xf32> to vector<8x128xbf16>
    %256 = arith.index_cast %c2_i32 : i32 to index
    %c0_83 = arith.constant 0 : index
    %c0_84 = arith.constant 0 : index
    %257 = vector.load %arg24[%256, %c0_83, %c0_84] : memref<8x8x128xbf16, #tpu.memory_space<vmem>>, vector<1x8x128xbf16>
    %258 = vector.shape_cast %257 : vector<1x8x128xbf16> to vector<8x128xbf16>
    %259 = vector.shape_cast %255 : vector<8x128xbf16> to vector<1x8x128xbf16>
    tpu.vector_store %arg24[%256, %c0_83, %c0_84], %259 {strides = array<i32>} : memref<8x8x128xbf16, #tpu.memory_space<vmem>>, vector<1x8x128xbf16>,
    %260 = arith.truncf %254 : vector<8x128xf32> to vector<8x128xbf16>
    %261 = arith.index_cast %184 : i32 to index
    %c0_85 = arith.constant 0 : index
    %c0_86 = arith.constant 0 : index
    %262 = vector.load %arg25[%261, %c0_85, %c0_86] : memref<8x8x128xbf16, #tpu.memory_space<vmem>>, vector<1x8x128xbf16>
    %263 = vector.shape_cast %262 : vector<1x8x128xbf16> to vector<8x128xbf16>
    %264 = vector.shape_cast %260 : vector<8x128xbf16> to vector<1x8x128xbf16>
    tpu.vector_store %arg25[%261, %c0_85, %c0_86], %264 {strides = array<i32>} : memref<8x8x128xbf16, #tpu.memory_space<vmem>>, vector<1x8x128xbf16>,
    %c3_i32 = arith.constant 3 : i32
    %c7_i32_87 = arith.constant 7 : i32
    %265 = arith.subi %c7_i32_87, %c3_i32 : i32
    %266 = arith.index_cast %c3_i32 : i32 to index
    %c0_88 = arith.constant 0 : index
    %c0_89 = arith.constant 0 : index
    %267 = vector.load %arg22[%266, %c0_88, %c0_89] : memref<8x8x384xbf16, #tpu.memory_space<vmem>>, vector<1x8x384xbf16>
    %268 = vector.shape_cast %267 : vector<1x8x384xbf16> to vector<8x384xbf16>
    %269 = arith.truncf %219 : vector<8x128xf32> to vector<8x128xbf16>
    %c0_90 = arith.constant 0 : index
    %c0_91 = arith.constant 0 : index
    %270 = vector.load %arg6[%c0_90, %c0_91] : memref<128x384xbf16, #tpu.memory_space<vmem>>, vector<128x384xbf16>
    %cst_92 = arith.constant dense<0.000000e+00> : vector<8x384xf32>
    %271 = tpu.matmul %269, %270, %cst_92 {dimension_numbers = #tpu.dot_dimension_numbers<[1], [0], [0], [1], [0, 0, 1, 1], [], []>} : vector<8x128xbf16>, vector<128x384xbf16>, vector<8x384xf32> -> vector<8x384xf32>
    %272 = arith.extf %268 : vector<8x384xbf16> to vector<8x384xf32>
    %273 = vector.extract_strided_slice %272 {offsets = [0, 0], sizes = [8, 128], strides = [1, 1]} : vector<8x384xf32> to vector<8x128xf32>
    %274 = vector.extract_strided_slice %271 {offsets = [0, 0], sizes = [8, 128], strides = [1, 1]} : vector<8x384xf32> to vector<8x128xf32>
    %275 = arith.addf %273, %274 : vector<8x128xf32>
    %276 = arith.negf %275 : vector<8x128xf32>
    %277 = math.exp %276 : vector<8x128xf32>
    %cst_93 = arith.constant 1.000000e+00 : f32
    %278 = vector.broadcast %cst_93 : f32 to vector<8x128xf32>
    %279 = arith.addf %278, %277 : vector<8x128xf32>
    %280 = arith.divf %278, %279 : vector<8x128xf32>
    %281 = vector.extract_strided_slice %272 {offsets = [0, 128], sizes = [8, 128], strides = [1, 1]} : vector<8x384xf32> to vector<8x128xf32>
    %282 = vector.extract_strided_slice %271 {offsets = [0, 128], sizes = [8, 128], strides = [1, 1]} : vector<8x384xf32> to vector<8x128xf32>
    %283 = arith.addf %281, %282 : vector<8x128xf32>
    %284 = arith.negf %283 : vector<8x128xf32>
    %285 = math.exp %284 : vector<8x128xf32>
    %cst_94 = arith.constant 1.000000e+00 : f32
    %286 = vector.broadcast %cst_94 : f32 to vector<8x128xf32>
    %287 = arith.addf %286, %285 : vector<8x128xf32>
    %288 = arith.divf %286, %287 : vector<8x128xf32>
    %289 = vector.extract_strided_slice %272 {offsets = [0, 256], sizes = [8, 128], strides = [1, 1]} : vector<8x384xf32> to vector<8x128xf32>
    %290 = vector.extract_strided_slice %271 {offsets = [0, 256], sizes = [8, 128], strides = [1, 1]} : vector<8x384xf32> to vector<8x128xf32>
    %291 = vector.broadcast %18 : vector<1x128xf32> to vector<8x128xf32>
    %292 = arith.addf %290, %291 : vector<8x128xf32>
    %293 = arith.mulf %280, %292 : vector<8x128xf32>
    %294 = arith.addf %289, %293 : vector<8x128xf32>
    %295 = math.tanh %294 : vector<8x128xf32>
    %cst_95 = arith.constant 1.000000e+00 : f32
    %296 = vector.broadcast %cst_95 : f32 to vector<8x128xf32>
    %297 = arith.subf %296, %288 : vector<8x128xf32>
    %298 = arith.mulf %297, %295 : vector<8x128xf32>
    %299 = arith.mulf %288, %219 : vector<8x128xf32>
    %300 = arith.addf %298, %299 : vector<8x128xf32>
    %301 = arith.index_cast %265 : i32 to index
    %c0_96 = arith.constant 0 : index
    %c0_97 = arith.constant 0 : index
    %302 = vector.load %arg23[%301, %c0_96, %c0_97] : memref<8x8x384xbf16, #tpu.memory_space<vmem>>, vector<1x8x384xbf16>
    %303 = vector.shape_cast %302 : vector<1x8x384xbf16> to vector<8x384xbf16>
    %304 = arith.truncf %254 : vector<8x128xf32> to vector<8x128xbf16>
    %c0_98 = arith.constant 0 : index
    %c0_99 = arith.constant 0 : index
    %305 = vector.load %arg10[%c0_98, %c0_99] : memref<128x384xbf16, #tpu.memory_space<vmem>>, vector<128x384xbf16>
    %cst_100 = arith.constant dense<0.000000e+00> : vector<8x384xf32>
    %306 = tpu.matmul %304, %305, %cst_100 {dimension_numbers = #tpu.dot_dimension_numbers<[1], [0], [0], [1], [0, 0, 1, 1], [], []>} : vector<8x128xbf16>, vector<128x384xbf16>, vector<8x384xf32> -> vector<8x384xf32>
    %307 = arith.extf %303 : vector<8x384xbf16> to vector<8x384xf32>
    %308 = vector.extract_strided_slice %307 {offsets = [0, 0], sizes = [8, 128], strides = [1, 1]} : vector<8x384xf32> to vector<8x128xf32>
    %309 = vector.extract_strided_slice %306 {offsets = [0, 0], sizes = [8, 128], strides = [1, 1]} : vector<8x384xf32> to vector<8x128xf32>
    %310 = arith.addf %308, %309 : vector<8x128xf32>
    %311 = arith.negf %310 : vector<8x128xf32>
    %312 = math.exp %311 : vector<8x128xf32>
    %cst_101 = arith.constant 1.000000e+00 : f32
    %313 = vector.broadcast %cst_101 : f32 to vector<8x128xf32>
    %314 = arith.addf %313, %312 : vector<8x128xf32>
    %315 = arith.divf %313, %314 : vector<8x128xf32>
    %316 = vector.extract_strided_slice %307 {offsets = [0, 128], sizes = [8, 128], strides = [1, 1]} : vector<8x384xf32> to vector<8x128xf32>
    %317 = vector.extract_strided_slice %306 {offsets = [0, 128], sizes = [8, 128], strides = [1, 1]} : vector<8x384xf32> to vector<8x128xf32>
    %318 = arith.addf %316, %317 : vector<8x128xf32>
    %319 = arith.negf %318 : vector<8x128xf32>
    %320 = math.exp %319 : vector<8x128xf32>
    %cst_102 = arith.constant 1.000000e+00 : f32
    %321 = vector.broadcast %cst_102 : f32 to vector<8x128xf32>
    %322 = arith.addf %321, %320 : vector<8x128xf32>
    %323 = arith.divf %321, %322 : vector<8x128xf32>
    %324 = vector.extract_strided_slice %307 {offsets = [0, 256], sizes = [8, 128], strides = [1, 1]} : vector<8x384xf32> to vector<8x128xf32>
    %325 = vector.extract_strided_slice %306 {offsets = [0, 256], sizes = [8, 128], strides = [1, 1]} : vector<8x384xf32> to vector<8x128xf32>
    %326 = vector.broadcast %19 : vector<1x128xf32> to vector<8x128xf32>
    %327 = arith.addf %325, %326 : vector<8x128xf32>
    %328 = arith.mulf %315, %327 : vector<8x128xf32>
    %329 = arith.addf %324, %328 : vector<8x128xf32>
    %330 = math.tanh %329 : vector<8x128xf32>
    %cst_103 = arith.constant 1.000000e+00 : f32
    %331 = vector.broadcast %cst_103 : f32 to vector<8x128xf32>
    %332 = arith.subf %331, %323 : vector<8x128xf32>
    %333 = arith.mulf %332, %330 : vector<8x128xf32>
    %334 = arith.mulf %323, %254 : vector<8x128xf32>
    %335 = arith.addf %333, %334 : vector<8x128xf32>
    %336 = arith.truncf %300 : vector<8x128xf32> to vector<8x128xbf16>
    %337 = arith.index_cast %c3_i32 : i32 to index
    %c0_104 = arith.constant 0 : index
    %c0_105 = arith.constant 0 : index
    %338 = vector.load %arg24[%337, %c0_104, %c0_105] : memref<8x8x128xbf16, #tpu.memory_space<vmem>>, vector<1x8x128xbf16>
    %339 = vector.shape_cast %338 : vector<1x8x128xbf16> to vector<8x128xbf16>
    %340 = vector.shape_cast %336 : vector<8x128xbf16> to vector<1x8x128xbf16>
    tpu.vector_store %arg24[%337, %c0_104, %c0_105], %340 {strides = array<i32>} : memref<8x8x128xbf16, #tpu.memory_space<vmem>>, vector<1x8x128xbf16>,
    %341 = arith.truncf %335 : vector<8x128xf32> to vector<8x128xbf16>
    %342 = arith.index_cast %265 : i32 to index
    %c0_106 = arith.constant 0 : index
    %c0_107 = arith.constant 0 : index
    %343 = vector.load %arg25[%342, %c0_106, %c0_107] : memref<8x8x128xbf16, #tpu.memory_space<vmem>>, vector<1x8x128xbf16>
    %344 = vector.shape_cast %343 : vector<1x8x128xbf16> to vector<8x128xbf16>
    %345 = vector.shape_cast %341 : vector<8x128xbf16> to vector<1x8x128xbf16>
    tpu.vector_store %arg25[%342, %c0_106, %c0_107], %345 {strides = array<i32>} : memref<8x8x128xbf16, #tpu.memory_space<vmem>>, vector<1x8x128xbf16>,
    %c4_i32 = arith.constant 4 : i32
    %c7_i32_108 = arith.constant 7 : i32
    %346 = arith.subi %c7_i32_108, %c4_i32 : i32
    %347 = arith.index_cast %c4_i32 : i32 to index
    %c0_109 = arith.constant 0 : index
    %c0_110 = arith.constant 0 : index
    %348 = vector.load %arg22[%347, %c0_109, %c0_110] : memref<8x8x384xbf16, #tpu.memory_space<vmem>>, vector<1x8x384xbf16>
    %349 = vector.shape_cast %348 : vector<1x8x384xbf16> to vector<8x384xbf16>
    %350 = arith.truncf %300 : vector<8x128xf32> to vector<8x128xbf16>
    %c0_111 = arith.constant 0 : index
    %c0_112 = arith.constant 0 : index
    %351 = vector.load %arg6[%c0_111, %c0_112] : memref<128x384xbf16, #tpu.memory_space<vmem>>, vector<128x384xbf16>
    %cst_113 = arith.constant dense<0.000000e+00> : vector<8x384xf32>
    %352 = tpu.matmul %350, %351, %cst_113 {dimension_numbers = #tpu.dot_dimension_numbers<[1], [0], [0], [1], [0, 0, 1, 1], [], []>} : vector<8x128xbf16>, vector<128x384xbf16>, vector<8x384xf32> -> vector<8x384xf32>
    %353 = arith.extf %349 : vector<8x384xbf16> to vector<8x384xf32>
    %354 = vector.extract_strided_slice %353 {offsets = [0, 0], sizes = [8, 128], strides = [1, 1]} : vector<8x384xf32> to vector<8x128xf32>
    %355 = vector.extract_strided_slice %352 {offsets = [0, 0], sizes = [8, 128], strides = [1, 1]} : vector<8x384xf32> to vector<8x128xf32>
    %356 = arith.addf %354, %355 : vector<8x128xf32>
    %357 = arith.negf %356 : vector<8x128xf32>
    %358 = math.exp %357 : vector<8x128xf32>
    %cst_114 = arith.constant 1.000000e+00 : f32
    %359 = vector.broadcast %cst_114 : f32 to vector<8x128xf32>
    %360 = arith.addf %359, %358 : vector<8x128xf32>
    %361 = arith.divf %359, %360 : vector<8x128xf32>
    %362 = vector.extract_strided_slice %353 {offsets = [0, 128], sizes = [8, 128], strides = [1, 1]} : vector<8x384xf32> to vector<8x128xf32>
    %363 = vector.extract_strided_slice %352 {offsets = [0, 128], sizes = [8, 128], strides = [1, 1]} : vector<8x384xf32> to vector<8x128xf32>
    %364 = arith.addf %362, %363 : vector<8x128xf32>
    %365 = arith.negf %364 : vector<8x128xf32>
    %366 = math.exp %365 : vector<8x128xf32>
    %cst_115 = arith.constant 1.000000e+00 : f32
    %367 = vector.broadcast %cst_115 : f32 to vector<8x128xf32>
    %368 = arith.addf %367, %366 : vector<8x128xf32>
    %369 = arith.divf %367, %368 : vector<8x128xf32>
    %370 = vector.extract_strided_slice %353 {offsets = [0, 256], sizes = [8, 128], strides = [1, 1]} : vector<8x384xf32> to vector<8x128xf32>
    %371 = vector.extract_strided_slice %352 {offsets = [0, 256], sizes = [8, 128], strides = [1, 1]} : vector<8x384xf32> to vector<8x128xf32>
    %372 = vector.broadcast %18 : vector<1x128xf32> to vector<8x128xf32>
    %373 = arith.addf %371, %372 : vector<8x128xf32>
    %374 = arith.mulf %361, %373 : vector<8x128xf32>
    %375 = arith.addf %370, %374 : vector<8x128xf32>
    %376 = math.tanh %375 : vector<8x128xf32>
    %cst_116 = arith.constant 1.000000e+00 : f32
    %377 = vector.broadcast %cst_116 : f32 to vector<8x128xf32>
    %378 = arith.subf %377, %369 : vector<8x128xf32>
    %379 = arith.mulf %378, %376 : vector<8x128xf32>
    %380 = arith.mulf %369, %300 : vector<8x128xf32>
    %381 = arith.addf %379, %380 : vector<8x128xf32>
    %382 = arith.index_cast %346 : i32 to index
    %c0_117 = arith.constant 0 : index
    %c0_118 = arith.constant 0 : index
    %383 = vector.load %arg23[%382, %c0_117, %c0_118] : memref<8x8x384xbf16, #tpu.memory_space<vmem>>, vector<1x8x384xbf16>
    %384 = vector.shape_cast %383 : vector<1x8x384xbf16> to vector<8x384xbf16>
    %385 = arith.truncf %335 : vector<8x128xf32> to vector<8x128xbf16>
    %c0_119 = arith.constant 0 : index
    %c0_120 = arith.constant 0 : index
    %386 = vector.load %arg10[%c0_119, %c0_120] : memref<128x384xbf16, #tpu.memory_space<vmem>>, vector<128x384xbf16>
    %cst_121 = arith.constant dense<0.000000e+00> : vector<8x384xf32>
    %387 = tpu.matmul %385, %386, %cst_121 {dimension_numbers = #tpu.dot_dimension_numbers<[1], [0], [0], [1], [0, 0, 1, 1], [], []>} : vector<8x128xbf16>, vector<128x384xbf16>, vector<8x384xf32> -> vector<8x384xf32>
    %388 = arith.extf %384 : vector<8x384xbf16> to vector<8x384xf32>
    %389 = vector.extract_strided_slice %388 {offsets = [0, 0], sizes = [8, 128], strides = [1, 1]} : vector<8x384xf32> to vector<8x128xf32>
    %390 = vector.extract_strided_slice %387 {offsets = [0, 0], sizes = [8, 128], strides = [1, 1]} : vector<8x384xf32> to vector<8x128xf32>
    %391 = arith.addf %389, %390 : vector<8x128xf32>
    %392 = arith.negf %391 : vector<8x128xf32>
    %393 = math.exp %392 : vector<8x128xf32>
    %cst_122 = arith.constant 1.000000e+00 : f32
    %394 = vector.broadcast %cst_122 : f32 to vector<8x128xf32>
    %395 = arith.addf %394, %393 : vector<8x128xf32>
    %396 = arith.divf %394, %395 : vector<8x128xf32>
    %397 = vector.extract_strided_slice %388 {offsets = [0, 128], sizes = [8, 128], strides = [1, 1]} : vector<8x384xf32> to vector<8x128xf32>
    %398 = vector.extract_strided_slice %387 {offsets = [0, 128], sizes = [8, 128], strides = [1, 1]} : vector<8x384xf32> to vector<8x128xf32>
    %399 = arith.addf %397, %398 : vector<8x128xf32>
    %400 = arith.negf %399 : vector<8x128xf32>
    %401 = math.exp %400 : vector<8x128xf32>
    %cst_123 = arith.constant 1.000000e+00 : f32
    %402 = vector.broadcast %cst_123 : f32 to vector<8x128xf32>
    %403 = arith.addf %402, %401 : vector<8x128xf32>
    %404 = arith.divf %402, %403 : vector<8x128xf32>
    %405 = vector.extract_strided_slice %388 {offsets = [0, 256], sizes = [8, 128], strides = [1, 1]} : vector<8x384xf32> to vector<8x128xf32>
    %406 = vector.extract_strided_slice %387 {offsets = [0, 256], sizes = [8, 128], strides = [1, 1]} : vector<8x384xf32> to vector<8x128xf32>
    %407 = vector.broadcast %19 : vector<1x128xf32> to vector<8x128xf32>
    %408 = arith.addf %406, %407 : vector<8x128xf32>
    %409 = arith.mulf %396, %408 : vector<8x128xf32>
    %410 = arith.addf %405, %409 : vector<8x128xf32>
    %411 = math.tanh %410 : vector<8x128xf32>
    %cst_124 = arith.constant 1.000000e+00 : f32
    %412 = vector.broadcast %cst_124 : f32 to vector<8x128xf32>
    %413 = arith.subf %412, %404 : vector<8x128xf32>
    %414 = arith.mulf %413, %411 : vector<8x128xf32>
    %415 = arith.mulf %404, %335 : vector<8x128xf32>
    %416 = arith.addf %414, %415 : vector<8x128xf32>
    %417 = arith.truncf %381 : vector<8x128xf32> to vector<8x128xbf16>
    %418 = arith.index_cast %c4_i32 : i32 to index
    %c0_125 = arith.constant 0 : index
    %c0_126 = arith.constant 0 : index
    %419 = vector.load %arg24[%418, %c0_125, %c0_126] : memref<8x8x128xbf16, #tpu.memory_space<vmem>>, vector<1x8x128xbf16>
    %420 = vector.shape_cast %419 : vector<1x8x128xbf16> to vector<8x128xbf16>
    %421 = vector.shape_cast %417 : vector<8x128xbf16> to vector<1x8x128xbf16>
    tpu.vector_store %arg24[%418, %c0_125, %c0_126], %421 {strides = array<i32>} : memref<8x8x128xbf16, #tpu.memory_space<vmem>>, vector<1x8x128xbf16>,
    %422 = arith.truncf %416 : vector<8x128xf32> to vector<8x128xbf16>
    %423 = arith.index_cast %346 : i32 to index
    %c0_127 = arith.constant 0 : index
    %c0_128 = arith.constant 0 : index
    %424 = vector.load %arg25[%423, %c0_127, %c0_128] : memref<8x8x128xbf16, #tpu.memory_space<vmem>>, vector<1x8x128xbf16>
    %425 = vector.shape_cast %424 : vector<1x8x128xbf16> to vector<8x128xbf16>
    %426 = vector.shape_cast %422 : vector<8x128xbf16> to vector<1x8x128xbf16>
    tpu.vector_store %arg25[%423, %c0_127, %c0_128], %426 {strides = array<i32>} : memref<8x8x128xbf16, #tpu.memory_space<vmem>>, vector<1x8x128xbf16>,
    %c5_i32 = arith.constant 5 : i32
    %c7_i32_129 = arith.constant 7 : i32
    %427 = arith.subi %c7_i32_129, %c5_i32 : i32
    %428 = arith.index_cast %c5_i32 : i32 to index
    %c0_130 = arith.constant 0 : index
    %c0_131 = arith.constant 0 : index
    %429 = vector.load %arg22[%428, %c0_130, %c0_131] : memref<8x8x384xbf16, #tpu.memory_space<vmem>>, vector<1x8x384xbf16>
    %430 = vector.shape_cast %429 : vector<1x8x384xbf16> to vector<8x384xbf16>
    %431 = arith.truncf %381 : vector<8x128xf32> to vector<8x128xbf16>
    %c0_132 = arith.constant 0 : index
    %c0_133 = arith.constant 0 : index
    %432 = vector.load %arg6[%c0_132, %c0_133] : memref<128x384xbf16, #tpu.memory_space<vmem>>, vector<128x384xbf16>
    %cst_134 = arith.constant dense<0.000000e+00> : vector<8x384xf32>
    %433 = tpu.matmul %431, %432, %cst_134 {dimension_numbers = #tpu.dot_dimension_numbers<[1], [0], [0], [1], [0, 0, 1, 1], [], []>} : vector<8x128xbf16>, vector<128x384xbf16>, vector<8x384xf32> -> vector<8x384xf32>
    %434 = arith.extf %430 : vector<8x384xbf16> to vector<8x384xf32>
    %435 = vector.extract_strided_slice %434 {offsets = [0, 0], sizes = [8, 128], strides = [1, 1]} : vector<8x384xf32> to vector<8x128xf32>
    %436 = vector.extract_strided_slice %433 {offsets = [0, 0], sizes = [8, 128], strides = [1, 1]} : vector<8x384xf32> to vector<8x128xf32>
    %437 = arith.addf %435, %436 : vector<8x128xf32>
    %438 = arith.negf %437 : vector<8x128xf32>
    %439 = math.exp %438 : vector<8x128xf32>
    %cst_135 = arith.constant 1.000000e+00 : f32
    %440 = vector.broadcast %cst_135 : f32 to vector<8x128xf32>
    %441 = arith.addf %440, %439 : vector<8x128xf32>
    %442 = arith.divf %440, %441 : vector<8x128xf32>
    %443 = vector.extract_strided_slice %434 {offsets = [0, 128], sizes = [8, 128], strides = [1, 1]} : vector<8x384xf32> to vector<8x128xf32>
    %444 = vector.extract_strided_slice %433 {offsets = [0, 128], sizes = [8, 128], strides = [1, 1]} : vector<8x384xf32> to vector<8x128xf32>
    %445 = arith.addf %443, %444 : vector<8x128xf32>
    %446 = arith.negf %445 : vector<8x128xf32>
    %447 = math.exp %446 : vector<8x128xf32>
    %cst_136 = arith.constant 1.000000e+00 : f32
    %448 = vector.broadcast %cst_136 : f32 to vector<8x128xf32>
    %449 = arith.addf %448, %447 : vector<8x128xf32>
    %450 = arith.divf %448, %449 : vector<8x128xf32>
    %451 = vector.extract_strided_slice %434 {offsets = [0, 256], sizes = [8, 128], strides = [1, 1]} : vector<8x384xf32> to vector<8x128xf32>
    %452 = vector.extract_strided_slice %433 {offsets = [0, 256], sizes = [8, 128], strides = [1, 1]} : vector<8x384xf32> to vector<8x128xf32>
    %453 = vector.broadcast %18 : vector<1x128xf32> to vector<8x128xf32>
    %454 = arith.addf %452, %453 : vector<8x128xf32>
    %455 = arith.mulf %442, %454 : vector<8x128xf32>
    %456 = arith.addf %451, %455 : vector<8x128xf32>
    %457 = math.tanh %456 : vector<8x128xf32>
    %cst_137 = arith.constant 1.000000e+00 : f32
    %458 = vector.broadcast %cst_137 : f32 to vector<8x128xf32>
    %459 = arith.subf %458, %450 : vector<8x128xf32>
    %460 = arith.mulf %459, %457 : vector<8x128xf32>
    %461 = arith.mulf %450, %381 : vector<8x128xf32>
    %462 = arith.addf %460, %461 : vector<8x128xf32>
    %463 = arith.index_cast %427 : i32 to index
    %c0_138 = arith.constant 0 : index
    %c0_139 = arith.constant 0 : index
    %464 = vector.load %arg23[%463, %c0_138, %c0_139] : memref<8x8x384xbf16, #tpu.memory_space<vmem>>, vector<1x8x384xbf16>
    %465 = vector.shape_cast %464 : vector<1x8x384xbf16> to vector<8x384xbf16>
    %466 = arith.truncf %416 : vector<8x128xf32> to vector<8x128xbf16>
    %c0_140 = arith.constant 0 : index
    %c0_141 = arith.constant 0 : index
    %467 = vector.load %arg10[%c0_140, %c0_141] : memref<128x384xbf16, #tpu.memory_space<vmem>>, vector<128x384xbf16>
    %cst_142 = arith.constant dense<0.000000e+00> : vector<8x384xf32>
    %468 = tpu.matmul %466, %467, %cst_142 {dimension_numbers = #tpu.dot_dimension_numbers<[1], [0], [0], [1], [0, 0, 1, 1], [], []>} : vector<8x128xbf16>, vector<128x384xbf16>, vector<8x384xf32> -> vector<8x384xf32>
    %469 = arith.extf %465 : vector<8x384xbf16> to vector<8x384xf32>
    %470 = vector.extract_strided_slice %469 {offsets = [0, 0], sizes = [8, 128], strides = [1, 1]} : vector<8x384xf32> to vector<8x128xf32>
    %471 = vector.extract_strided_slice %468 {offsets = [0, 0], sizes = [8, 128], strides = [1, 1]} : vector<8x384xf32> to vector<8x128xf32>
    %472 = arith.addf %470, %471 : vector<8x128xf32>
    %473 = arith.negf %472 : vector<8x128xf32>
    %474 = math.exp %473 : vector<8x128xf32>
    %cst_143 = arith.constant 1.000000e+00 : f32
    %475 = vector.broadcast %cst_143 : f32 to vector<8x128xf32>
    %476 = arith.addf %475, %474 : vector<8x128xf32>
    %477 = arith.divf %475, %476 : vector<8x128xf32>
    %478 = vector.extract_strided_slice %469 {offsets = [0, 128], sizes = [8, 128], strides = [1, 1]} : vector<8x384xf32> to vector<8x128xf32>
    %479 = vector.extract_strided_slice %468 {offsets = [0, 128], sizes = [8, 128], strides = [1, 1]} : vector<8x384xf32> to vector<8x128xf32>
    %480 = arith.addf %478, %479 : vector<8x128xf32>
    %481 = arith.negf %480 : vector<8x128xf32>
    %482 = math.exp %481 : vector<8x128xf32>
    %cst_144 = arith.constant 1.000000e+00 : f32
    %483 = vector.broadcast %cst_144 : f32 to vector<8x128xf32>
    %484 = arith.addf %483, %482 : vector<8x128xf32>
    %485 = arith.divf %483, %484 : vector<8x128xf32>
    %486 = vector.extract_strided_slice %469 {offsets = [0, 256], sizes = [8, 128], strides = [1, 1]} : vector<8x384xf32> to vector<8x128xf32>
    %487 = vector.extract_strided_slice %468 {offsets = [0, 256], sizes = [8, 128], strides = [1, 1]} : vector<8x384xf32> to vector<8x128xf32>
    %488 = vector.broadcast %19 : vector<1x128xf32> to vector<8x128xf32>
    %489 = arith.addf %487, %488 : vector<8x128xf32>
    %490 = arith.mulf %477, %489 : vector<8x128xf32>
    %491 = arith.addf %486, %490 : vector<8x128xf32>
    %492 = math.tanh %491 : vector<8x128xf32>
    %cst_145 = arith.constant 1.000000e+00 : f32
    %493 = vector.broadcast %cst_145 : f32 to vector<8x128xf32>
    %494 = arith.subf %493, %485 : vector<8x128xf32>
    %495 = arith.mulf %494, %492 : vector<8x128xf32>
    %496 = arith.mulf %485, %416 : vector<8x128xf32>
    %497 = arith.addf %495, %496 : vector<8x128xf32>
    %498 = arith.truncf %462 : vector<8x128xf32> to vector<8x128xbf16>
    %499 = arith.index_cast %c5_i32 : i32 to index
    %c0_146 = arith.constant 0 : index
    %c0_147 = arith.constant 0 : index
    %500 = vector.load %arg24[%499, %c0_146, %c0_147] : memref<8x8x128xbf16, #tpu.memory_space<vmem>>, vector<1x8x128xbf16>
    %501 = vector.shape_cast %500 : vector<1x8x128xbf16> to vector<8x128xbf16>
    %502 = vector.shape_cast %498 : vector<8x128xbf16> to vector<1x8x128xbf16>
    tpu.vector_store %arg24[%499, %c0_146, %c0_147], %502 {strides = array<i32>} : memref<8x8x128xbf16, #tpu.memory_space<vmem>>, vector<1x8x128xbf16>,
    %503 = arith.truncf %497 : vector<8x128xf32> to vector<8x128xbf16>
    %504 = arith.index_cast %427 : i32 to index
    %c0_148 = arith.constant 0 : index
    %c0_149 = arith.constant 0 : index
    %505 = vector.load %arg25[%504, %c0_148, %c0_149] : memref<8x8x128xbf16, #tpu.memory_space<vmem>>, vector<1x8x128xbf16>
    %506 = vector.shape_cast %505 : vector<1x8x128xbf16> to vector<8x128xbf16>
    %507 = vector.shape_cast %503 : vector<8x128xbf16> to vector<1x8x128xbf16>
    tpu.vector_store %arg25[%504, %c0_148, %c0_149], %507 {strides = array<i32>} : memref<8x8x128xbf16, #tpu.memory_space<vmem>>, vector<1x8x128xbf16>,
    %c6_i32 = arith.constant 6 : i32
    %c7_i32_150 = arith.constant 7 : i32
    %508 = arith.subi %c7_i32_150, %c6_i32 : i32
    %509 = arith.index_cast %c6_i32 : i32 to index
    %c0_151 = arith.constant 0 : index
    %c0_152 = arith.constant 0 : index
    %510 = vector.load %arg22[%509, %c0_151, %c0_152] : memref<8x8x384xbf16, #tpu.memory_space<vmem>>, vector<1x8x384xbf16>
    %511 = vector.shape_cast %510 : vector<1x8x384xbf16> to vector<8x384xbf16>
    %512 = arith.truncf %462 : vector<8x128xf32> to vector<8x128xbf16>
    %c0_153 = arith.constant 0 : index
    %c0_154 = arith.constant 0 : index
    %513 = vector.load %arg6[%c0_153, %c0_154] : memref<128x384xbf16, #tpu.memory_space<vmem>>, vector<128x384xbf16>
    %cst_155 = arith.constant dense<0.000000e+00> : vector<8x384xf32>
    %514 = tpu.matmul %512, %513, %cst_155 {dimension_numbers = #tpu.dot_dimension_numbers<[1], [0], [0], [1], [0, 0, 1, 1], [], []>} : vector<8x128xbf16>, vector<128x384xbf16>, vector<8x384xf32> -> vector<8x384xf32>
    %515 = arith.extf %511 : vector<8x384xbf16> to vector<8x384xf32>
    %516 = vector.extract_strided_slice %515 {offsets = [0, 0], sizes = [8, 128], strides = [1, 1]} : vector<8x384xf32> to vector<8x128xf32>
    %517 = vector.extract_strided_slice %514 {offsets = [0, 0], sizes = [8, 128], strides = [1, 1]} : vector<8x384xf32> to vector<8x128xf32>
    %518 = arith.addf %516, %517 : vector<8x128xf32>
    %519 = arith.negf %518 : vector<8x128xf32>
    %520 = math.exp %519 : vector<8x128xf32>
    %cst_156 = arith.constant 1.000000e+00 : f32
    %521 = vector.broadcast %cst_156 : f32 to vector<8x128xf32>
    %522 = arith.addf %521, %520 : vector<8x128xf32>
    %523 = arith.divf %521, %522 : vector<8x128xf32>
    %524 = vector.extract_strided_slice %515 {offsets = [0, 128], sizes = [8, 128], strides = [1, 1]} : vector<8x384xf32> to vector<8x128xf32>
    %525 = vector.extract_strided_slice %514 {offsets = [0, 128], sizes = [8, 128], strides = [1, 1]} : vector<8x384xf32> to vector<8x128xf32>
    %526 = arith.addf %524, %525 : vector<8x128xf32>
    %527 = arith.negf %526 : vector<8x128xf32>
    %528 = math.exp %527 : vector<8x128xf32>
    %cst_157 = arith.constant 1.000000e+00 : f32
    %529 = vector.broadcast %cst_157 : f32 to vector<8x128xf32>
    %530 = arith.addf %529, %528 : vector<8x128xf32>
    %531 = arith.divf %529, %530 : vector<8x128xf32>
    %532 = vector.extract_strided_slice %515 {offsets = [0, 256], sizes = [8, 128], strides = [1, 1]} : vector<8x384xf32> to vector<8x128xf32>
    %533 = vector.extract_strided_slice %514 {offsets = [0, 256], sizes = [8, 128], strides = [1, 1]} : vector<8x384xf32> to vector<8x128xf32>
    %534 = vector.broadcast %18 : vector<1x128xf32> to vector<8x128xf32>
    %535 = arith.addf %533, %534 : vector<8x128xf32>
    %536 = arith.mulf %523, %535 : vector<8x128xf32>
    %537 = arith.addf %532, %536 : vector<8x128xf32>
    %538 = math.tanh %537 : vector<8x128xf32>
    %cst_158 = arith.constant 1.000000e+00 : f32
    %539 = vector.broadcast %cst_158 : f32 to vector<8x128xf32>
    %540 = arith.subf %539, %531 : vector<8x128xf32>
    %541 = arith.mulf %540, %538 : vector<8x128xf32>
    %542 = arith.mulf %531, %462 : vector<8x128xf32>
    %543 = arith.addf %541, %542 : vector<8x128xf32>
    %544 = arith.index_cast %508 : i32 to index
    %c0_159 = arith.constant 0 : index
    %c0_160 = arith.constant 0 : index
    %545 = vector.load %arg23[%544, %c0_159, %c0_160] : memref<8x8x384xbf16, #tpu.memory_space<vmem>>, vector<1x8x384xbf16>
    %546 = vector.shape_cast %545 : vector<1x8x384xbf16> to vector<8x384xbf16>
    %547 = arith.truncf %497 : vector<8x128xf32> to vector<8x128xbf16>
    %c0_161 = arith.constant 0 : index
    %c0_162 = arith.constant 0 : index
    %548 = vector.load %arg10[%c0_161, %c0_162] : memref<128x384xbf16, #tpu.memory_space<vmem>>, vector<128x384xbf16>
    %cst_163 = arith.constant dense<0.000000e+00> : vector<8x384xf32>
    %549 = tpu.matmul %547, %548, %cst_163 {dimension_numbers = #tpu.dot_dimension_numbers<[1], [0], [0], [1], [0, 0, 1, 1], [], []>} : vector<8x128xbf16>, vector<128x384xbf16>, vector<8x384xf32> -> vector<8x384xf32>
    %550 = arith.extf %546 : vector<8x384xbf16> to vector<8x384xf32>
    %551 = vector.extract_strided_slice %550 {offsets = [0, 0], sizes = [8, 128], strides = [1, 1]} : vector<8x384xf32> to vector<8x128xf32>
    %552 = vector.extract_strided_slice %549 {offsets = [0, 0], sizes = [8, 128], strides = [1, 1]} : vector<8x384xf32> to vector<8x128xf32>
    %553 = arith.addf %551, %552 : vector<8x128xf32>
    %554 = arith.negf %553 : vector<8x128xf32>
    %555 = math.exp %554 : vector<8x128xf32>
    %cst_164 = arith.constant 1.000000e+00 : f32
    %556 = vector.broadcast %cst_164 : f32 to vector<8x128xf32>
    %557 = arith.addf %556, %555 : vector<8x128xf32>
    %558 = arith.divf %556, %557 : vector<8x128xf32>
    %559 = vector.extract_strided_slice %550 {offsets = [0, 128], sizes = [8, 128], strides = [1, 1]} : vector<8x384xf32> to vector<8x128xf32>
    %560 = vector.extract_strided_slice %549 {offsets = [0, 128], sizes = [8, 128], strides = [1, 1]} : vector<8x384xf32> to vector<8x128xf32>
    %561 = arith.addf %559, %560 : vector<8x128xf32>
    %562 = arith.negf %561 : vector<8x128xf32>
    %563 = math.exp %562 : vector<8x128xf32>
    %cst_165 = arith.constant 1.000000e+00 : f32
    %564 = vector.broadcast %cst_165 : f32 to vector<8x128xf32>
    %565 = arith.addf %564, %563 : vector<8x128xf32>
    %566 = arith.divf %564, %565 : vector<8x128xf32>
    %567 = vector.extract_strided_slice %550 {offsets = [0, 256], sizes = [8, 128], strides = [1, 1]} : vector<8x384xf32> to vector<8x128xf32>
    %568 = vector.extract_strided_slice %549 {offsets = [0, 256], sizes = [8, 128], strides = [1, 1]} : vector<8x384xf32> to vector<8x128xf32>
    %569 = vector.broadcast %19 : vector<1x128xf32> to vector<8x128xf32>
    %570 = arith.addf %568, %569 : vector<8x128xf32>
    %571 = arith.mulf %558, %570 : vector<8x128xf32>
    %572 = arith.addf %567, %571 : vector<8x128xf32>
    %573 = math.tanh %572 : vector<8x128xf32>
    %cst_166 = arith.constant 1.000000e+00 : f32
    %574 = vector.broadcast %cst_166 : f32 to vector<8x128xf32>
    %575 = arith.subf %574, %566 : vector<8x128xf32>
    %576 = arith.mulf %575, %573 : vector<8x128xf32>
    %577 = arith.mulf %566, %497 : vector<8x128xf32>
    %578 = arith.addf %576, %577 : vector<8x128xf32>
    %579 = arith.truncf %543 : vector<8x128xf32> to vector<8x128xbf16>
    %580 = arith.index_cast %c6_i32 : i32 to index
    %c0_167 = arith.constant 0 : index
    %c0_168 = arith.constant 0 : index
    %581 = vector.load %arg24[%580, %c0_167, %c0_168] : memref<8x8x128xbf16, #tpu.memory_space<vmem>>, vector<1x8x128xbf16>
    %582 = vector.shape_cast %581 : vector<1x8x128xbf16> to vector<8x128xbf16>
    %583 = vector.shape_cast %579 : vector<8x128xbf16> to vector<1x8x128xbf16>
    tpu.vector_store %arg24[%580, %c0_167, %c0_168], %583 {strides = array<i32>} : memref<8x8x128xbf16, #tpu.memory_space<vmem>>, vector<1x8x128xbf16>,
    %584 = arith.truncf %578 : vector<8x128xf32> to vector<8x128xbf16>
    %585 = arith.index_cast %508 : i32 to index
    %c0_169 = arith.constant 0 : index
    %c0_170 = arith.constant 0 : index
    %586 = vector.load %arg25[%585, %c0_169, %c0_170] : memref<8x8x128xbf16, #tpu.memory_space<vmem>>, vector<1x8x128xbf16>
    %587 = vector.shape_cast %586 : vector<1x8x128xbf16> to vector<8x128xbf16>
    %588 = vector.shape_cast %584 : vector<8x128xbf16> to vector<1x8x128xbf16>
    tpu.vector_store %arg25[%585, %c0_169, %c0_170], %588 {strides = array<i32>} : memref<8x8x128xbf16, #tpu.memory_space<vmem>>, vector<1x8x128xbf16>,
    %c7_i32_171 = arith.constant 7 : i32
    %c7_i32_172 = arith.constant 7 : i32
    %589 = arith.subi %c7_i32_172, %c7_i32_171 : i32
    %590 = arith.index_cast %c7_i32_171 : i32 to index
    %c0_173 = arith.constant 0 : index
    %c0_174 = arith.constant 0 : index
    %591 = vector.load %arg22[%590, %c0_173, %c0_174] : memref<8x8x384xbf16, #tpu.memory_space<vmem>>, vector<1x8x384xbf16>
    %592 = vector.shape_cast %591 : vector<1x8x384xbf16> to vector<8x384xbf16>
    %593 = arith.truncf %543 : vector<8x128xf32> to vector<8x128xbf16>
    %c0_175 = arith.constant 0 : index
    %c0_176 = arith.constant 0 : index
    %594 = vector.load %arg6[%c0_175, %c0_176] : memref<128x384xbf16, #tpu.memory_space<vmem>>, vector<128x384xbf16>
    %cst_177 = arith.constant dense<0.000000e+00> : vector<8x384xf32>
    %595 = tpu.matmul %593, %594, %cst_177 {dimension_numbers = #tpu.dot_dimension_numbers<[1], [0], [0], [1], [0, 0, 1, 1], [], []>} : vector<8x128xbf16>, vector<128x384xbf16>, vector<8x384xf32> -> vector<8x384xf32>
    %596 = arith.extf %592 : vector<8x384xbf16> to vector<8x384xf32>
    %597 = vector.extract_strided_slice %596 {offsets = [0, 0], sizes = [8, 128], strides = [1, 1]} : vector<8x384xf32> to vector<8x128xf32>
    %598 = vector.extract_strided_slice %595 {offsets = [0, 0], sizes = [8, 128], strides = [1, 1]} : vector<8x384xf32> to vector<8x128xf32>
    %599 = arith.addf %597, %598 : vector<8x128xf32>
    %600 = arith.negf %599 : vector<8x128xf32>
    %601 = math.exp %600 : vector<8x128xf32>
    %cst_178 = arith.constant 1.000000e+00 : f32
    %602 = vector.broadcast %cst_178 : f32 to vector<8x128xf32>
    %603 = arith.addf %602, %601 : vector<8x128xf32>
    %604 = arith.divf %602, %603 : vector<8x128xf32>
    %605 = vector.extract_strided_slice %596 {offsets = [0, 128], sizes = [8, 128], strides = [1, 1]} : vector<8x384xf32> to vector<8x128xf32>
    %606 = vector.extract_strided_slice %595 {offsets = [0, 128], sizes = [8, 128], strides = [1, 1]} : vector<8x384xf32> to vector<8x128xf32>
    %607 = arith.addf %605, %606 : vector<8x128xf32>
    %608 = arith.negf %607 : vector<8x128xf32>
    %609 = math.exp %608 : vector<8x128xf32>
    %cst_179 = arith.constant 1.000000e+00 : f32
    %610 = vector.broadcast %cst_179 : f32 to vector<8x128xf32>
    %611 = arith.addf %610, %609 : vector<8x128xf32>
    %612 = arith.divf %610, %611 : vector<8x128xf32>
    %613 = vector.extract_strided_slice %596 {offsets = [0, 256], sizes = [8, 128], strides = [1, 1]} : vector<8x384xf32> to vector<8x128xf32>
    %614 = vector.extract_strided_slice %595 {offsets = [0, 256], sizes = [8, 128], strides = [1, 1]} : vector<8x384xf32> to vector<8x128xf32>
    %615 = vector.broadcast %18 : vector<1x128xf32> to vector<8x128xf32>
    %616 = arith.addf %614, %615 : vector<8x128xf32>
    %617 = arith.mulf %604, %616 : vector<8x128xf32>
    %618 = arith.addf %613, %617 : vector<8x128xf32>
    %619 = math.tanh %618 : vector<8x128xf32>
    %cst_180 = arith.constant 1.000000e+00 : f32
    %620 = vector.broadcast %cst_180 : f32 to vector<8x128xf32>
    %621 = arith.subf %620, %612 : vector<8x128xf32>
    %622 = arith.mulf %621, %619 : vector<8x128xf32>
    %623 = arith.mulf %612, %543 : vector<8x128xf32>
    %624 = arith.addf %622, %623 : vector<8x128xf32>
    %625 = arith.index_cast %589 : i32 to index
    %c0_181 = arith.constant 0 : index
    %c0_182 = arith.constant 0 : index
    %626 = vector.load %arg23[%625, %c0_181, %c0_182] : memref<8x8x384xbf16, #tpu.memory_space<vmem>>, vector<1x8x384xbf16>
    %627 = vector.shape_cast %626 : vector<1x8x384xbf16> to vector<8x384xbf16>
    %628 = arith.truncf %578 : vector<8x128xf32> to vector<8x128xbf16>
    %c0_183 = arith.constant 0 : index
    %c0_184 = arith.constant 0 : index
    %629 = vector.load %arg10[%c0_183, %c0_184] : memref<128x384xbf16, #tpu.memory_space<vmem>>, vector<128x384xbf16>
    %cst_185 = arith.constant dense<0.000000e+00> : vector<8x384xf32>
    %630 = tpu.matmul %628, %629, %cst_185 {dimension_numbers = #tpu.dot_dimension_numbers<[1], [0], [0], [1], [0, 0, 1, 1], [], []>} : vector<8x128xbf16>, vector<128x384xbf16>, vector<8x384xf32> -> vector<8x384xf32>
    %631 = arith.extf %627 : vector<8x384xbf16> to vector<8x384xf32>
    %632 = vector.extract_strided_slice %631 {offsets = [0, 0], sizes = [8, 128], strides = [1, 1]} : vector<8x384xf32> to vector<8x128xf32>
    %633 = vector.extract_strided_slice %630 {offsets = [0, 0], sizes = [8, 128], strides = [1, 1]} : vector<8x384xf32> to vector<8x128xf32>
    %634 = arith.addf %632, %633 : vector<8x128xf32>
    %635 = arith.negf %634 : vector<8x128xf32>
    %636 = math.exp %635 : vector<8x128xf32>
    %cst_186 = arith.constant 1.000000e+00 : f32
    %637 = vector.broadcast %cst_186 : f32 to vector<8x128xf32>
    %638 = arith.addf %637, %636 : vector<8x128xf32>
    %639 = arith.divf %637, %638 : vector<8x128xf32>
    %640 = vector.extract_strided_slice %631 {offsets = [0, 128], sizes = [8, 128], strides = [1, 1]} : vector<8x384xf32> to vector<8x128xf32>
    %641 = vector.extract_strided_slice %630 {offsets = [0, 128], sizes = [8, 128], strides = [1, 1]} : vector<8x384xf32> to vector<8x128xf32>
    %642 = arith.addf %640, %641 : vector<8x128xf32>
    %643 = arith.negf %642 : vector<8x128xf32>
    %644 = math.exp %643 : vector<8x128xf32>
    %cst_187 = arith.constant 1.000000e+00 : f32
    %645 = vector.broadcast %cst_187 : f32 to vector<8x128xf32>
    %646 = arith.addf %645, %644 : vector<8x128xf32>
    %647 = arith.divf %645, %646 : vector<8x128xf32>
    %648 = vector.extract_strided_slice %631 {offsets = [0, 256], sizes = [8, 128], strides = [1, 1]} : vector<8x384xf32> to vector<8x128xf32>
    %649 = vector.extract_strided_slice %630 {offsets = [0, 256], sizes = [8, 128], strides = [1, 1]} : vector<8x384xf32> to vector<8x128xf32>
    %650 = vector.broadcast %19 : vector<1x128xf32> to vector<8x128xf32>
    %651 = arith.addf %649, %650 : vector<8x128xf32>
    %652 = arith.mulf %639, %651 : vector<8x128xf32>
    %653 = arith.addf %648, %652 : vector<8x128xf32>
    %654 = math.tanh %653 : vector<8x128xf32>
    %cst_188 = arith.constant 1.000000e+00 : f32
    %655 = vector.broadcast %cst_188 : f32 to vector<8x128xf32>
    %656 = arith.subf %655, %647 : vector<8x128xf32>
    %657 = arith.mulf %656, %654 : vector<8x128xf32>
    %658 = arith.mulf %647, %578 : vector<8x128xf32>
    %659 = arith.addf %657, %658 : vector<8x128xf32>
    %660 = arith.truncf %624 : vector<8x128xf32> to vector<8x128xbf16>
    %661 = arith.index_cast %c7_i32_171 : i32 to index
    %c0_189 = arith.constant 0 : index
    %c0_190 = arith.constant 0 : index
    %662 = vector.load %arg24[%661, %c0_189, %c0_190] : memref<8x8x128xbf16, #tpu.memory_space<vmem>>, vector<1x8x128xbf16>
    %663 = vector.shape_cast %662 : vector<1x8x128xbf16> to vector<8x128xbf16>
    %664 = vector.shape_cast %660 : vector<8x128xbf16> to vector<1x8x128xbf16>
    tpu.vector_store %arg24[%661, %c0_189, %c0_190], %664 {strides = array<i32>} : memref<8x8x128xbf16, #tpu.memory_space<vmem>>, vector<1x8x128xbf16>,
    %665 = arith.truncf %659 : vector<8x128xf32> to vector<8x128xbf16>
    %666 = arith.index_cast %589 : i32 to index
    %c0_191 = arith.constant 0 : index
    %c0_192 = arith.constant 0 : index
    %667 = vector.load %arg25[%666, %c0_191, %c0_192] : memref<8x8x128xbf16, #tpu.memory_space<vmem>>, vector<1x8x128xbf16>
    %668 = vector.shape_cast %667 : vector<1x8x128xbf16> to vector<8x128xbf16>
    %669 = vector.shape_cast %665 : vector<8x128xbf16> to vector<1x8x128xbf16>
    tpu.vector_store %arg25[%666, %c0_191, %c0_192], %669 {strides = array<i32>} : memref<8x8x128xbf16, #tpu.memory_space<vmem>>, vector<1x8x128xbf16>,
    %c8_i32 = arith.constant 8 : i32
    %c0_193 = arith.constant 0 : index
    %c0_194 = arith.constant 0 : index
    %670 = vector.load %arg19[%c0_193, %c0_194] : memref<8x128xf32, #tpu.memory_space<vmem>>, vector<8x128xf32>
    tpu.vector_store %arg19[%c0_193, %c0_194], %624 {strides = array<i32>} : memref<8x128xf32, #tpu.memory_space<vmem>>, vector<8x128xf32>,
    %c0_195 = arith.constant 0 : index
    %c0_196 = arith.constant 0 : index
    %671 = vector.load %arg20[%c0_195, %c0_196] : memref<8x128xf32, #tpu.memory_space<vmem>>, vector<8x128xf32>
    tpu.vector_store %arg20[%c0_195, %c0_196], %659 {strides = array<i32>} : memref<8x128xf32, #tpu.memory_space<vmem>>, vector<8x128xf32>,
    %c0_197 = arith.constant 0 : index
    %c0_198 = arith.constant 0 : index
    %c0_199 = arith.constant 0 : index
    %672 = vector.load %arg24[%c0_197, %c0_198, %c0_199] : memref<8x8x128xbf16, #tpu.memory_space<vmem>>, vector<8x8x128xbf16>
    %673 = vector.shape_cast %672 : vector<8x8x128xbf16> to vector<64x128xbf16>
    %c0_200 = arith.constant 0 : index
    %c0_201 = arith.constant 0 : index
    %c0_202 = arith.constant 0 : index
    %674 = vector.load %arg25[%c0_200, %c0_201, %c0_202] : memref<8x8x128xbf16, #tpu.memory_space<vmem>>, vector<8x8x128xbf16>
    %675 = vector.shape_cast %674 : vector<8x8x128xbf16> to vector<64x128xbf16>
    %c0_203 = arith.constant 0 : index
    %c0_204 = arith.constant 0 : index
    %c0_205 = arith.constant 0 : index
    %676 = vector.load %arg13[%c0_203, %c0_204, %c0_205] : memref<2x128x128xbf16, #tpu.memory_space<vmem>>, vector<1x128x128xbf16>
    %677 = vector.shape_cast %676 : vector<1x128x128xbf16> to vector<128x128xbf16>
    %cst_206 = arith.constant dense<0.000000e+00> : vector<64x128xf32>
    %678 = tpu.matmul %673, %677, %cst_206 {dimension_numbers = #tpu.dot_dimension_numbers<[1], [0], [0], [1], [0, 0, 1, 1], [], []>} : vector<64x128xbf16>, vector<128x128xbf16>, vector<64x128xf32> -> vector<64x128xf32>
    %c1 = arith.constant 1 : index
    %c0_207 = arith.constant 0 : index
    %c0_208 = arith.constant 0 : index
    %679 = vector.load %arg13[%c1, %c0_207, %c0_208] : memref<2x128x128xbf16, #tpu.memory_space<vmem>>, vector<1x128x128xbf16>
    %680 = vector.shape_cast %679 : vector<1x128x128xbf16> to vector<128x128xbf16>
    %cst_209 = arith.constant dense<0.000000e+00> : vector<64x128xf32>
    %681 = tpu.matmul %675, %680, %cst_209 {dimension_numbers = #tpu.dot_dimension_numbers<[1], [0], [0], [1], [0, 0, 1, 1], [], []>} : vector<64x128xbf16>, vector<128x128xbf16>, vector<64x128xf32> -> vector<64x128xf32>
    %682 = arith.addf %678, %681 : vector<64x128xf32>
    %c0_210 = arith.constant 0 : index
    %c0_211 = arith.constant 0 : index
    %683 = vector.load %arg14[%c0_210, %c0_211] : memref<1x128xf32, #tpu.memory_space<vmem>>, vector<1x128xf32>
    %684 = vector.broadcast %683 : vector<1x128xf32> to vector<64x128xf32>
    %685 = arith.addf %682, %684 : vector<64x128xf32>
    %cst_212 = arith.constant 0.000000e+00 : f32
    %686 = vector.broadcast %cst_212 : f32 to vector<64x128xf32>
    %687 = arith.maximumf %685, %686 : vector<64x128xf32>
    %688 = arith.truncf %687 : vector<64x128xf32> to vector<64x128xbf16>
    %c0_213 = arith.constant 0 : index
    %c0_214 = arith.constant 0 : index
    %689 = vector.load %arg15[%c0_213, %c0_214] : memref<128x128xbf16, #tpu.memory_space<vmem>>, vector<128x128xbf16>
    %cst_215 = arith.constant dense<0.000000e+00> : vector<64x128xf32>
    %690 = tpu.matmul %688, %689, %cst_215 {dimension_numbers = #tpu.dot_dimension_numbers<[1], [0], [0], [1], [0, 0, 1, 1], [], []>} : vector<64x128xbf16>, vector<128x128xbf16>, vector<64x128xf32> -> vector<64x128xf32>
    %c0_216 = arith.constant 0 : index
    %c0_217 = arith.constant 0 : index
    %691 = vector.load %arg16[%c0_216, %c0_217] : memref<1x128xf32, #tpu.memory_space<vmem>>, vector<1x128xf32>
    %692 = vector.broadcast %691 : vector<1x128xf32> to vector<64x128xf32>
    %693 = arith.addf %690, %692 : vector<64x128xf32>
    %694 = math.tanh %693 : vector<64x128xf32>
    %695 = vector.shape_cast %694 : vector<64x128xf32> to vector<8x8x128xf32>
    %c0_218 = arith.constant 0 : index
    %c0_219 = arith.constant 0 : index
    %696 = vector.load %arg17[%c0_218, %c0_219] : memref<1x128xf32, #tpu.memory_space<vmem>>, vector<1x128xf32>
    %697 = vector.shape_cast %696 : vector<1x128xf32> to vector<1x1x128xf32>
    %698 = vector.broadcast %697 : vector<1x1x128xf32> to vector<8x8x128xf32>
    %699 = arith.mulf %695, %698 : vector<8x8x128xf32>
    %cst_220 = arith.constant dense<0.000000e+00> : vector<8x8xf32>
    %700 = vector.multi_reduction <add>, %699, %cst_220 [2] : vector<8x8x128xf32> to vector<8x8xf32>
    %c0_221 = arith.constant 0 : index
    %c0_222 = arith.constant 0 : index
    %c0_223 = arith.constant 0 : index
    %701 = vector.load %arg2[%c0_221, %c0_222, %c0_223] : memref<1x1x8xi32, #tpu.memory_space<vmem>>, vector<1x1x8xi32>
    %702 = vector.shape_cast %701 : vector<1x1x8xi32> to vector<1x8xi32>
    %703 = tpu.iota {dimensions = array<i32: 0>} : vector<8x8xi32>
    %704 = vector.broadcast %702 : vector<1x8xi32> to vector<8x8xi32>
    %705 = arith.cmpi slt, %703, %704 : vector<8x8xi32>
    %cst_224 = arith.constant -1.000000e+30 : f32
    %706 = vector.broadcast %cst_224 : f32 to vector<8x8xf32>
    %707 = arith.select %705, %700, %706 : vector<8x8xi1>, vector<8x8xf32>
    %cst_225 = arith.constant dense<0xFF800000> : vector<8xf32>
    %708 = vector.multi_reduction <maximumf>, %707, %cst_225 [0] : vector<8x8xf32> to vector<8xf32>
    %709 = vector.shape_cast %708 : vector<8xf32> to vector<1x8xf32>
    %710 = vector.broadcast %709 : vector<1x8xf32> to vector<8x8xf32>
    %711 = arith.subf %707, %710 : vector<8x8xf32>
    %712 = math.exp %711 : vector<8x8xf32>
    %713 = arith.extui %705 : vector<8x8xi1> to vector<8x8xi32>
    %714 = arith.sitofp %713 : vector<8x8xi32> to vector<8x8xf32>
    %715 = arith.mulf %712, %714 : vector<8x8xf32>
    %cst_226 = arith.constant dense<0.000000e+00> : vector<8xf32>
    %716 = vector.multi_reduction <add>, %715, %cst_226 [0] : vector<8x8xf32> to vector<8xf32>
    %717 = vector.shape_cast %716 : vector<8xf32> to vector<1x8xf32>
    %cst_227 = arith.constant 1.000000e-30 : f32
    %718 = vector.broadcast %cst_227 : f32 to vector<1x8xf32>
    %719 = arith.maximumf %717, %718 : vector<1x8xf32>
    %720 = vector.broadcast %719 : vector<1x8xf32> to vector<8x8xf32>
    %721 = arith.divf %715, %720 : vector<8x8xf32>
    %c0_228 = arith.constant 0 : index
    %c0_229 = arith.constant 0 : index
    %c0_230 = arith.constant 0 : index
    %722 = vector.load %arg21[%c0_228, %c0_229, %c0_230] : memref<1x8x8xf32, #tpu.memory_space<vmem>>, vector<1x8x8xf32>
    %723 = vector.shape_cast %722 : vector<1x8x8xf32> to vector<8x8xf32>
    %724 = vector.shape_cast %721 : vector<8x8xf32> to vector<1x8x8xf32>
    tpu.vector_store %arg21[%c0_228, %c0_229, %c0_230], %724 {strides = array<i32>} : memref<1x8x8xf32, #tpu.memory_space<vmem>>, vector<1x8x8xf32>,
    %725 = vector.shape_cast %687 : vector<64x128xf32> to vector<8x8x128xf32>
    %726 = vector.shape_cast %721 : vector<8x8xf32> to vector<8x8x1xf32>
    %727 = vector.broadcast %726 : vector<8x8x1xf32> to vector<8x8x128xf32>
    %728 = arith.mulf %725, %727 : vector<8x8x128xf32>
    %cst_231 = arith.constant dense<0.000000e+00> : vector<8x128xf32>
    %729 = vector.multi_reduction <add>, %728, %cst_231 [0] : vector<8x8x128xf32> to vector<8x128xf32>
    %c0_232 = arith.constant 0 : index
    %c0_233 = arith.constant 0 : index
    %730 = vector.load %arg18[%c0_232, %c0_233] : memref<8x128xf32, #tpu.memory_space<vmem>>, vector<8x128xf32>
    tpu.vector_store %arg18[%c0_232, %c0_233], %729 {strides = array<i32>} : memref<8x128xf32, #tpu.memory_space<vmem>>, vector<8x128xf32>,
    return
  }
  func.func @transform_0(%arg0: i32) -> (i32, i32, i32) {
    %c0_i32 = arith.constant 0 : i32
    %c0_i32_0 = arith.constant 0 : i32
    %c0_i32_1 = arith.constant 0 : i32
    return %c0_i32, %arg0, %c0_i32_0 : i32, i32, i32
  }
  func.func @transform_1(%arg0: i32) -> (i32, i32, i32) {
    %c0_i32 = arith.constant 0 : i32
    %c0_i32_0 = arith.constant 0 : i32
    %c0_i32_1 = arith.constant 0 : i32
    return %arg0, %c0_i32, %c0_i32_0 : i32, i32, i32
  }
  func.func @transform_2(%arg0: i32) -> (i32, i32) {
    %c0_i32 = arith.constant 0 : i32
    %c0_i32_0 = arith.constant 0 : i32
    return %arg0, %c0_i32 : i32, i32
  }
  func.func @transform_3(%arg0: i32) -> (i32, i32) {
    %c0_i32 = arith.constant 0 : i32
    %c0_i32_0 = arith.constant 0 : i32
    return %arg0, %c0_i32 : i32, i32
  }
  func.func @transform_4(%arg0: i32) -> (i32, i32) {
    %c0_i32 = arith.constant 0 : i32
    %c0_i32_0 = arith.constant 0 : i32
    %c0_i32_1 = arith.constant 0 : i32
    return %c0_i32, %c0_i32_0 : i32, i32
  }
  func.func @transform_5(%arg0: i32) -> (i32, i32) {
    %c0_i32 = arith.constant 0 : i32
    %c0_i32_0 = arith.constant 0 : i32
    %c0_i32_1 = arith.constant 0 : i32
    return %c0_i32, %c0_i32_0 : i32, i32
  }
  func.func @transform_6(%arg0: i32) -> (i32, i32) {
    %c0_i32 = arith.constant 0 : i32
    %c0_i32_0 = arith.constant 0 : i32
    %c0_i32_1 = arith.constant 0 : i32
    return %c0_i32, %c0_i32_0 : i32, i32
  }
  func.func @transform_7(%arg0: i32) -> (i32, i32) {
    %c0_i32 = arith.constant 0 : i32
    %c0_i32_0 = arith.constant 0 : i32
    %c0_i32_1 = arith.constant 0 : i32
    return %c0_i32, %c0_i32_0 : i32, i32
  }
  func.func @transform_8(%arg0: i32) -> (i32, i32) {
    %c0_i32 = arith.constant 0 : i32
    %c0_i32_0 = arith.constant 0 : i32
    %c0_i32_1 = arith.constant 0 : i32
    return %c0_i32, %c0_i32_0 : i32, i32
  }
  func.func @transform_9(%arg0: i32) -> (i32, i32) {
    %c0_i32 = arith.constant 0 : i32
    %c0_i32_0 = arith.constant 0 : i32
    %c0_i32_1 = arith.constant 0 : i32
    return %c0_i32, %c0_i32_0 : i32, i32
  }
  func.func @transform_10(%arg0: i32) -> (i32, i32) {
    %c0_i32 = arith.constant 0 : i32
    %c0_i32_0 = arith.constant 0 : i32
    %c0_i32_1 = arith.constant 0 : i32
    return %c0_i32, %c0_i32_0 : i32, i32
  }
  func.func @transform_11(%arg0: i32) -> (i32, i32) {
    %c0_i32 = arith.constant 0 : i32
    %c0_i32_0 = arith.constant 0 : i32
    %c0_i32_1 = arith.constant 0 : i32
    return %c0_i32, %c0_i32_0 : i32, i32
  }
  func.func @transform_12(%arg0: i32) -> (i32, i32, i32) {
    %c0_i32 = arith.constant 0 : i32
    %c0_i32_0 = arith.constant 0 : i32
    %c0_i32_1 = arith.constant 0 : i32
    %c0_i32_2 = arith.constant 0 : i32
    return %c0_i32, %c0_i32_0, %c0_i32_1 : i32, i32, i32
  }
  func.func @transform_13(%arg0: i32) -> (i32, i32) {
    %c0_i32 = arith.constant 0 : i32
    %c0_i32_0 = arith.constant 0 : i32
    %c0_i32_1 = arith.constant 0 : i32
    return %c0_i32, %c0_i32_0 : i32, i32
  }
  func.func @transform_14(%arg0: i32) -> (i32, i32) {
    %c0_i32 = arith.constant 0 : i32
    %c0_i32_0 = arith.constant 0 : i32
    %c0_i32_1 = arith.constant 0 : i32
    return %c0_i32, %c0_i32_0 : i32, i32
  }
  func.func @transform_15(%arg0: i32) -> (i32, i32) {
    %c0_i32 = arith.constant 0 : i32
    %c0_i32_0 = arith.constant 0 : i32
    %c0_i32_1 = arith.constant 0 : i32
    return %c0_i32, %c0_i32_0 : i32, i32
  }
  func.func @transform_16(%arg0: i32) -> (i32, i32) {
    %c0_i32 = arith.constant 0 : i32
    %c0_i32_0 = arith.constant 0 : i32
    %c0_i32_1 = arith.constant 0 : i32
    return %c0_i32, %c0_i32_0 : i32, i32
  }
  func.func @transform_17(%arg0: i32) -> (i32, i32) {
    %c0_i32 = arith.constant 0 : i32
    %c0_i32_0 = arith.constant 0 : i32
    return %arg0, %c0_i32 : i32, i32
  }
  func.func @transform_18(%arg0: i32) -> (i32, i32) {
    %c0_i32 = arith.constant 0 : i32
    %c0_i32_0 = arith.constant 0 : i32
    return %arg0, %c0_i32 : i32, i32
  }
  func.func @transform_19(%arg0: i32) -> (i32, i32) {
    %c0_i32 = arith.constant 0 : i32
    %c0_i32_0 = arith.constant 0 : i32
    return %arg0, %c0_i32 : i32, i32
  }
  func.func @transform_20(%arg0: i32) -> (i32, i32, i32) {
    %c0_i32 = arith.constant 0 : i32
    %c0_i32_0 = arith.constant 0 : i32
    %c0_i32_1 = arith.constant 0 : i32
    return %arg0, %c0_i32, %c0_i32_0 : i32, i32, i32
  }
}

</mosaic_0001>

<bundles_post_ra>
// kernel: tpu_custom_call.1
= control target key start
LH: loop header
LB: loop body
LE: loop exit
PB: predicated region body
PF: predicated region fallthrough
CT: control target
= control target key end

     0   :  { %s9489_s0 = inlined_call_operand.hbm [shape: bf16[8,8,128], index: 0, kind: input, shape index: {}]   ;;  %s9490_s1 = inlined_call_operand.hbm [shape: s32[1,1,8], index: 1, kind: input, shape index: {}]   ;;  %s9491_s2 = inlined_call_operand.hbm [shape: f32[8,128], index: 2, kind: input, shape index: {}]   ;;  %s9492_s3 = inlined_call_operand.vmem [shape: f32[8,128], index: 3, kind: input, shape index: {}]   ;;  %s9493_s4 = inlined_call_operand.hbm [shape: bf16[128,384], index: 4, kind: input, shape index: {}]   ;;  %s9494_s5 = inlined_call_operand.hbm [shape: bf16[128,384], index: 5, kind: input, shape index: {}]   ;;  %s9495_s6 = inlined_call_operand.vmem [shape: f32[1,384], index: 6, kind: input, shape index: {}]   ;;  %s9496_s7 = inlined_call_operand.vmem [shape: f32[1,128], index: 7, kind: input, shape index: {}]   ;;  %s9497_s8 = inlined_call_operand.hbm [shape: bf16[128,384], index: 8, kind: input, shape index: {}]   ;;  %s9498_s9 = inlined_call_operand.hbm [shape: bf16[128,384], index: 9, kind: input, shape index: {}]   ;;  %s9499_s10 = inlined_call_operand.vmem [shape: f32[1,384], index: 10, kind: input, shape index: {}]   ;;  %s9500_s11 = inlined_call_operand.vmem [shape: f32[1,128], index: 11, kind: input, shape index: {}]   ;;  %s9501_s12 = inlined_call_operand.hbm [shape: bf16[2,128,128], index: 12, kind: input, shape index: {}]   ;;  %s9502_s13 = inlined_call_operand.vmem [shape: f32[1,128], index: 13, kind: input, shape index: {}]   ;;  %s9503_s14 = inlined_call_operand.hbm [shape: bf16[128,128], index: 14, kind: input, shape index: {}]   ;;  %s9504_s15 = inlined_call_operand.vmem [shape: f32[1,128], index: 15, kind: input, shape index: {}]   ;;  %s9505_s16 = inlined_call_operand.vmem [shape: f32[1,128], index: 16, kind: input, shape index: {}]   ;;  %s9506_s17 = inlined_call_operand.hbm [shape: f32[8,128], index: 17, kind: output, shape index: {0}]   ;;  %s9507_s18 = inlined_call_operand.hbm [shape: f32[8,128], index: 18, kind: output, shape index: {1}]   ;;  %s9508_s19 = inlined_call_operand.hbm [shape: f32[8,128], index: 19, kind: output, shape index: {2}]   ;;  %s9509_s20 = inlined_call_operand.hbm [shape: f32[1,8,8], index: 20, kind: output, shape index: {3}]  }
   0x1   :  { %9521 = sst [smem:[#allocation35_spill]] %s9489_s0 }
   0x2   :  { %9522 = sst [smem:[#allocation36_spill]] %s9490_s1 }
   0x3   :  { %9523 = sst [smem:[#allocation37_spill]] %s9491_s2 }
   0x4   :  { %9524 = sst [smem:[#allocation38_spill]] %s9492_s3 }
   0x5   :  { %9525 = sst [smem:[#allocation39_spill]] %s9493_s4 }
   0x6   :  { %9526 = sst [smem:[#allocation40_spill]] %s9506_s17 }
   0x7   :  { %26 = vsyncpa [#allocation7], 0 }
   0x8   :  { %27 = vsyncpa [#allocation10], 0 }
   0x9   :  { %28 = vsyncpa [#allocation13], 0 }
   0xa   :  { %29 = vsyncpa [#allocation16], 0 }
   0xb   :  { %30 = vsyncpa [#allocation19], 0 }
   0xc   :  { %31 = vsyncpa [#allocation8], 0 }
   0xd   :  { %32 = vsyncpa [#allocation23], 0 }
   0xe   :  { %33 = vsyncpa [#allocation26], 0  ;;  %s8270_s1 = smov [#allocation9]   ;;  %s8271_s23 = smov [#allocation12]  }
   0xf   :  { %s52_s22 = sshll.u32 %s8270_s1, 4  ;;  %s73_s24 = sshll.u32 %s8271_s23, 4  ;;  %s53_s22 = int_to_ptr.vmem [resolvable:$true] %s52_s22  ;;  %s8395_s24 = int_to_ptr.vmem [resolvable:$true] %s73_s24 }
  0x10   :  { %s9527_s3 = sld [smem:[#allocation36_spill]] }
  0x16   :  { %s7968_s26 = scalar_lea.hbm %s9527_s3, 16 }
  0x17   :  { %p7969_p0 = scmp.ne.s32.totalorder %s9527_s3, %s7968_s26  ;;  %p7972_p1 = scmp.lt.u32.totalorder %s7968_s26, %s9527_s3 }
  0x19   :  { %p7974_p2 = pnand %p7972_p1, %p7969_p0 }
  0x1b   :  { %7977 = shalt.err (!%p7974_p2)
}
  0x1c   :  { %s7978_s30 = scalar_lea.vmem %s53_s22, 16  ;;  %s7982_s0 = scalar_lea.vmem %s53_s22, 32 }
  0x1d   :  { %p7979_p3 = scmp.ne.s32.totalorder %s53_s22, %s7978_s30  ;;  %p7983_p4 = scmp.lt.s32.totalorder %s53_s22, %s53_s22 }
  0x1e   :  { %p7984_p5 = scmp.lt.s32.totalorder %s7982_s0, %s7978_s30 }
  0x20   :  { %p7985_p6 = por %p7984_p5, %p7983_p4 }
  0x22   :  { %p7986_p7 = pnand %p7985_p6, %p7979_p3 }
  0x24   :  { %7989 = shalt.err (!%p7986_p7)
}
  0x25   :  { %55 = dma.hbm_to_vmem [thread:$0]  %s9527_s3, 16, %s53_s22, [#allocation10]  }
  0x26   :  { %s9528_s25 = sld [smem:[#allocation39_spill]] }
  0x2c   :  { %s7990_s27 = scalar_lea.hbm %s9528_s25, 3072 }
  0x2d   :  { %p7991_p8 = scmp.ne.s32.totalorder %s9528_s25, %s7990_s27  ;;  %p7994_p9 = scmp.lt.u32.totalorder %s7990_s27, %s9528_s25 }
  0x2f   :  { %p7996_p10 = pnand %p7994_p9, %p7991_p8 }
  0x31   :  { %7999 = shalt.err (!%p7996_p10)
}
  0x32   :  { %s8000_s30 = scalar_lea.vmem %s8395_s24, 3072  ;;  %p8005_p12 = scmp.lt.s32.totalorder %s8395_s24, %s8395_s24 }
  0x33   :  { %p8001_p11 = scmp.ne.s32.totalorder %s8395_s24, %s8000_s30  ;;  %p8006_p13 = scmp.lt.s32.totalorder %s8000_s30, %s8000_s30 }
  0x35   :  { %p8007_p0 = por %p8006_p13, %p8005_p12 }
  0x37   :  { %p8008_p1 = pnand %p8007_p0, %p8001_p11 }
  0x39   :  { %8011 = shalt.err (!%p8008_p1)
}
  0x3a   :  { %s9516_s22 = smov 192   ;;  %s9518_s3 = smov 12  }
  0x3b   :  { %79 = dma.hbm_to_vmem [thread:$0]  %s9528_s25, 3072, %s8395_s24, [#allocation13], %s9516_s22, %s9516_s22, %s9518_s3  }
  0x3c   :  { %s8274_s1 = smov [#allocation15]   ;;  %s8012_s28 = scalar_lea.hbm %s9497_s8, 3072 }
  0x3d   :  { %s101_s23 = sshll.u32 %s8274_s1, 4  ;;  %p8013_p2 = scmp.ne.s32.totalorder %s9497_s8, %s8012_s28  ;;  %s102_s23 = int_to_ptr.vmem [resolvable:$true] %s101_s23 }
  0x3e   :  { %p8016_p3 = scmp.lt.u32.totalorder %s8012_s28, %s9497_s8 }
  0x40   :  { %p8018_p4 = pnand %p8016_p3, %p8013_p2 }
  0x42   :  { %8021 = shalt.err (!%p8018_p4)
}
  0x43   :  { %s8022_s17 = scalar_lea.vmem %s102_s23, 3072  ;;  %p8027_p6 = scmp.lt.s32.totalorder %s102_s23, %s102_s23 }
  0x44   :  { %p8023_p5 = scmp.ne.s32.totalorder %s102_s23, %s8022_s17  ;;  %p8028_p7 = scmp.lt.s32.totalorder %s8022_s17, %s8022_s17 }
  0x46   :  { %p8029_p8 = por %p8028_p7, %p8027_p6 }
  0x48   :  { %p8030_p9 = pnand %p8029_p8, %p8023_p5 }
  0x4a   :  { %8033 = shalt.err (!%p8030_p9)
}
  0x4b   :  { %107 = dma.hbm_to_vmem [thread:$0]  %s9497_s8, 3072, %s102_s23, [#allocation16], %s9516_s22, %s9516_s22, %s9518_s3  }
  0x4c   :  { %s8275_s0 = smov [#allocation18]   ;;  %s8276_s1 = smov [#allocation6]  }
  0x4d   :  { %s129_s21 = sshll.u32 %s8275_s0, 4  ;;  %s39_s2 = sshll.u32 %s8276_s1, 4  ;;  %s130_s21 = int_to_ptr.vmem [resolvable:$true] %s129_s21  ;;  %s40_s2 = int_to_ptr.vmem [resolvable:$true] %s39_s2 }
  0x4e   :  { %s8034_s26 = scalar_lea.hbm %s9501_s12, 2048 }
  0x4f   :  { %p8035_p10 = scmp.ne.s32.totalorder %s9501_s12, %s8034_s26  ;;  %p8038_p11 = scmp.lt.u32.totalorder %s8034_s26, %s9501_s12 }
  0x51   :  { %p8040_p12 = pnand %p8038_p11, %p8035_p10 }
  0x53   :  { %8043 = shalt.err (!%p8040_p12)
}
  0x54   :  { %s8044_s8 = scalar_lea.vmem %s130_s21, 2048  ;;  %p8049_p0 = scmp.lt.s32.totalorder %s130_s21, %s130_s21 }
  0x55   :  { %p8045_p13 = scmp.ne.s32.totalorder %s130_s21, %s8044_s8  ;;  %p8050_p1 = scmp.lt.s32.totalorder %s8044_s8, %s8044_s8 }
  0x57   :  { %p8051_p2 = por %p8050_p1, %p8049_p0 }
  0x59   :  { %p8052_p3 = pnand %p8051_p2, %p8045_p13 }
  0x5b   :  { %8055 = shalt.err (!%p8052_p3)
}
  0x5c   :  { %s8277_s23 = smov 64   ;;  %s8278_s24 = smov 4  }
  0x5d   :  { %135 = dma.hbm_to_vmem [thread:$0]  %s9501_s12, 2048, %s130_s21, [#allocation19], %s8277_s23, %s8277_s23, %s8278_s24  }
  0x5e   :  { %s9529_s28 = sld [smem:[#allocation35_spill]] }
  0x64   :  { %s8056_s26 = scalar_lea.hbm %s9529_s28, 512 }
  0x65   :  { %p8057_p4 = scmp.ne.s32.totalorder %s9529_s28, %s8056_s26  ;;  %p8060_p5 = scmp.lt.u32.totalorder %s8056_s26, %s9529_s28 }
  0x67   :  { %p8062_p6 = pnand %p8060_p5, %p8057_p4 }
  0x69   :  { %8065 = shalt.err (!%p8062_p6)
}
  0x6a   :  { %s8066_s8 = scalar_lea.vmem %s40_s2, 512  ;;  %p8071_p8 = scmp.lt.s32.totalorder %s40_s2, %s40_s2 }
  0x6b   :  { %p8067_p7 = scmp.ne.s32.totalorder %s40_s2, %s8066_s8  ;;  %p8072_p9 = scmp.lt.s32.totalorder %s8066_s8, %s8066_s8 }
  0x6d   :  { %p8073_p10 = por %p8072_p9, %p8071_p8 }
  0x6f   :  { %p8074_p11 = pnand %p8073_p10, %p8067_p7 }
  0x71   :  { %8077 = shalt.err (!%p8074_p11)
}
  0x72   :  { %45 = dma.hbm_to_vmem [thread:$0]  %s9529_s28, 512, %s40_s2, [#allocation7], %s8277_s23, %s8277_s23, %s8278_s24  }
  0x73   :  { %s8279_s25 = smov [#allocation11]   ;;  %s8280_s1 = smov [#allocation14]  }
  0x74   :  { %s62_s0 = sshll.u32 %s8279_s25, 4  ;;  %s85_s27 = sshll.u32 %s8280_s1, 4  ;;  %s63_s0 = int_to_ptr.vmem [resolvable:$true] %s62_s0  ;;  %s86_s27 = int_to_ptr.vmem [resolvable:$true] %s85_s27 }
  0x75   :  { %s9530_s4 = sld [smem:[#allocation37_spill]] }
  0x7b   :  { %s8078_s29 = scalar_lea.hbm %s9530_s4, 128 }
  0x7c   :  { %p8079_p12 = scmp.ne.s32.totalorder %s9530_s4, %s8078_s29  ;;  %p8082_p13 = scmp.lt.u32.totalorder %s8078_s29, %s9530_s4 }
  0x7e   :  { %p8084_p0 = pnand %p8082_p13, %p8079_p12 }
  0x80   :  { %8087 = shalt.err (!%p8084_p0)
}
  0x81   :  { %s8088_s2 = scalar_lea.vmem %s63_s0, 128  ;;  %p8093_p2 = scmp.lt.s32.totalorder %s63_s0, %s63_s0 }
  0x82   :  { %p8089_p1 = scmp.ne.s32.totalorder %s63_s0, %s8088_s2  ;;  %p8094_p3 = scmp.lt.s32.totalorder %s8088_s2, %s8088_s2 }
  0x84   :  { %p8095_p4 = por %p8094_p3, %p8093_p2 }
  0x86   :  { %p8096_p5 = pnand %p8095_p4, %p8089_p1 }
  0x88   :  { %8099 = shalt.err (!%p8096_p5)
}
  0x89   :  { %65 = dma.hbm_to_vmem [thread:$0]  %s9530_s4, 128, %s63_s0, [#allocation10]  }
  0x8a   :  { %s8100_s1 = scalar_lea.hbm %s9494_s5, 3072 }
  0x8b   :  { %p8101_p6 = scmp.ne.s32.totalorder %s9494_s5, %s8100_s1  ;;  %p8104_p7 = scmp.lt.u32.totalorder %s8100_s1, %s9494_s5 }
  0x8d   :  { %p8106_p8 = pnand %p8104_p7, %p8101_p6 }
  0x8f   :  { %8109 = shalt.err (!%p8106_p8)
}
  0x90   :  { %s8110_s29 = scalar_lea.vmem %s86_s27, 3072  ;;  %p8115_p10 = scmp.lt.s32.totalorder %s86_s27, %s86_s27 }
  0x91   :  { %p8111_p9 = scmp.ne.s32.totalorder %s86_s27, %s8110_s29  ;;  %p8116_p11 = scmp.lt.s32.totalorder %s8110_s29, %s8110_s29 }
  0x93   :  { %p8117_p12 = por %p8116_p11, %p8115_p10 }
  0x95   :  { %p8118_p13 = pnand %p8117_p12, %p8111_p9 }
  0x97   :  { %8121 = shalt.err (!%p8118_p13)
}
  0x98   :  { %s9531_s0 = smov 12   ;;  %s9532_s4 = smov 192  }
  0x99   :  { %91 = dma.hbm_to_vmem [thread:$0]  %s9494_s5, 3072, %s86_s27, [#allocation13], %s9532_s4, %s9532_s4, %s9531_s0  }
  0x9a   :  { %s8281_s2 = smov [#allocation17]   ;;  %s8282_s12 = smov [#allocation20]  }
  0x9b   :  { %s113_s28 = sshll.u32 %s8281_s2, 4  ;;  %s143_s21 = sshll.u32 %s8282_s12, 4  ;;  %s114_s28 = int_to_ptr.vmem [resolvable:$true] %s113_s28  ;;  %s144_s21 = int_to_ptr.vmem [resolvable:$true] %s143_s21 }
  0x9c   :  { %s8122_s22 = scalar_lea.hbm %s9498_s9, 3072 }
  0x9d   :  { %p8123_p0 = scmp.ne.s32.totalorder %s9498_s9, %s8122_s22  ;;  %p8126_p1 = scmp.lt.u32.totalorder %s8122_s22, %s9498_s9 }
  0x9f   :  { %p8128_p2 = pnand %p8126_p1, %p8123_p0 }
  0xa1   :  { %8131 = shalt.err (!%p8128_p2)
}
  0xa2   :  { %s8132_s5 = scalar_lea.vmem %s114_s28, 3072  ;;  %p8137_p4 = scmp.lt.s32.totalorder %s114_s28, %s114_s28 }
  0xa3   :  { %p8133_p3 = scmp.ne.s32.totalorder %s114_s28, %s8132_s5  ;;  %p8138_p5 = scmp.lt.s32.totalorder %s8132_s5, %s8132_s5 }
  0xa5   :  { %p8139_p6 = por %p8138_p5, %p8137_p4 }
  0xa7   :  { %p8140_p7 = pnand %p8139_p6, %p8133_p3 }
  0xa9   :  { %8143 = shalt.err (!%p8140_p7)
}
  0xaa   :  { %119 = dma.hbm_to_vmem [thread:$0]  %s9498_s9, 3072, %s114_s28, [#allocation16], %s9532_s4, %s9532_s4, %s9531_s0  }
  0xab   :  { %s8144_s12 = scalar_lea.hbm %s9503_s14, 1024 }
  0xac   :  { %p8145_p8 = scmp.ne.s32.totalorder %s9503_s14, %s8144_s12  ;;  %p8148_p9 = scmp.lt.u32.totalorder %s8144_s12, %s9503_s14 }
  0xae   :  { %p8150_p10 = pnand %p8148_p9, %p8145_p8 }
  0xb0   :  { %8153 = shalt.err (!%p8150_p10)
}
  0xb1   :  { %s8154_s26 = scalar_lea.vmem %s144_s21, 1024  ;;  %p8159_p12 = scmp.lt.s32.totalorder %s144_s21, %s144_s21 }
  0xb2   :  { %p8155_p11 = scmp.ne.s32.totalorder %s144_s21, %s8154_s26  ;;  %p8160_p13 = scmp.lt.s32.totalorder %s8154_s26, %s8154_s26 }
  0xb4   :  { %p8161_p0 = por %p8160_p13, %p8159_p12 }
  0xb6   :  { %p8162_p1 = pnand %p8161_p0, %p8155_p11 }
  0xb8   :  { %8165 = shalt.err (!%p8162_p1)
}
  0xb9   :  { %149 = dma.hbm_to_vmem [thread:$0]  %s9503_s14, 1024, %s144_s21, [#allocation19], %s8277_s23, %s8277_s23, %s8278_s24  }
  0xba   :  { %8254 = dma.done.wait [#allocation7], 512  }
  0xbb   :  { %8255 = vsyncadd [#allocation7], 4294966784 }
  0xbc   :  { %8256 = dma.done.wait [#allocation10], 144  }
  0xbd   :  { %8257 = vsyncadd [#allocation10], 4294967152 }
  0xbe   :  { %8258 = dma.done.wait [#allocation13], 6144  }
  0xbf   :  { %8259 = vsyncadd [#allocation13], 4294961152 }
  0xc0   :  { %8260 = dma.done.wait [#allocation16], 6144  }
  0xc1   :  { %8261 = vsyncadd [#allocation16], 4294961152 }
  0xc2   :  { %8262 = dma.done.wait [#allocation19], 3072  }
  0xc3   :  { %8263 = vsyncadd [#allocation19], 4294964224  ;;  %v8283_v0 = vmov 0   ;;  %v7395_v1 = vld [vmem:[#allocation12 + $0x4] ss:$12 sps:$4 sm:$0xff]   ;;  %v8532_v15 = vld [vmem:[#allocation6] sm:$0xff]  }
  0xc4   :  { %423 = vmatprep.mubr.bf16.mxu0 %v8283_v0  ;;  %v7397_v2 = vld [vmem:[#allocation12] ss:$12 sps:$4 sm:$0xff]   ;;  %391 = vmatprep.subr.bf16.mxu0 %v7395_v1  ;;  %v7398_v3 = vld [vmem:[#allocation12 + $0x1c] ss:$12 sps:$4 sm:$0xff]   ;;  %v7400_v4 = vld [vmem:[#allocation12 + $0x18] ss:$12 sps:$4 sm:$0xff]  }
  0xc5   :  { %392 = vmatpush1.bf16.msra.mxu0 %v7397_v2  ;;  %v7401_v5 = vld [vmem:[#allocation12 + $0x34] ss:$12 sps:$4 sm:$0xff]   ;;  %v7403_v6 = vld [vmem:[#allocation12 + $0x30] ss:$12 sps:$4 sm:$0xff]   ;;  %v7404_v7 = vld [vmem:[#allocation12 + $0x4c] ss:$12 sps:$4 sm:$0xff]   ;;  %6943 = vmatprep.mubr.bf16.mxu1 %v8532_v15 }
  0xc6   :  { %393 = vmatprep.subr.bf16.mxu0 %v7398_v3  ;;  %v7413_v8 = vld [vmem:[#allocation12 + $0x8] ss:$12 sps:$4 sm:$0xff]   ;;  %v7417_v10 = vld [vmem:[#allocation12 + $0x20] ss:$12 sps:$4 sm:$0xff]   ;;  %v7407_v11 = vld [vmem:[#allocation12 + $0x64] ss:$12 sps:$4 sm:$0xff]  }
  0xc7   :  { %v7406_v9 = vld [vmem:[#allocation12 + $0x48] ss:$12 sps:$4 sm:$0xff]   ;;  %6927 = vmatprep.subr.bf16.mxu1 %v7413_v8  ;;  %v7421_v12 = vld [vmem:[#allocation12 + $0x38] ss:$12 sps:$4 sm:$0xff]   ;;  %v7409_v13 = vld [vmem:[#allocation12 + $0x60] ss:$12 sps:$4 sm:$0xff]  }
  0xc8   :  { %6928 = vmatpush3.bf16.msra.mxu1 %v7413_v8  ;;  %v7410_v14 = vld [vmem:[#allocation12 + $0x7c] ss:$12 sps:$4 sm:$0xff]   ;;  %v7412_v17 = vld [vmem:[#allocation12 + $0x78] ss:$12 sps:$4 sm:$0xff]   ;;  %v7414_v18 = vld [vmem:[#allocation12 + $0x94] ss:$12 sps:$4 sm:$0xff]  }
  0xc9   :  { %394 = vmatpush1.bf16.msra.mxu0 %v7400_v4  ;;  %6929 = vmatprep.subr.bf16.mxu1 %v7417_v10  ;;  %v7426_v16 = vld [vmem:[#allocation12 + $0x50] ss:$12 sps:$4 sm:$0xff]   ;;  %v7430_v19 = vld [vmem:[#allocation12 + $0x68] ss:$12 sps:$4 sm:$0xff]   ;;  %v7418_v21 = vld [vmem:[#allocation12 + $0xac] ss:$12 sps:$4 sm:$0xff]  }
  0xca   :  { %395 = vmatprep.subr.bf16.mxu0 %v7401_v5  ;;  %v7416_v20 = vld [vmem:[#allocation12 + $0x90] ss:$12 sps:$4 sm:$0xff]   ;;  %v7435_v22 = vld [vmem:[#allocation12 + $0x80] ss:$12 sps:$4 sm:$0xff]   ;;  %v7420_v23 = vld [vmem:[#allocation12 + $0xa8] ss:$12 sps:$4 sm:$0xff]  }
  0xcb   :  { %v7425_v24 = vld [vmem:[#allocation15 + $0x4] ss:$12 sps:$4 sm:$0xff]   ;;  %v7423_v26 = vld [vmem:[#allocation15] ss:$12 sps:$4 sm:$0xff]   ;;  %v7429_v27 = vld [vmem:[#allocation15 + $0x1c] ss:$12 sps:$4 sm:$0xff]  }
  0xcc   :  { %6930 = vmatpush3.bf16.msra.mxu1 %v7417_v10  ;;  %v7439_v25 = vld [vmem:[#allocation12 + $0x98] ss:$12 sps:$4 sm:$0xff]   ;;  %v7444_v28 = vld [vmem:[#allocation12 + $0xb0] ss:$12 sps:$4 sm:$0xff]   ;;  %v7434_v30 = vld [vmem:[#allocation15 + $0x34] ss:$12 sps:$4 sm:$0xff]  }
  0xcd   :  { %396 = vmatpush1.bf16.msra.mxu0 %v7403_v6  ;;  %6931 = vmatprep.subr.bf16.mxu1 %v7421_v12  ;;  %v7427_v29 = vld [vmem:[#allocation15 + $0x18] ss:$12 sps:$4 sm:$0xff]   ;;  %v7448_v31 = vld [vmem:[#allocation15 + $0x8] ss:$12 sps:$4 sm:$0xff]   ;;  %v7432_v33 = vld [vmem:[#allocation15 + $0x30] ss:$12 sps:$4 sm:$0xff]  }
  0xce   :  { %397 = vmatprep.subr.bf16.mxu0 %v7404_v7  ;;  %v8537_v32 = vld [vmem:[#allocation6 + $0x8] sm:$0xff]   ;;  %v7438_v34 = vld [vmem:[#allocation15 + $0x4c] ss:$12 sps:$4 sm:$0xff]   ;;  %v7436_v35 = vld [vmem:[#allocation15 + $0x48] ss:$12 sps:$4 sm:$0xff]   ;;  %v8284_v61 = vmov 0.0  }
  0xcf   :  { %v7453_v36 = vld [vmem:[#allocation15 + $0x20] ss:$12 sps:$4 sm:$0xff]   ;;  %v7443_v38 = vld [vmem:[#allocation15 + $0x64] ss:$12 sps:$4 sm:$0xff]   ;;  %v7447_v41 = vld [vmem:[#allocation15 + $0x7c] ss:$12 sps:$4 sm:$0xff]  }
  0xd0   :  { %6932 = vmatpush3.bf16.msra.mxu1 %v7421_v12  ;;  %v8541_v37 = vld [vmem:[#allocation6 + $0x10] sm:$0xff]   ;;  %v8546_v42 = vld [vmem:[#allocation6 + $0x18] sm:$0xff]   ;;  %vm8285_vm0 = vmmov 0   ;;  %v1038_v12 = vld [vmem:[#allocation11] sm:$0xff]  ;;  %s9533_s24 = sld [smem:[#allocation38_spill]]  ;;  %vm5979_vm1 = vcmask 1041409  }
  0xd1   :  { %398 = vmatpush1.bf16.msra.mxu0 %v7406_v9  ;;  %6933 = vmatprep.subr.bf16.mxu1 %v7426_v16  ;;  %v7457_v39 = vld [vmem:[#allocation15 + $0x38] ss:$12 sps:$4 sm:$0xff]   ;;  %v7441_v40 = vld [vmem:[#allocation15 + $0x60] ss:$12 sps:$4 sm:$0xff]   ;;  %v7461_v43 = vld [vmem:[#allocation15 + $0x50] ss:$12 sps:$4 sm:$0xff]  }
  0xd2   :  { %399 = vmatprep.subr.bf16.mxu0 %v7407_v11  ;;  %v7445_v44 = vld [vmem:[#allocation15 + $0x78] ss:$12 sps:$4 sm:$0xff]   ;;  %v7452_v45 = vld [vmem:[#allocation15 + $0x94] ss:$12 sps:$4 sm:$0xff]   ;;  %v7450_v47 = vld [vmem:[#allocation15 + $0x90] ss:$12 sps:$4 sm:$0xff]  }
  0xd3   :  { %v7465_v46 = vld [vmem:[#allocation15 + $0x68] ss:$12 sps:$4 sm:$0xff]   ;;  %v7456_v48 = vld [vmem:[#allocation15 + $0xac] ss:$12 sps:$4 sm:$0xff]   ;;  %v8553_v51 = vld [vmem:[#allocation14 + $0x4] ss:$12 sps:$4 sm:$0xff]  }
  0xd4   :  { %6934 = vmatpush3.bf16.msra.mxu1 %v7426_v16  ;;  %v7469_v49 = vld [vmem:[#allocation15 + $0x80] ss:$12 sps:$4 sm:$0xff]   ;;  %v7454_v50 = vld [vmem:[#allocation15 + $0xa8] ss:$12 sps:$4 sm:$0xff]   ;;  %v7473_v52 = vld [vmem:[#allocation15 + $0x98] ss:$12 sps:$4 sm:$0xff]   ;;  %v1042_v16 = vpack.c.bf16 %v1038_v12, %v1038_v12 }
  0xd5   :  { %400 = vmatpush1.bf16.msra.mxu0 %v7409_v13  ;;  %6935 = vmatprep.subr.bf16.mxu1 %v7430_v19  ;;  %v8555_v53 = vld [vmem:[#allocation14] ss:$12 sps:$4 sm:$0xff]   ;;  %v8558_v54 = vld [vmem:[#allocation14 + $0x1c] ss:$12 sps:$4 sm:$0xff]   ;;  %v8562_v56 = vld [vmem:[#allocation14 + $0x18] ss:$12 sps:$4 sm:$0xff]  }
  0xd6   :  { %401 = vmatprep.subr.bf16.mxu0 %v7410_v14  ;;  %v7477_v55 = vld [vmem:[#allocation15 + $0xb0] ss:$12 sps:$4 sm:$0xff]   ;;  %v8566_v57 = vld [vmem:[#allocation14 + $0x34] ss:$12 sps:$4 sm:$0xff]   ;;  %v8572_v59 = vld [vmem:[#allocation14 + $0x4c] ss:$12 sps:$4 sm:$0xff]  }
  0xd7   :  { %v8569_v58 = vld [vmem:[#allocation14 + $0x30] ss:$12 sps:$4 sm:$0xff]   ;;  %v7484_v60 = vld [vmem:[#allocation14 + $0x8] ss:$12 sps:$4 sm:$0xff]   ;;  %v7488_v1 = vld [vmem:[#allocation14 + $0x20] ss:$12 sps:$4 sm:$0xff]  }
  0xd8   :  { %6936 = vmatpush3.bf16.msra.mxu1 %v7430_v19  ;;  %v8577_v62 = vld [vmem:[#allocation14 + $0x48] ss:$12 sps:$4 sm:$0xff]   ;;  %v8581_v63 = vld [vmem:[#allocation14 + $0x64] ss:$12 sps:$4 sm:$0xff]   ;;  %v8585_v2 = vld [vmem:[#allocation14 + $0x60] ss:$12 sps:$4 sm:$0xff]  }
  0xd9   :  { %402 = vmatpush1.bf16.msra.mxu0 %v7412_v17  ;;  %6937 = vmatprep.subr.bf16.mxu1 %v7435_v22  ;;  %v8589_v3 = vld [vmem:[#allocation14 + $0x7c] ss:$12 sps:$4 sm:$0xff]   ;;  %v7489_v4 = vld [vmem:[#allocation14 + $0x38] ss:$12 sps:$4 sm:$0xff]   ;;  %v8595_v6 = vld [vmem:[#allocation14 + $0x94] ss:$12 sps:$4 sm:$0xff]  }
  0xda   :  { %403 = vmatprep.subr.bf16.mxu0 %v7414_v18  ;;  %v8592_v5 = vld [vmem:[#allocation14 + $0x78] ss:$12 sps:$4 sm:$0xff]   ;;  %v7493_v7 = vld [vmem:[#allocation14 + $0x50] ss:$12 sps:$4 sm:$0xff]   ;;  %v7497_v10 = vld [vmem:[#allocation14 + $0x68] ss:$12 sps:$4 sm:$0xff]  }
  0xdb   :  { %v8602_v8 = vld [vmem:[#allocation14 + $0x90] ss:$12 sps:$4 sm:$0xff]   ;;  %v8606_v9 = vld [vmem:[#allocation14 + $0xac] ss:$12 sps:$4 sm:$0xff]   ;;  %v8611_v11 = vld [vmem:[#allocation14 + $0xa8] ss:$12 sps:$4 sm:$0xff]  }
  0xdc   :  { %6938 = vmatpush3.bf16.msra.mxu1 %v7435_v22  ;;  %v8614_v13 = vld [vmem:[#allocation17 + $0x4] ss:$12 sps:$4 sm:$0xff]   ;;  %v7501_v14 = vld [vmem:[#allocation14 + $0x80] ss:$12 sps:$4 sm:$0xff]   ;;  %v7496_v17 = vld [vmem:[#allocation17 + $0x1c] ss:$12 sps:$4 sm:$0xff]  }
  0xdd   :  { %404 = vmatpush1.bf16.msra.mxu0 %v7416_v20  ;;  %6939 = vmatprep.subr.bf16.mxu1 %v7439_v25  ;;  %v7505_v18 = vld [vmem:[#allocation14 + $0x98] ss:$12 sps:$4 sm:$0xff]   ;;  %v7500_v20 = vld [vmem:[#allocation17 + $0x34] ss:$12 sps:$4 sm:$0xff]   ;;  %v7498_v22 = vld [vmem:[#allocation17 + $0x30] ss:$12 sps:$4 sm:$0xff]  }
  0xde   :  { %405 = vmatprep.subr.bf16.mxu0 %v7418_v21  ;;  %v7494_v19 = vld [vmem:[#allocation17 + $0x18] ss:$12 sps:$4 sm:$0xff]   ;;  %v7509_v21 = vld [vmem:[#allocation14 + $0xb0] ss:$12 sps:$4 sm:$0xff]   ;;  %vm5981_vm2 = vcmask 1042434   ;;  %vm5983_vm3 = vcmask 1043459  }
  0xdf   :  { %vm5985_vm4 = vcmask 1044484   ;;  %vm5987_vm5 = vcmask 1045509   ;;  %vm5989_vm6 = vcmask 1046534   ;;  %vm5991_vm7 = vcmask 1047559  }
  0xe0   :  { %6940 = vmatpush3.bf16.msra.mxu1 %v7439_v25  ;;  %v7502_v25 = vld [vmem:[#allocation17 + $0x48] ss:$12 sps:$4 sm:$0xff]   ;;  %vm5995_vm9 = vcmask 64512  }
  0xe1   :  { %406 = vmatpush1.bf16.msra.mxu0 %v7420_v23  ;;  %6941 = vmatprep.subr.bf16.mxu1 %v7444_v28  ;;  %v7504_v23 = vld [vmem:[#allocation17 + $0x4c] ss:$12 sps:$4 sm:$0xff]  }
  0xe2   :  { %802 = vmatprep.subr.bf16.mxu0 %v7425_v24  ;;  %v7516_v24 = vld [vmem:[#allocation17 + $0x8] ss:$12 sps:$4 sm:$0xff]  }
  0xe4   :  { %424 = vmatmul.mubr.bf16.vlgmr.msra.gmra.mrb[0].mxu0 %v8532_v15  ;;  %6942 = vmatpush3.bf16.msra.mxu1 %v7444_v28  ;;  %v7506_v28 = vld [vmem:[#allocation17 + $0x60] ss:$12 sps:$4 sm:$0xff]  }
  0xe5   :  { %803 = vmatpush1.bf16.msra.mxu0 %v7423_v26  ;;  %433 = vmatprep.mubr.bf16.mxu0 %v8283_v0  ;;  %v7508_v26 = vld [vmem:[#allocation17 + $0x64] ss:$12 sps:$4 sm:$0xff]  }
  0xe6   :  { %804 = vmatprep.subr.bf16.mxu0 %v7429_v27  ;;  %6951 = vmatprep.subr.bf16.mxu1 %v7448_v31  ;;  %v7520_v27 = vld [vmem:[#allocation17 + $0x20] ss:$12 sps:$4 sm:$0xff]  }
  0xe7   :  { %6944 = vmatmul.mubr.bf16.vlgmr.msra.gmra.mrb[0].mxu1 %v8537_v32 }
  0xe8   :  { %6952 = vmatpush3.bf16.msra.mxu1 %v7448_v31  ;;  %6947 = vmatprep.mubr.bf16.mxu1 %v8541_v37  ;;  %v7510_v31 = vld [vmem:[#allocation17 + $0x78] ss:$12 sps:$4 sm:$0xff]  }
  0xe9   :  { %805 = vmatpush1.bf16.msra.mxu0 %v7427_v29  ;;  %6953 = vmatprep.subr.bf16.mxu1 %v7453_v36  ;;  %v7512_v29 = vld [vmem:[#allocation17 + $0x7c] ss:$12 sps:$4 sm:$0xff]  }
  0xea   :  { %806 = vmatprep.subr.bf16.mxu0 %v7434_v30  ;;  %v7521_v30 = vld [vmem:[#allocation17 + $0x38] ss:$12 sps:$4 sm:$0xff]  }
  0xec   :  { %434 = vmatmul.mubr.bf16.gmra.mrb[4].mxu0 %v8537_v32  ;;  %6954 = vmatpush3.bf16.msra.mxu1 %v7453_v36  ;;  %v7523_v36 = vld [vmem:[#allocation17 + $0x68] ss:$12 sps:$4 sm:$0xff]  }
  0xed   :  { %807 = vmatpush1.bf16.msra.mxu0 %v7432_v33  ;;  %443 = vmatprep.mubr.bf16.mxu0 %v8283_v0  ;;  %v7522_v33 = vld [vmem:[#allocation17 + $0x50] ss:$12 sps:$4 sm:$0xff]  }
  0xee   :  { %808 = vmatprep.subr.bf16.mxu0 %v7438_v34  ;;  %6955 = vmatprep.subr.bf16.mxu1 %v7457_v39  ;;  %v7513_v34 = vld [vmem:[#allocation17 + $0x90] ss:$12 sps:$4 sm:$0xff]  }
  0xef   :  { %6948 = vmatmul.mubr.bf16.gmra.mrb[4].mxu1 %v8546_v42 }
  0xf0   :  { %6956 = vmatpush3.bf16.msra.mxu1 %v7457_v39  ;;  %6967 = vmatprep.mubr.bf16.mxu1 %v8532_v15  ;;  %v7524_v39 = vld [vmem:[#allocation17 + $0x80] ss:$12 sps:$4 sm:$0xff]  }
  0xf1   :  { %809 = vmatpush1.bf16.msra.mxu0 %v7436_v35  ;;  %6957 = vmatprep.subr.bf16.mxu1 %v7461_v43  ;;  %v7519_v35 = vld [vmem:[#allocation17 + $0xac] ss:$12 sps:$4 sm:$0xff]  }
  0xf2   :  { %810 = vmatprep.subr.bf16.mxu0 %v7443_v38  ;;  %v1039_v38 = vld [vmem:[%s9533_s24] sm:$0xff] }
  0xf4   :  { %444 = vmatmul.mubr.bf16.gmra.mrb[8].mxu0 %v8541_v37  ;;  %6958 = vmatpush3.bf16.msra.mxu1 %v7461_v43  ;;  %v7527_v43 = vld [vmem:[#allocation14 + $0x8] ss:$12 sps:$4 sm:$0xff]  }
  0xf5   :  { %811 = vmatpush1.bf16.msra.mxu0 %v7441_v40  ;;  %453 = vmatprep.mubr.bf16.mxu0 %v8283_v0  ;;  %v1318_v40 = vpack.c.bf16 %v1039_v38, %v1039_v38 }
  0xf6   :  { %812 = vmatprep.subr.bf16.mxu0 %v7447_v41  ;;  %6959 = vmatprep.subr.bf16.mxu1 %v7465_v46  ;;  %v7525_v41 = vld [vmem:[#allocation17 + $0x98] ss:$12 sps:$4 sm:$0xff]  }
  0xf8   :  { %6960 = vmatpush3.bf16.msra.mxu1 %v7465_v46  ;;  %v7530_v46 = vld [vmem:[#allocation14 + $0x50] ss:$12 sps:$4 sm:$0xff]  }
  0xf9   :  { %813 = vmatpush1.bf16.msra.mxu0 %v7445_v44  ;;  %6961 = vmatprep.subr.bf16.mxu1 %v7469_v49  ;;  %v7528_v44 = vld [vmem:[#allocation14 + $0x20] ss:$12 sps:$4 sm:$0xff]  }
  0xfa   :  { %814 = vmatprep.subr.bf16.mxu0 %v7452_v45  ;;  %v7529_v45 = vld [vmem:[#allocation14 + $0x38] ss:$12 sps:$4 sm:$0xff]  }
  0xfc   :  { %454 = vmatmul.mubr.bf16.gmra.mrb[12].mxu0 %v8546_v42  ;;  %6962 = vmatpush3.bf16.msra.mxu1 %v7469_v49  ;;  %v7533_v49 = vld [vmem:[#allocation14 + $0x98] ss:$12 sps:$4 sm:$0xff]  }
  0xfd   :  { %815 = vmatpush1.bf16.msra.mxu0 %v7450_v47  ;;  %834 = vmatprep.mubr.bf16.mxu0 %v8283_v0  ;;  %v7531_v47 = vld [vmem:[#allocation14 + $0x68] ss:$12 sps:$4 sm:$0xff]  }
  0xfe   :  { %816 = vmatprep.subr.bf16.mxu0 %v7456_v48  ;;  %6963 = vmatprep.subr.bf16.mxu1 %v7473_v52  ;;  %v7532_v48 = vld [vmem:[#allocation14 + $0x80] ss:$12 sps:$4 sm:$0xff]  }
 0x100   :  { %6964 = vmatpush3.bf16.msra.mxu1 %v7473_v52 }
 0x101   :  { %817 = vmatpush1.bf16.msra.mxu0 %v7454_v50  ;;  %6965 = vmatprep.subr.bf16.mxu1 %v7477_v55  ;;  %v7534_v50 = vld [vmem:[#allocation14 + $0xb0] ss:$12 sps:$4 sm:$0xff]  }
 0x102   :  { %1203 = vmatprep.subr.bf16.mxu0 %v8553_v51 }
 0x104   :  { %835 = vmatmul.mubr.bf16.vlgmr.msra.gmra.mrb[16].mxu0 %v8532_v15  ;;  %6966 = vmatpush3.bf16.msra.mxu1 %v7477_v55  ;;  %v7490_v15 = vld [vmem:[#allocation17] ss:$12 sps:$4 sm:$0xff]  }
 0x105   :  { %1204 = vmatpush1.bf16.msra.mxu0 %v8555_v53  ;;  %844 = vmatprep.mubr.bf16.mxu0 %v8283_v0 }
 0x106   :  { %1205 = vmatprep.subr.bf16.mxu0 %v8558_v54  ;;  %6975 = vmatprep.subr.bf16.mxu1 %v8284_v61 }
 0x107   :  { %6968 = vmatmul.mubr.bf16.vlgmr.msra.gmra.mrb[8].mxu1 %v8537_v32 }
 0x108   :  { %6976 = vmatpush3.bf16.msra.mxu1 %v7484_v60  ;;  %6971 = vmatprep.mubr.bf16.mxu1 %v8541_v37 }
 0x109   :  { %1206 = vmatpush1.bf16.msra.mxu0 %v8562_v56  ;;  %6977 = vmatprep.subr.bf16.mxu1 %v8284_v61 }
 0x10a   :  { %1207 = vmatprep.subr.bf16.mxu0 %v8566_v57 }
 0x10c   :  { %845 = vmatmul.mubr.bf16.gmra.mrb[20].mxu0 %v8537_v32  ;;  %6978 = vmatpush3.bf16.msra.mxu1 %v7488_v1  ;;  %v7515_v32 = vld [vmem:[#allocation17 + $0x94] ss:$12 sps:$4 sm:$0xff]  }
 0x10d   :  { %1208 = vmatpush1.bf16.msra.mxu0 %v8569_v58  ;;  %854 = vmatprep.mubr.bf16.mxu0 %v8283_v0 }
 0x10e   :  { %1209 = vmatprep.subr.bf16.mxu0 %v8572_v59  ;;  %6979 = vmatprep.subr.bf16.mxu1 %v8284_v61 }
 0x10f   :  { %6972 = vmatmul.mubr.bf16.gmra.mrb[12].mxu1 %v8546_v42 }
 0x110   :  { %6980 = vmatpush3.bf16.msra.mxu1 %v7489_v4  ;;  %6991 = vmatprep.mubr.msk.bf16.mxu1 %vm8285_vm0, %v8284_v61 }
 0x111   :  { %1210 = vmatpush1.bf16.msra.mxu0 %v8577_v62  ;;  %6981 = vmatprep.subr.bf16.mxu1 %v8284_v61 }
 0x112   :  { %1211 = vmatprep.subr.bf16.mxu0 %v8581_v63 }
 0x114   :  { %855 = vmatmul.mubr.bf16.gmra.mrb[24].mxu0 %v8541_v37  ;;  %6982 = vmatpush3.bf16.msra.mxu1 %v7493_v7  ;;  %v7517_v37 = vld [vmem:[#allocation17 + $0xa8] ss:$12 sps:$4 sm:$0xff]  }
 0x115   :  { %1212 = vmatpush1.bf16.msra.mxu0 %v8585_v2  ;;  %864 = vmatprep.mubr.bf16.mxu0 %v8283_v0 }
 0x116   :  { %1213 = vmatprep.subr.bf16.mxu0 %v8589_v3  ;;  %6983 = vmatprep.subr.bf16.mxu1 %v8284_v61 }
 0x118   :  { %6984 = vmatpush3.bf16.msra.mxu1 %v7497_v10 }
 0x119   :  { %1214 = vmatpush1.bf16.msra.mxu0 %v8592_v5  ;;  %6985 = vmatprep.subr.bf16.mxu1 %v8284_v61 }
 0x11a   :  { %1215 = vmatprep.subr.bf16.mxu0 %v8595_v6 }
 0x11c   :  { %865 = vmatmul.mubr.bf16.gmra.mrb[28].mxu0 %v8546_v42  ;;  %6986 = vmatpush3.bf16.msra.mxu1 %v7501_v14  ;;  %v7526_v42 = vld [vmem:[#allocation17 + $0xb0] ss:$12 sps:$4 sm:$0xff]  }
 0x11d   :  { %1216 = vmatpush1.bf16.msra.mxu0 %v8602_v8  ;;  %1235 = vmatprep.mubr.bf16.mxu0 %v8283_v0 }
 0x11e   :  { %1217 = vmatprep.subr.bf16.mxu0 %v8606_v9  ;;  %6987 = vmatprep.subr.bf16.mxu1 %v8284_v61 }
 0x120   :  { %6988 = vmatpush3.bf16.msra.mxu1 %v7505_v18 }
 0x121   :  { %1218 = vmatpush1.bf16.msra.mxu0 %v8611_v11  ;;  %6989 = vmatprep.subr.bf16.mxu1 %v8284_v61 }
 0x122   :  { %1479 = vmatprep.subr.bf16.mxu0 %v8614_v13 }
 0x124   :  { %1236 = vmatmul.mubr.bf16.vlgmr.msra.gmra.mrb[32].mxu0 %v1042_v16  ;;  %6990 = vmatpush3.bf16.msra.mxu1 %v7509_v21 }
 0x125   :  { %1480 = vmatpush1.bf16.msra.mxu0 %v7490_v15  ;;  %1511 = vmatprep.mubr.bf16.mxu0 %v8283_v0 }
 0x126   :  { %1481 = vmatprep.subr.bf16.mxu0 %v7496_v17  ;;  %6995 = vmatprep.subr.bf16.mxu1 %v8284_v61 }
 0x127   :  { %6992 = vmatmul.mubr.bf16.vlgmr.msra.gmra.mrb[16].mxu1 %v1042_v16 }
 0x128   :  { %6996 = vmatpush3.bf16.msra.mxu1 %v7516_v24  ;;  %7011 = vmatprep.mubr.msk.bf16.mxu1 %vm8285_vm0, %v8284_v61 }
 0x129   :  { %1482 = vmatpush1.bf16.msra.mxu0 %v7494_v19  ;;  %6997 = vmatprep.subr.bf16.mxu1 %v8284_v61 }
 0x12a   :  { %1483 = vmatprep.subr.bf16.mxu0 %v7500_v20 }
 0x12c   :  { %6998 = vmatpush3.bf16.msra.mxu1 %v7520_v27 }
 0x12d   :  { %1484 = vmatpush1.bf16.msra.mxu0 %v7498_v22  ;;  %6999 = vmatprep.subr.bf16.mxu1 %v8284_v61 }
 0x12e   :  { %1485 = vmatprep.subr.bf16.mxu0 %v7504_v23 }
 0x130   :  { %7000 = vmatpush3.bf16.msra.mxu1 %v7521_v30 }
 0x131   :  { %1486 = vmatpush1.bf16.msra.mxu0 %v7502_v25  ;;  %7001 = vmatprep.subr.bf16.mxu1 %v8284_v61 }
 0x132   :  { %1487 = vmatprep.subr.bf16.mxu0 %v7508_v26 }
 0x134   :  { %7002 = vmatpush3.bf16.msra.mxu1 %v7522_v33 }
 0x135   :  { %1488 = vmatpush1.bf16.msra.mxu0 %v7506_v28  ;;  %7003 = vmatprep.subr.bf16.mxu1 %v8284_v61 }
 0x136   :  { %1489 = vmatprep.subr.bf16.mxu0 %v7512_v29 }
 0x138   :  { %7004 = vmatpush3.bf16.msra.mxu1 %v7523_v36 }
 0x139   :  { %1490 = vmatpush1.bf16.msra.mxu0 %v7510_v31  ;;  %7005 = vmatprep.subr.bf16.mxu1 %v8284_v61 }
 0x13a   :  { %1491 = vmatprep.subr.bf16.mxu0 %v7515_v32 }
 0x13c   :  { %7006 = vmatpush3.bf16.msra.mxu1 %v7524_v39 }
 0x13d   :  { %1492 = vmatpush1.bf16.msra.mxu0 %v7513_v34  ;;  %7007 = vmatprep.subr.bf16.mxu1 %v8284_v61 }
 0x13e   :  { %1493 = vmatprep.subr.bf16.mxu0 %v7519_v35 }
 0x140   :  { %7008 = vmatpush3.bf16.msra.mxu1 %v7525_v41 }
 0x141   :  { %1494 = vmatpush1.bf16.msra.mxu0 %v7517_v37  ;;  %7009 = vmatprep.subr.bf16.mxu1 %v8284_v61 }
 0x142   :  { %1759 = vmatprep.subr.bf16.mxu0 %v8553_v51  ;;  %v9520_v51 = vlaneseq }
 0x144   :  { %1512 = vmatmul.mubr.bf16.vlgmr.msra.gmra.mrb[36].mxu0 %v1318_v40  ;;  %7010 = vmatpush3.bf16.msra.mxu1 %v7526_v42  ;;  %v8669_v52 = vshrl.u32 %v9520_v51, 7 }
 0x145   :  { %1760 = vmatpush1.bf16.msra.mxu0 %v8555_v53  ;;  %1791 = vmatprep.mubr.bf16.mxu0 %v8283_v0 }
 0x146   :  { %1761 = vmatprep.subr.bf16.mxu0 %v8558_v54  ;;  %7015 = vmatprep.subr.bf16.mxu1 %v8284_v61  ;;  %v8672_v53 = vsub.s32 0, %v8669_v52  ;;  %v222_v54 = vld [vmem:[%s9495_s6] sm:$0x7]  ;;  %v8678_v55 = vsub.s32 1, %v8669_v52 }
 0x147   :  { %7012 = vmatmul.mubr.bf16.vlgmr.msra.gmra.mrb[20].mxu1 %v1318_v40 }
 0x148   :  { %7031 = vmatprep.mubr.msk.bf16.mxu1 %vm8285_vm0, %v8284_v61  ;;  %7016 = vmatpush3.bf16.msra.mxu1 %v7527_v43 }
 0x149   :  { %1762 = vmatpush1.bf16.msra.mxu0 %v8562_v56  ;;  %7017 = vmatprep.subr.bf16.mxu1 %v8284_v61  ;;  %v8681_v56 = vrot.slane %v222_v54, %v8672_v53 }
 0x14a   :  { %1763 = vmatprep.subr.bf16.mxu0 %v8566_v57  ;;  %v8684_v57 = vrot.slane %v222_v54, %v8678_v55 }
 0x14c   :  { %7018 = vmatpush3.bf16.msra.mxu1 %v7528_v44 }
 0x14d   :  { %1764 = vmatpush1.bf16.msra.mxu0 %v8569_v58  ;;  %7019 = vmatprep.subr.bf16.mxu1 %v8284_v61 }
 0x14e   :  { %1765 = vmatprep.subr.bf16.mxu0 %v8572_v59 }
 0x150   :  { %7020 = vmatpush3.bf16.msra.mxu1 %v7529_v45 }
 0x151   :  { %1766 = vmatpush1.bf16.msra.mxu0 %v8577_v62  ;;  %7021 = vmatprep.subr.bf16.mxu1 %v8284_v61 }
 0x152   :  { %1767 = vmatprep.subr.bf16.mxu0 %v8581_v63 }
 0x154   :  { %7022 = vmatpush3.bf16.msra.mxu1 %v7530_v46 }
 0x155   :  { %1768 = vmatpush1.bf16.msra.mxu0 %v8585_v2  ;;  %7023 = vmatprep.subr.bf16.mxu1 %v8284_v61 }
 0x156   :  { %1769 = vmatprep.subr.bf16.mxu0 %v8589_v3  ;;  %v8690_v3 = vsub.s32 2, %v8669_v52 }
 0x158   :  { %7024 = vmatpush3.bf16.msra.mxu1 %v7531_v47  ;;  %v235_v7 = vrot.slane %v222_v54, %v8690_v3 }
 0x159   :  { %1770 = vmatpush1.bf16.msra.mxu0 %v8592_v5  ;;  %7025 = vmatprep.subr.bf16.mxu1 %v8284_v61 }
 0x15a   :  { %1771 = vmatprep.subr.bf16.mxu0 %v8595_v6 }
 0x15c   :  { %7026 = vmatpush3.bf16.msra.mxu1 %v7532_v48 }
 0x15d   :  { %1772 = vmatpush1.bf16.msra.mxu0 %v8602_v8  ;;  %7027 = vmatprep.subr.bf16.mxu1 %v8284_v61 }
 0x15e   :  { %1773 = vmatprep.subr.bf16.mxu0 %v8606_v9 }
 0x160   :  { %7028 = vmatpush3.bf16.msra.mxu1 %v7533_v49 }
 0x161   :  { %1774 = vmatpush1.bf16.msra.mxu0 %v8611_v11  ;;  %7029 = vmatprep.subr.bf16.mxu1 %v8284_v61 }
 0x162   :  { %2028 = vmatprep.subr.bf16.mxu0 %v8614_v13 }
 0x164   :  { %7030 = vmatpush3.bf16.msra.mxu1 %v7534_v50 }
 0x165   :  { %7035 = vmatprep.subr.bf16.mxu1 %v8284_v61 }
 0x1b7   :  { %v425_v58 = vpop.f32.mrb[0].mxu0 }
 0x1b8   :  { %v426_v59 = vadd.f32 %v425_v58, %v8681_v56  ;;  %v427_v60 = vpop.f32.mrb[1].mxu0 }
 0x1b9   :  { %v428_v62 = vadd.f32 %v427_v60, %v8684_v57  ;;  %v429_v63 = vpop.f32.mrb[2].mxu0 }
 0x1ba   :  { %v430_v1 = vadd.f32 %v429_v63, %v8681_v56  ;;  %v431_v2 = vpop.f32.mrb[3].mxu0  ;;  %v6945_v13 = vpop.f32.mrb[0].mxu1 }
 0x1bb   :  { %v8692_v4 = vpack.c.bf16 %v428_v62, %v426_v59  ;;  %v432_v5 = vadd.f32 %v431_v2, %v8684_v57  ;;  %v507_v16 = vadd.f32 %v6945_v13, %v235_v7  ;;  %v498_v17 = vpop.f32.mrb[1].mxu1 }
 0x1bc   :  { %v499_v20 = vadd.f32 %v498_v17, %v235_v7  ;;  %v6946_v21 = vpop.f32.mrb[2].mxu1 }
 0x1bd   :  { %v8695_v6 = vpack.c.bf16 %v432_v5, %v430_v1  ;;  %v6696_v22 = vpack.c.bf16 %v507_v16, %v507_v16  ;;  %v510_v23 = vadd.f32 %v6946_v21, %v235_v7  ;;  %v501_v24 = vpop.f32.mrb[3].mxu1  ;;  %v657_v1 = vld [vmem:[%s9499_s10] sm:$0x7] }
 0x1be   :  { %v6692_v26 = vpack.c.bf16 %v499_v20, %v499_v20  ;;  %v502_v27 = vadd.f32 %v501_v24, %v235_v7  ;;  %v670_v20 = vrot.slane %v657_v1, %v8690_v3 }
 0x1bf   :  { %v435_v8 = vpop.f32.mrb[4].mxu0  ;;  %614 = vst [vmem:[#allocation2 + $0x20] sm:$0xf] %v6696_v22  ;;  %v6698_v28 = vpack.c.bf16 %v510_v23, %v510_v23 }
 0x1c0   :  { %v436_v9 = vadd.f32 %v435_v8, %v8681_v56  ;;  %v437_v10 = vpop.f32.mrb[5].mxu0  ;;  %610 = vst [vmem:[#allocation2 + $0x8] sm:$0xf] %v6692_v26  ;;  %v6694_v30 = vpack.c.bf16 %v502_v27, %v502_v27 }
 0x1c1   :  { %v438_v11 = vadd.f32 %v437_v10, %v8684_v57  ;;  %v439_v12 = vpop.f32.mrb[6].mxu0  ;;  %616 = vst [vmem:[#allocation2 + $0x2c] sm:$0xf] %v6698_v28 }
 0x1c2   :  { %v440_v14 = vadd.f32 %v439_v12, %v8681_v56  ;;  %v441_v15 = vpop.f32.mrb[7].mxu0  ;;  %612 = vst [vmem:[#allocation2 + $0x14] sm:$0xf] %v6694_v30  ;;  %v6949_v35 = vpop.f32.mrb[4].mxu1 }
 0x1c3   :  { %v6695_v18 = vpack.c.bf16 %v438_v11, %v436_v9  ;;  %v442_v19 = vadd.f32 %v441_v15, %v8684_v57  ;;  %v523_v38 = vadd.f32 %v6949_v35, %v235_v7  ;;  %v514_v39 = vpop.f32.mrb[5].mxu1  ;;  %v8714_v9 = vrot.slane %v657_v1, %v8672_v53 }
 0x1c4   :  { %v515_v42 = vadd.f32 %v514_v39, %v235_v7  ;;  %v6950_v43 = vpop.f32.mrb[6].mxu1  ;;  %v8717_v11 = vrot.slane %v657_v1, %v8678_v55 }
 0x1c5   :  { %613 = vst [vmem:[#allocation2 + $0x18] sm:$0xff] %v6695_v18  ;;  %v6697_v25 = vpack.c.bf16 %v442_v19, %v440_v14  ;;  %v6704_v44 = vpack.c.bf16 %v523_v38, %v523_v38  ;;  %v526_v45 = vadd.f32 %v6950_v43, %v235_v7  ;;  %v517_v46 = vpop.f32.mrb[7].mxu1 }
 0x1c6   :  { %v6700_v48 = vpack.c.bf16 %v515_v42, %v515_v42  ;;  %v518_v49 = vadd.f32 %v517_v46, %v235_v7 }
 0x1c7   :  { %615 = vst [vmem:[#allocation2 + $0x24] sm:$0xff] %v6697_v25  ;;  %v445_v29 = vpop.f32.mrb[8].mxu0  ;;  %622 = vst [vmem:[#allocation2 + $0x50] sm:$0xf] %v6704_v44  ;;  %v6706_v50 = vpack.c.bf16 %v526_v45, %v526_v45 }
 0x1c8   :  { %v446_v31 = vadd.f32 %v445_v29, %v8681_v56  ;;  %v447_v32 = vpop.f32.mrb[9].mxu0  ;;  %618 = vst [vmem:[#allocation2 + $0x38] sm:$0xf] %v6700_v48  ;;  %v6702_v58 = vpack.c.bf16 %v518_v49, %v518_v49 }
 0x1c9   :  { %v448_v33 = vadd.f32 %v447_v32, %v8684_v57  ;;  %v449_v34 = vpop.f32.mrb[10].mxu0  ;;  %624 = vst [vmem:[#allocation2 + $0x5c] sm:$0xf] %v6706_v50 }
 0x1ca   :  { %v450_v36 = vadd.f32 %v449_v34, %v8681_v56  ;;  %v451_v37 = vpop.f32.mrb[11].mxu0  ;;  %620 = vst [vmem:[#allocation2 + $0x44] sm:$0xf] %v6702_v58 }
 0x1cb   :  { %v6699_v40 = vpack.c.bf16 %v448_v33, %v446_v31  ;;  %v452_v41 = vadd.f32 %v451_v37, %v8684_v57 }
 0x1cd   :  { %617 = vst [vmem:[#allocation2 + $0x30] sm:$0xff] %v6699_v40  ;;  %v6701_v47 = vpack.c.bf16 %v452_v41, %v450_v36 }
 0x1cf   :  { %619 = vst [vmem:[#allocation2 + $0x3c] sm:$0xff] %v6701_v47  ;;  %v455_v54 = vpop.f32.mrb[12].mxu0 }
 0x1d0   :  { %v456_v59 = vadd.f32 %v455_v54, %v8681_v56  ;;  %v457_v60 = vpop.f32.mrb[13].mxu0 }
 0x1d1   :  { %v458_v62 = vadd.f32 %v457_v60, %v8684_v57  ;;  %v459_v63 = vpop.f32.mrb[14].mxu0 }
 0x1d2   :  { %v460_v2 = vadd.f32 %v459_v63, %v8681_v56  ;;  %v461_v5 = vpop.f32.mrb[15].mxu0 }
 0x1d3   :  { %v6703_v7 = vpack.c.bf16 %v458_v62, %v456_v59  ;;  %v462_v8 = vadd.f32 %v461_v5, %v8684_v57 }
 0x1d5   :  { %621 = vst [vmem:[#allocation2 + $0x48] sm:$0xff] %v6703_v7  ;;  %v6705_v10 = vpack.c.bf16 %v462_v8, %v460_v2 }
 0x1d7   :  { %623 = vst [vmem:[#allocation2 + $0x54] sm:$0xff] %v6705_v10  ;;  %v836_v12 = vpop.f32.mrb[16].mxu0 }
 0x1d8   :  { %v837_v13 = vadd.f32 %v836_v12, %v8714_v9  ;;  %v838_v14 = vpop.f32.mrb[17].mxu0 }
 0x1d9   :  { %v839_v15 = vadd.f32 %v838_v14, %v8717_v11  ;;  %v840_v56 = vpop.f32.mrb[18].mxu0 }
 0x1da   :  { %v841_v16 = vadd.f32 %v840_v56, %v8714_v9  ;;  %v842_v17 = vpop.f32.mrb[19].mxu0  ;;  %v6969_v26 = vpop.f32.mrb[8].mxu1 }
 0x1db   :  { %v6707_v57 = vpack.c.bf16 %v839_v15, %v837_v13  ;;  %v843_v18 = vadd.f32 %v842_v17, %v8717_v11  ;;  %v918_v29 = vadd.f32 %v6969_v26, %v670_v20  ;;  %v909_v30 = vpop.f32.mrb[9].mxu1 }
 0x1dc   :  { %v910_v33 = vadd.f32 %v909_v30, %v670_v20  ;;  %v6970_v34 = vpop.f32.mrb[10].mxu1 }
 0x1dd   :  { %1020 = vst [vmem:[#allocation3] sm:$0xff] %v6707_v57  ;;  %v6709_v19 = vpack.c.bf16 %v843_v18, %v841_v16  ;;  %v6712_v35 = vpack.c.bf16 %v918_v29, %v918_v29  ;;  %v921_v36 = vadd.f32 %v6970_v34, %v670_v20  ;;  %v912_v37 = vpop.f32.mrb[11].mxu1 }
 0x1de   :  { %v6708_v39 = vpack.c.bf16 %v910_v33, %v910_v33  ;;  %v913_v40 = vadd.f32 %v912_v37, %v670_v20 }
 0x1df   :  { %1022 = vst [vmem:[#allocation3 + $0xc] sm:$0xff] %v6709_v19  ;;  %v846_v21 = vpop.f32.mrb[20].mxu0  ;;  %1025 = vst [vmem:[#allocation3 + $0x20] sm:$0xf] %v6712_v35  ;;  %v6714_v41 = vpack.c.bf16 %v921_v36, %v921_v36 }
 0x1e0   :  { %v847_v22 = vadd.f32 %v846_v21, %v8714_v9  ;;  %v848_v23 = vpop.f32.mrb[21].mxu0  ;;  %1021 = vst [vmem:[#allocation3 + $0x8] sm:$0xf] %v6708_v39  ;;  %v6710_v43 = vpack.c.bf16 %v913_v40, %v913_v40  ;;  %v8746_v39 = vld [vmem:[#allocation2 + $0x8] ss:$12 sps:$4 sm:$0xff]  }
 0x1e1   :  { %v849_v24 = vadd.f32 %v848_v23, %v8717_v11  ;;  %v850_v25 = vpop.f32.mrb[22].mxu0  ;;  %1027 = vst [vmem:[#allocation3 + $0x2c] sm:$0xf] %v6714_v41  ;;  %v1286_v41 = vunpack.c.l.bf16 %v8746_v39 }
 0x1e2   :  { %v851_v27 = vadd.f32 %v850_v25, %v8714_v9  ;;  %v852_v28 = vpop.f32.mrb[23].mxu0  ;;  %1023 = vst [vmem:[#allocation3 + $0x14] sm:$0xf] %v6710_v43  ;;  %v6973_v48 = vpop.f32.mrb[12].mxu1 }
 0x1e3   :  { %v6711_v31 = vpack.c.bf16 %v849_v24, %v847_v22  ;;  %v853_v32 = vadd.f32 %v852_v28, %v8717_v11  ;;  %v934_v54 = vadd.f32 %v6973_v48, %v670_v20  ;;  %v925_v58 = vpop.f32.mrb[13].mxu1  ;;  %v1284_v22 = vunpack.c.l.bf16 %v8692_v4 }
 0x1e4   :  { %v926_v62 = vadd.f32 %v925_v58, %v670_v20  ;;  %v6974_v63 = vpop.f32.mrb[14].mxu1  ;;  %v1285_v24 = vunpack.c.h.bf16 %v8692_v4  ;;  %v8743_v4 = vld [vmem:[%s9496_s7] ss:$0 sm:$0xff] }
 0x1e5   :  { %1024 = vst [vmem:[#allocation3 + $0x18] sm:$0xff] %v6711_v31  ;;  %v6713_v38 = vpack.c.bf16 %v853_v32, %v851_v27  ;;  %v6720_v1 = vpack.c.bf16 %v934_v54, %v934_v54  ;;  %v937_v2 = vadd.f32 %v6974_v63, %v670_v20  ;;  %v928_v5 = vpop.f32.mrb[15].mxu1 }
 0x1e6   :  { %v6716_v8 = vpack.c.bf16 %v926_v62, %v926_v62  ;;  %v929_v10 = vadd.f32 %v928_v5, %v670_v20 }
 0x1e7   :  { %1026 = vst [vmem:[#allocation3 + $0x24] sm:$0xff] %v6713_v38  ;;  %v856_v42 = vpop.f32.mrb[24].mxu0  ;;  %1033 = vst [vmem:[#allocation3 + $0x50] sm:$0xf] %v6720_v1  ;;  %v6722_v12 = vpack.c.bf16 %v937_v2, %v937_v2 }
 0x1e8   :  { %v857_v44 = vadd.f32 %v856_v42, %v8714_v9  ;;  %v858_v45 = vpop.f32.mrb[25].mxu0  ;;  %1029 = vst [vmem:[#allocation3 + $0x38] sm:$0xf] %v6716_v8  ;;  %v6718_v14 = vpack.c.bf16 %v929_v10, %v929_v10 }
 0x1e9   :  { %v859_v46 = vadd.f32 %v858_v45, %v8717_v11  ;;  %v860_v47 = vpop.f32.mrb[26].mxu0  ;;  %1035 = vst [vmem:[#allocation3 + $0x5c] sm:$0xf] %v6722_v12 }
 0x1ea   :  { %v861_v49 = vadd.f32 %v860_v47, %v8714_v9  ;;  %v862_v50 = vpop.f32.mrb[27].mxu0  ;;  %1031 = vst [vmem:[#allocation3 + $0x44] sm:$0xf] %v6718_v14 }
 0x1eb   :  { %v6715_v59 = vpack.c.bf16 %v859_v46, %v857_v44  ;;  %v863_v60 = vadd.f32 %v862_v50, %v8717_v11 }
 0x1ed   :  { %1028 = vst [vmem:[#allocation3 + $0x30] sm:$0xff] %v6715_v59  ;;  %v6717_v7 = vpack.c.bf16 %v863_v60, %v861_v49 }
 0x1ef   :  { %1030 = vst [vmem:[#allocation3 + $0x3c] sm:$0xff] %v6717_v7  ;;  %v866_v13 = vpop.f32.mrb[28].mxu0  ;;  %v7947_v7 = vld [vmem:[#allocation11] sm:$0xff] }
 0x1f0   :  { %v867_v15 = vadd.f32 %v866_v13, %v8714_v9  ;;  %v868_v56 = vpop.f32.mrb[29].mxu0 }
 0x1f1   :  { %v869_v16 = vadd.f32 %v868_v56, %v8717_v11  ;;  %v870_v17 = vpop.f32.mrb[30].mxu0 }
 0x1f2   :  { %v871_v57 = vadd.f32 %v870_v17, %v8714_v9  ;;  %v872_v18 = vpop.f32.mrb[31].mxu0  ;;  %v7948_v17 = vld [vmem:[#allocation17] ss:$12 sps:$4 sm:$0xff]  }
 0x1f3   :  { %v8735_v19 = vpack.c.bf16 %v869_v16, %v867_v15  ;;  %v873_v20 = vadd.f32 %v872_v18, %v8717_v11  ;;  %v7535_v15 = vld [vmem:[#allocation17 + $0x8] ss:$12 sps:$4 sm:$0xff]  }
 0x1f4   :  { %v7949_v18 = vld [vmem:[#allocation17 + $0x1c] ss:$12 sps:$4 sm:$0xff]  }
 0x1f5   :  { %v6721_v21 = vpack.c.bf16 %v873_v20, %v871_v57  ;;  %v7536_v57 = vld [vmem:[#allocation17 + $0x20] ss:$12 sps:$4 sm:$0xff]  }
 0x1f7   :  { %v1237_v23 = vpop.f32.mrb[32].mxu0  ;;  %v1560_v44 = vunpack.c.l.bf16 %v6721_v21  ;;  %v1561_v46 = vunpack.c.h.bf16 %v6721_v21  ;;  %v8760_v21 = vld [vmem:[%s9500_s11] ss:$0 sm:$0xff] }
 0x1f8   :  { %v1287_v25 = vadd.f32 %v1284_v22, %v1237_v23  ;;  %v1239_v26 = vpop.f32.mrb[33].mxu0  ;;  %v7950_v22 = vld [vmem:[#allocation17 + $0x18] ss:$12 sps:$4 sm:$0xff]  }
 0x1f9   :  { %v1294_v27 = vadd.f32 %v1285_v24, %v1239_v26  ;;  %v1241_v28 = vpop.f32.mrb[34].mxu0  ;;  %v7537_v23 = vld [vmem:[#allocation17 + $0x38] ss:$12 sps:$4 sm:$0xff]   ;;  %v7951_v24 = vld [vmem:[#allocation17 + $0x34] ss:$12 sps:$4 sm:$0xff]  }
 0x1fa   :  { %v6260_v29 = vmul.f32 -1.442695, %v1287_v25  ;;  %v1242_v30 = vpop.f32.mrb[35].mxu0  ;;  %v1278_v9 = vpop.f32.mrb[16].mxu1  ;;  %v7952_v28 = vld [vmem:[#allocation17 + $0x30] ss:$12 sps:$4 sm:$0xff]  }
 0x1fb   :  { %v6261_v31 = vmul.f32 -1.442695, %v1294_v27  ;;  %v6993_v32 = vpop.f32.mrb[17].mxu1  ;;  %v1307_v38 = vadd.f32 %v8743_v4, %v1278_v9  ;;  %v8764_v27 = vld [vmem:[#allocation3 + $0x50] ss:$12 sps:$4 sm:$0xff]  }
 0x1fc   :  { %7767 = vpow2.f32 %v6260_v29  ;;  %v1281_v33 = vpop.f32.mrb[18].mxu1  ;;  %v7538_v29 = vld [vmem:[#allocation17 + $0x50] ss:$12 sps:$4 sm:$0xff]   ;;  %v1562_v9 = vunpack.c.h.bf16 %v8764_v27 }
 0x1fd   :  { %7769 = vpow2.f32 %v6261_v31  ;;  %v6994_v34 = vpop.f32.mrb[19].mxu1  ;;  %v7953_v31 = vld [vmem:[#allocation17 + $0x4c] ss:$12 sps:$4 sm:$0xff]  }
 0x1fe   :  { %v7954_v34 = vld [vmem:[#allocation17 + $0x48] ss:$12 sps:$4 sm:$0xff]  }
 0x206   :  { %v7768_v11 = vpop.eup %7767 }
 0x207   :  { %v1291_v35 = vadd.f32 1.0, %v7768_v11  ;;  %v7770_v36 = vpop.eup %7769  ;;  %v7539_v11 = vld [vmem:[#allocation17 + $0x68] ss:$12 sps:$4 sm:$0xff]  }
 0x208   :  { %v1298_v37 = vadd.f32 1.0, %v7770_v36  ;;  %v7956_v36 = vld [vmem:[#allocation17 + $0x60] ss:$12 sps:$4 sm:$0xff]  }
 0x209   :  { %7771 = vrcp.f32 %v1291_v35  ;;  %v7955_v35 = vld [vmem:[#allocation17 + $0x64] ss:$12 sps:$4 sm:$0xff]  }
 0x20a   :  { %7773 = vrcp.f32 %v1298_v37  ;;  %v7540_v37 = vld [vmem:[#allocation17 + $0x80] ss:$12 sps:$4 sm:$0xff]  }
 0x213   :  { %v7772_v40 = vpop.eup %7771 }
 0x214   :  { %v1308_v42 = vmul.f32 %v7772_v40, %v1307_v38  ;;  %v7774_v59 = vpop.eup %7773  ;;  %v7957_v38 = vld [vmem:[#allocation17 + $0x7c] ss:$12 sps:$4 sm:$0xff]  }
 0x215   :  { %v1311_v62 = vsub.f32 1.0, %v7774_v59  ;;  %v1313_v8 = vmul.f32 %v7947_v7, %v7774_v59  ;;  %v7963_v59 = vld [vmem:[#allocation17 + $0xa8] ss:$12 sps:$4 sm:$0xff]   ;;  %v7550_v7 = vld [vmem:[#allocation14 + $0x20] ss:$12 sps:$4 sm:$0xff]  }
 0x216   :  { %v1309_v43 = vadd.f32 %v1308_v42, %v1286_v41  ;;  %v7958_v41 = vld [vmem:[#allocation17 + $0x78] ss:$12 sps:$4 sm:$0xff]  }
 0x217   :  { %v1513_v45 = vpop.f32.mrb[36].mxu0  ;;  %v7541_v42 = vld [vmem:[#allocation17 + $0x98] ss:$12 sps:$4 sm:$0xff]  }
 0x218   :  { %7775 = vtanh.f32 %v1309_v43  ;;  %v1563_v47 = vadd.f32 %v1560_v44, %v1513_v45  ;;  %v1515_v48 = vpop.f32.mrb[37].mxu0  ;;  %v7959_v43 = vld [vmem:[#allocation17 + $0x94] ss:$12 sps:$4 sm:$0xff]  }
 0x219   :  { %v1570_v49 = vadd.f32 %v1561_v46, %v1515_v48  ;;  %v1517_v50 = vpop.f32.mrb[38].mxu0  ;;  %v7960_v46 = vld [vmem:[#allocation17 + $0x90] ss:$12 sps:$4 sm:$0xff]   ;;  %v7961_v48 = vld [vmem:[#allocation17 + $0xac] ss:$12 sps:$4 sm:$0xff]  }
 0x21a   :  { %v6287_v54 = vmul.f32 -1.442695, %v1563_v47  ;;  %v1518_v58 = vpop.f32.mrb[39].mxu0  ;;  %v1554_v63 = vpop.f32.mrb[20].mxu1  ;;  %v7542_v47 = vld [vmem:[#allocation17 + $0xb0] ss:$12 sps:$4 sm:$0xff]  }
 0x21b   :  { %v6288_v60 = vmul.f32 -1.442695, %v1570_v49  ;;  %v7013_v2 = vpop.f32.mrb[21].mxu1  ;;  %v1583_v26 = vadd.f32 %v8760_v21, %v1554_v63  ;;  %v7962_v50 = vld [vmem:[%s9533_s24] sm:$0xff]  ;;  %v8785_v63 = vld [vmem:[#allocation14] ss:$12 sps:$4 sm:$0xff]  }
 0x21c   :  { %7777 = vpow2.f32 %v6287_v54  ;;  %v1557_v10 = vpop.f32.mrb[22].mxu1  ;;  %v8789_v2 = vld [vmem:[#allocation14 + $0x1c] ss:$12 sps:$4 sm:$0xff]  }
 0x21d   :  { %7779 = vpow2.f32 %v6288_v60  ;;  %v7014_v12 = vpop.f32.mrb[23].mxu1  ;;  %v8799_v10 = vld [vmem:[#allocation14 + $0x30] ss:$12 sps:$4 sm:$0xff]  }
 0x21e   :  { %v7554_v12 = vld [vmem:[#allocation14 + $0x38] ss:$12 sps:$4 sm:$0xff]  }
 0x222   :  { %v7776_v1 = vpop.eup %7775 }
 0x223   :  { %v1312_v5 = vmul.f32 %v7776_v1, %v1311_v62  ;;  %v8783_v62 = vld [vmem:[#allocation14 + $0x4] ss:$12 sps:$4 sm:$0xff]   ;;  %v7546_v1 = vld [vmem:[#allocation14 + $0x8] ss:$12 sps:$4 sm:$0xff]  }
 0x225   :  { %v8749_v13 = vadd.f32 %v1313_v8, %v1312_v5  ;;  %v8792_v5 = vld [vmem:[#allocation14 + $0x18] ss:$12 sps:$4 sm:$0xff]   ;;  %v8796_v8 = vld [vmem:[#allocation14 + $0x34] ss:$12 sps:$4 sm:$0xff]  }
 0x226   :  { %v7778_v14 = vpop.eup %7777 }
 0x227   :  { %v1567_v56 = vadd.f32 1.0, %v7778_v14  ;;  %v1591_v16 = vpack.c.bf16 %v8749_v13, %v8749_v13  ;;  %v7780_v20 = vpop.eup %7779  ;;  %v8803_v14 = vld [vmem:[#allocation14 + $0x4c] ss:$12 sps:$4 sm:$0xff]  }
 0x228   :  { %v1574_v25 = vadd.f32 1.0, %v7780_v20  ;;  %v8820_v20 = vld [vmem:[#allocation14 + $0x78] ss:$12 sps:$4 sm:$0xff]  }
 0x229   :  { %7781 = vrcp.f32 %v1567_v56  ;;  %1592 = vst [vmem:[#allocation4] sm:$0xf] %v1591_v16  ;;  %1792 = vmatmul.mubr.bf16.vlgmr.msra.gmra.mrb[40].mxu0 %v1591_v16  ;;  %7032 = vmatmul.mubr.bf16.vlgmr.msra.gmra.mrb[24].mxu1 %v1591_v16  ;;  %v7558_v56 = vld [vmem:[#allocation14 + $0x50] ss:$12 sps:$4 sm:$0xff]  }
 0x22a   :  { %2029 = vmatpush1.bf16.msra.mxu0 %v7948_v17  ;;  %7036 = vmatpush3.bf16.msra.mxu1 %v7535_v15  ;;  %7783 = vrcp.f32 %v1574_v25  ;;  %v8806_v15 = vld [vmem:[#allocation14 + $0x48] ss:$12 sps:$4 sm:$0xff]   ;;  %v8810_v16 = vld [vmem:[#allocation14 + $0x64] ss:$12 sps:$4 sm:$0xff]   ;;  %v8813_v17 = vld [vmem:[#allocation14 + $0x60] ss:$12 sps:$4 sm:$0xff]  }
 0x22b   :  { %2030 = vmatprep.subr.bf16.mxu0 %v7949_v18  ;;  %7037 = vmatprep.subr.bf16.mxu1 %v8284_v61  ;;  %v8817_v18 = vld [vmem:[#allocation14 + $0x7c] ss:$12 sps:$4 sm:$0xff]   ;;  %v7570_v25 = vld [vmem:[#allocation14 + $0x98] ss:$12 sps:$4 sm:$0xff]  }
 0x22c   :  { %2060 = vmatprep.mubr.bf16.mxu0 %v8283_v0  ;;  %7051 = vmatprep.mubr.msk.bf16.mxu1 %vm8285_vm0, %v8284_v61 }
 0x22e   :  { %2031 = vmatpush1.bf16.msra.mxu0 %v7950_v22  ;;  %7038 = vmatpush3.bf16.msra.mxu1 %v7536_v57  ;;  %v7562_v57 = vld [vmem:[#allocation14 + $0x68] ss:$12 sps:$4 sm:$0xff]   ;;  %v7566_v22 = vld [vmem:[#allocation14 + $0x80] ss:$12 sps:$4 sm:$0xff]  }
 0x22f   :  { %2032 = vmatprep.subr.bf16.mxu0 %v7951_v24  ;;  %7039 = vmatprep.subr.bf16.mxu1 %v8284_v61  ;;  %v8827_v24 = vld [vmem:[#allocation14 + $0x90] ss:$12 sps:$4 sm:$0xff]  }
 0x232   :  { %2033 = vmatpush1.bf16.msra.mxu0 %v7952_v28  ;;  %7040 = vmatpush3.bf16.msra.mxu1 %v7537_v23  ;;  %v8824_v23 = vld [vmem:[#allocation14 + $0x94] ss:$12 sps:$4 sm:$0xff]  }
 0x233   :  { %v7782_v30 = vpop.eup %7781  ;;  %2034 = vmatprep.subr.bf16.mxu0 %v7953_v31  ;;  %7041 = vmatprep.subr.bf16.mxu1 %v8284_v61  ;;  %v8834_v28 = vld [vmem:[#allocation14 + $0xa8] ss:$12 sps:$4 sm:$0xff]   ;;  %v1840_v31 = vunpack.c.l.bf16 %v8695_v6 }
 0x234   :  { %v1584_v32 = vmul.f32 %v7782_v30, %v1583_v26  ;;  %v7784_v40 = vpop.eup %7783  ;;  %v8831_v26 = vld [vmem:[#allocation14 + $0xac] ss:$12 sps:$4 sm:$0xff]   ;;  %v8838_v30 = vld [vmem:[#allocation17 + $0x4] ss:$12 sps:$4 sm:$0xff]  }
 0x235   :  { %v1587_v44 = vsub.f32 1.0, %v7784_v40  ;;  %v1589_v54 = vmul.f32 %v7962_v50, %v7784_v40 }
 0x236   :  { %v1585_v33 = vadd.f32 %v1584_v32, %v1562_v9  ;;  %2035 = vmatpush1.bf16.msra.mxu0 %v7954_v34  ;;  %7042 = vmatpush3.bf16.msra.mxu1 %v7538_v29  ;;  %v7574_v29 = vld [vmem:[#allocation14 + $0xb0] ss:$12 sps:$4 sm:$0xff]  }
 0x237   :  { %2036 = vmatprep.subr.bf16.mxu0 %v7955_v35  ;;  %7043 = vmatprep.subr.bf16.mxu1 %v8284_v61 }
 0x238   :  { %7785 = vtanh.f32 %v1585_v33  ;;  %v1841_v33 = vunpack.c.h.bf16 %v8695_v6 }
 0x23a   :  { %2037 = vmatpush1.bf16.msra.mxu0 %v7956_v36  ;;  %7044 = vmatpush3.bf16.msra.mxu1 %v7539_v11 }
 0x23b   :  { %2038 = vmatprep.subr.bf16.mxu0 %v7957_v38  ;;  %7045 = vmatprep.subr.bf16.mxu1 %v8284_v61 }
 0x23e   :  { %2039 = vmatpush1.bf16.msra.mxu0 %v7958_v41  ;;  %7046 = vmatpush3.bf16.msra.mxu1 %v7540_v37 }
 0x23f   :  { %2040 = vmatprep.subr.bf16.mxu0 %v7959_v43  ;;  %7047 = vmatprep.subr.bf16.mxu1 %v8284_v61 }
 0x242   :  { %v7786_v45 = vpop.eup %7785  ;;  %2041 = vmatpush1.bf16.msra.mxu0 %v7960_v46  ;;  %7048 = vmatpush3.bf16.msra.mxu1 %v7541_v42 }
 0x243   :  { %2042 = vmatprep.subr.bf16.mxu0 %v7961_v48  ;;  %7049 = vmatprep.subr.bf16.mxu1 %v8284_v61  ;;  %v1588_v49 = vmul.f32 %v7786_v45, %v1587_v44 }
 0x245   :  { %v8775_v58 = vadd.f32 %v1589_v54, %v1588_v49  ;;  %v1842_v49 = vunpack.c.h.bf16 %v8746_v39 }
 0x246   :  { %2043 = vmatpush1.bf16.msra.mxu0 %v7963_v59  ;;  %7050 = vmatpush3.bf16.msra.mxu1 %v7542_v47  ;;  %v2109_v59 = vunpack.c.l.bf16 %v8735_v19 }
 0x247   :  { %v1593_v60 = vpack.c.bf16 %v8775_v58, %v8775_v58  ;;  %7055 = vmatprep.subr.bf16.mxu1 %v8284_v61  ;;  %2303 = vmatprep.subr.bf16.mxu0 %v8783_v62 }
 0x249   :  { %1595 = vst [vmem:[#allocation5 + $0x1c] sm:$0xf] %v1593_v60  ;;  %2061 = vmatmul.mubr.bf16.vlgmr.msra.gmra.mrb[44].mxu0 %v1593_v60  ;;  %7052 = vmatmul.mubr.bf16.vlgmr.msra.gmra.mrb[28].mxu1 %v1593_v60 }
 0x24a   :  { %2335 = vmatprep.mubr.bf16.mxu0 %v8283_v0  ;;  %7071 = vmatprep.mubr.msk.bf16.mxu1 %vm8285_vm0, %v8284_v61 }
 0x24b   :  { %2304 = vmatpush1.bf16.msra.mxu0 %v8785_v63  ;;  %7056 = vmatpush3.bf16.msra.mxu1 %v7546_v1 }
 0x24c   :  { %7057 = vmatprep.subr.bf16.mxu1 %v8284_v61  ;;  %2305 = vmatprep.subr.bf16.mxu0 %v8789_v2 }
 0x24f   :  { %2306 = vmatpush1.bf16.msra.mxu0 %v8792_v5  ;;  %7058 = vmatpush3.bf16.msra.mxu1 %v7550_v7  ;;  %v2110_v7 = vunpack.c.h.bf16 %v8735_v19 }
 0x250   :  { %7059 = vmatprep.subr.bf16.mxu1 %v8284_v61  ;;  %2307 = vmatprep.subr.bf16.mxu0 %v8796_v8 }
 0x253   :  { %2308 = vmatpush1.bf16.msra.mxu0 %v8799_v10  ;;  %7060 = vmatpush3.bf16.msra.mxu1 %v7554_v12 }
 0x254   :  { %7061 = vmatprep.subr.bf16.mxu1 %v8284_v61  ;;  %2309 = vmatprep.subr.bf16.mxu0 %v8803_v14 }
 0x257   :  { %2310 = vmatpush1.bf16.msra.mxu0 %v8806_v15  ;;  %7062 = vmatpush3.bf16.msra.mxu1 %v7558_v56 }
 0x258   :  { %7063 = vmatprep.subr.bf16.mxu1 %v8284_v61  ;;  %2311 = vmatprep.subr.bf16.mxu0 %v8810_v16 }
 0x25b   :  { %2312 = vmatpush1.bf16.msra.mxu0 %v8813_v17  ;;  %7064 = vmatpush3.bf16.msra.mxu1 %v7562_v57 }
 0x25c   :  { %7065 = vmatprep.subr.bf16.mxu1 %v8284_v61  ;;  %2313 = vmatprep.subr.bf16.mxu0 %v8817_v18 }
 0x25f   :  { %2314 = vmatpush1.bf16.msra.mxu0 %v8820_v20  ;;  %7066 = vmatpush3.bf16.msra.mxu1 %v7566_v22 }
 0x260   :  { %7067 = vmatprep.subr.bf16.mxu1 %v8284_v61  ;;  %2315 = vmatprep.subr.bf16.mxu0 %v8824_v23 }
 0x263   :  { %2316 = vmatpush1.bf16.msra.mxu0 %v8827_v24  ;;  %7068 = vmatpush3.bf16.msra.mxu1 %v7570_v25 }
 0x264   :  { %7069 = vmatprep.subr.bf16.mxu1 %v8284_v61  ;;  %2317 = vmatprep.subr.bf16.mxu0 %v8831_v26 }
 0x267   :  { %2318 = vmatpush1.bf16.msra.mxu0 %v8834_v28  ;;  %7070 = vmatpush3.bf16.msra.mxu1 %v7574_v29 }
 0x268   :  { %7075 = vmatprep.subr.bf16.mxu1 %v8284_v61  ;;  %2572 = vmatprep.subr.bf16.mxu0 %v8838_v30 }
 0x2fc   :  { %v1793_v9 = vpop.f32.mrb[40].mxu0  ;;  %v1834_v32 = vpop.f32.mrb[24].mxu1 }
 0x2fd   :  { %v1843_v34 = vadd.f32 %v1840_v31, %v1793_v9  ;;  %v1795_v11 = vpop.f32.mrb[41].mxu0  ;;  %v7033_v35 = vpop.f32.mrb[25].mxu1  ;;  %v1857_v48 = vadd.f32 %v8743_v4, %v1834_v32 }
 0x2fe   :  { %v1850_v36 = vadd.f32 %v1841_v33, %v1795_v11  ;;  %v1797_v37 = vpop.f32.mrb[42].mxu0  ;;  %v1837_v38 = vpop.f32.mrb[26].mxu1 }
 0x2ff   :  { %v6314_v40 = vmul.f32 -1.442695, %v1843_v34  ;;  %v1798_v41 = vpop.f32.mrb[43].mxu0  ;;  %v7034_v42 = vpop.f32.mrb[27].mxu1  ;;  %v8851_v38 = vld [vmem:[#allocation17] ss:$12 sps:$4 sm:$0xff]  }
 0x300   :  { %v6315_v43 = vmul.f32 -1.442695, %v1850_v36 }
 0x301   :  { %7787 = vpow2.f32 %v6314_v40  ;;  %v7578_v40 = vld [vmem:[#allocation17 + $0x8] ss:$12 sps:$4 sm:$0xff]  }
 0x302   :  { %7789 = vpow2.f32 %v6315_v43  ;;  %v8855_v43 = vld [vmem:[#allocation17 + $0x1c] ss:$12 sps:$4 sm:$0xff]  }
 0x30b   :  { %v7788_v44 = vpop.eup %7787 }
 0x30c   :  { %v1847_v45 = vadd.f32 1.0, %v7788_v44  ;;  %v7790_v46 = vpop.eup %7789  ;;  %v7582_v44 = vld [vmem:[#allocation17 + $0x20] ss:$12 sps:$4 sm:$0xff]  }
 0x30d   :  { %v1854_v47 = vadd.f32 1.0, %v7790_v46 }
 0x30e   :  { %7791 = vrcp.f32 %v1847_v45  ;;  %v8862_v45 = vld [vmem:[#allocation17 + $0x34] ss:$12 sps:$4 sm:$0xff]  }
 0x30f   :  { %7793 = vrcp.f32 %v1854_v47  ;;  %v8868_v47 = vld [vmem:[#allocation17 + $0x30] ss:$12 sps:$4 sm:$0xff]  }
 0x318   :  { %v7792_v6 = vpop.eup %7791 }
 0x319   :  { %v1858_v50 = vmul.f32 %v7792_v6, %v1857_v48  ;;  %v7794_v39 = vpop.eup %7793  ;;  %v7586_v48 = vld [vmem:[#allocation17 + $0x38] ss:$12 sps:$4 sm:$0xff]  }
 0x31a   :  { %v1861_v34 = vsub.f32 1.0, %v7794_v39  ;;  %v1863_v36 = vmul.f32 %v7794_v39, %v8749_v13  ;;  %v8858_v13 = vld [vmem:[#allocation17 + $0x18] ss:$12 sps:$4 sm:$0xff]  }
 0x31b   :  { %v1859_v54 = vadd.f32 %v1858_v50, %v1842_v49  ;;  %v8872_v6 = vld [vmem:[#allocation17 + $0x4c] ss:$12 sps:$4 sm:$0xff]  }
 0x31c   :  { %v2062_v60 = vpop.f32.mrb[44].mxu0  ;;  %v2103_v1 = vpop.f32.mrb[28].mxu1  ;;  %v7602_v39 = vld [vmem:[#allocation17 + $0x98] ss:$12 sps:$4 sm:$0xff]  }
 0x31d   :  { %7795 = vtanh.f32 %v1859_v54  ;;  %v2112_v12 = vadd.f32 %v2109_v59, %v2062_v60  ;;  %v2064_v56 = vpop.f32.mrb[45].mxu0  ;;  %v7053_v57 = vpop.f32.mrb[29].mxu1  ;;  %v2126_v50 = vadd.f32 %v8760_v21, %v2103_v1  ;;  %v8876_v54 = vld [vmem:[#allocation17 + $0x48] ss:$12 sps:$4 sm:$0xff]   ;;  %v7590_v59 = vld [vmem:[#allocation17 + $0x50] ss:$12 sps:$4 sm:$0xff]  }
 0x31e   :  { %v2119_v22 = vadd.f32 %v2110_v7, %v2064_v56  ;;  %v2066_v25 = vpop.f32.mrb[46].mxu0  ;;  %v2106_v29 = vpop.f32.mrb[30].mxu1  ;;  %v8880_v7 = vld [vmem:[#allocation17 + $0x64] ss:$12 sps:$4 sm:$0xff]   ;;  %v8884_v1 = vld [vmem:[#allocation17 + $0x60] ss:$12 sps:$4 sm:$0xff]  }
 0x31f   :  { %v6340_v31 = vmul.f32 -1.442695, %v2112_v12  ;;  %v2067_v9 = vpop.f32.mrb[47].mxu0  ;;  %v7054_v32 = vpop.f32.mrb[31].mxu1  ;;  %v2111_v12 = vunpack.c.l.bf16 %v8764_v27  ;;  %v8888_v25 = vld [vmem:[#allocation17 + $0x7c] ss:$12 sps:$4 sm:$0xff]  }
 0x320   :  { %v6341_v33 = vmul.f32 -1.442695, %v2119_v22  ;;  %v7594_v22 = vld [vmem:[#allocation17 + $0x68] ss:$12 sps:$4 sm:$0xff]   ;;  %v8891_v27 = vld [vmem:[#allocation17 + $0x78] ss:$12 sps:$4 sm:$0xff]  }
 0x321   :  { %7797 = vpow2.f32 %v6340_v31  ;;  %v7598_v29 = vld [vmem:[#allocation17 + $0x80] ss:$12 sps:$4 sm:$0xff]   ;;  %v8898_v32 = vld [vmem:[#allocation17 + $0x90] ss:$12 sps:$4 sm:$0xff]  }
 0x322   :  { %7799 = vpow2.f32 %v6341_v33  ;;  %v8895_v31 = vld [vmem:[#allocation17 + $0x94] ss:$12 sps:$4 sm:$0xff]   ;;  %v8902_v33 = vld [vmem:[#allocation17 + $0xac] ss:$12 sps:$4 sm:$0xff]  }
 0x327   :  { %v7796_v11 = vpop.eup %7795 }
 0x328   :  { %v1862_v35 = vmul.f32 %v7796_v11, %v1861_v34 }
 0x32a   :  { %v8849_v19 = vadd.f32 %v1863_v36, %v1862_v35  ;;  %v8905_v35 = vld [vmem:[#allocation17 + $0xa8] ss:$12 sps:$4 sm:$0xff]   ;;  %v7606_v36 = vld [vmem:[#allocation17 + $0xb0] ss:$12 sps:$4 sm:$0xff]  }
 0x32b   :  { %v7798_v37 = vpop.eup %7797 }
 0x32c   :  { %v2116_v41 = vadd.f32 1.0, %v7798_v37  ;;  %v2134_v42 = vpack.c.bf16 %v8849_v19, %v8849_v19  ;;  %v7800_v46 = vpop.eup %7799 }
 0x32d   :  { %v2123_v49 = vadd.f32 1.0, %v7800_v46  ;;  %v7609_v46 = vld [vmem:[#allocation14 + $0x38] ss:$12 sps:$4 sm:$0xff]  }
 0x32e   :  { %7801 = vrcp.f32 %v2116_v41  ;;  %2136 = vst [vmem:[#allocation4 + $0x4] sm:$0xf] %v2134_v42  ;;  %2336 = vmatmul.mubr.bf16.vlgmr.msra.gmra.mrb[48].mxu0 %v2134_v42  ;;  %7072 = vmatmul.mubr.bf16.vlgmr.msra.gmra.mrb[32].mxu1 %v2134_v42 }
 0x32f   :  { %2573 = vmatpush1.bf16.msra.mxu0 %v8851_v38  ;;  %7076 = vmatpush3.bf16.msra.mxu1 %v7578_v40  ;;  %7803 = vrcp.f32 %v2123_v49  ;;  %v7611_v49 = vld [vmem:[#allocation14 + $0x68] ss:$12 sps:$4 sm:$0xff]  }
 0x330   :  { %2574 = vmatprep.subr.bf16.mxu0 %v8855_v43  ;;  %7077 = vmatprep.subr.bf16.mxu1 %v8284_v61 }
 0x331   :  { %2604 = vmatprep.mubr.bf16.mxu0 %v8283_v0  ;;  %7091 = vmatprep.mubr.msk.bf16.mxu1 %vm8285_vm0, %v8284_v61 }
 0x333   :  { %2575 = vmatpush1.bf16.msra.mxu0 %v8858_v13  ;;  %7078 = vmatpush3.bf16.msra.mxu1 %v7582_v44  ;;  %v7608_v44 = vld [vmem:[#allocation14 + $0x20] ss:$12 sps:$4 sm:$0xff]  }
 0x334   :  { %2576 = vmatprep.subr.bf16.mxu0 %v8862_v45  ;;  %7079 = vmatprep.subr.bf16.mxu1 %v8284_v61 }
 0x337   :  { %2577 = vmatpush1.bf16.msra.mxu0 %v8868_v47  ;;  %7080 = vmatpush3.bf16.msra.mxu1 %v7586_v48  ;;  %v7610_v48 = vld [vmem:[#allocation14 + $0x50] ss:$12 sps:$4 sm:$0xff]  }
 0x338   :  { %v7802_v60 = vpop.eup %7801  ;;  %2578 = vmatprep.subr.bf16.mxu0 %v8872_v6  ;;  %7081 = vmatprep.subr.bf16.mxu1 %v8284_v61 }
 0x339   :  { %v2127_v56 = vmul.f32 %v7802_v60, %v2126_v50  ;;  %v7804_v9 = vpop.eup %7803  ;;  %v7612_v50 = vld [vmem:[#allocation14 + $0x80] ss:$12 sps:$4 sm:$0xff]   ;;  %v7614_v60 = vld [vmem:[#allocation14 + $0xb0] ss:$12 sps:$4 sm:$0xff]  }
 0x33a   :  { %v2130_v34 = vsub.f32 1.0, %v7804_v9  ;;  %v2132_v40 = vmul.f32 %v7804_v9, %v8775_v58  ;;  %v7607_v58 = vld [vmem:[#allocation14 + $0x8] ss:$12 sps:$4 sm:$0xff]  }
 0x33b   :  { %v2128_v57 = vadd.f32 %v2127_v56, %v2111_v12  ;;  %2579 = vmatpush1.bf16.msra.mxu0 %v8876_v54  ;;  %7082 = vmatpush3.bf16.msra.mxu1 %v7590_v59  ;;  %v7613_v59 = vld [vmem:[#allocation14 + $0x98] ss:$12 sps:$4 sm:$0xff]   ;;  %v2141_v12 = vld [vmem:[#allocation2 + $0x18] sm:$0xff] }
 0x33c   :  { %2580 = vmatprep.subr.bf16.mxu0 %v8880_v7  ;;  %7083 = vmatprep.subr.bf16.mxu1 %v8284_v61  ;;  %v2384_v56 = vunpack.c.l.bf16 %v2141_v12 }
 0x33d   :  { %7805 = vtanh.f32 %v2128_v57 }
 0x33f   :  { %2581 = vmatpush1.bf16.msra.mxu0 %v8884_v1  ;;  %7084 = vmatpush3.bf16.msra.mxu1 %v7594_v22 }
 0x340   :  { %2582 = vmatprep.subr.bf16.mxu0 %v8888_v25  ;;  %7085 = vmatprep.subr.bf16.mxu1 %v8284_v61 }
 0x343   :  { %2583 = vmatpush1.bf16.msra.mxu0 %v8891_v27  ;;  %7086 = vmatpush3.bf16.msra.mxu1 %v7598_v29 }
 0x344   :  { %2584 = vmatprep.subr.bf16.mxu0 %v8895_v31  ;;  %7087 = vmatprep.subr.bf16.mxu1 %v8284_v61 }
 0x347   :  { %v7806_v11 = vpop.eup %7805  ;;  %2585 = vmatpush1.bf16.msra.mxu0 %v8898_v32  ;;  %7088 = vmatpush3.bf16.msra.mxu1 %v7602_v39 }
 0x348   :  { %2586 = vmatprep.subr.bf16.mxu0 %v8902_v33  ;;  %7089 = vmatprep.subr.bf16.mxu1 %v8284_v61  ;;  %v2131_v37 = vmul.f32 %v7806_v11, %v2130_v34  ;;  %v2385_v34 = vunpack.c.h.bf16 %v2141_v12  ;;  %v2410_v12 = vld [vmem:[#allocation3 + $0x3c] sm:$0xff] }
 0x34a   :  { %v8910_v41 = vadd.f32 %v2132_v40, %v2131_v37 }
 0x34b   :  { %2587 = vmatpush1.bf16.msra.mxu0 %v8905_v35  ;;  %7090 = vmatpush3.bf16.msra.mxu1 %v7606_v36 }
 0x34c   :  { %v2137_v42 = vpack.c.bf16 %v8910_v41, %v8910_v41  ;;  %2847 = vmatprep.subr.bf16.mxu0 %v8783_v62  ;;  %7095 = vmatprep.subr.bf16.mxu1 %v8284_v61 }
 0x34e   :  { %2139 = vst [vmem:[#allocation5 + $0x18] sm:$0xf] %v2137_v42  ;;  %2605 = vmatmul.mubr.bf16.vlgmr.msra.gmra.mrb[52].mxu0 %v2137_v42  ;;  %7092 = vmatmul.mubr.bf16.vlgmr.msra.gmra.mrb[36].mxu1 %v2137_v42 }
 0x34f   :  { %2848 = vmatpush1.bf16.msra.mxu0 %v8785_v63  ;;  %2879 = vmatprep.mubr.bf16.mxu0 %v8283_v0 }
 0x350   :  { %2849 = vmatprep.subr.bf16.mxu0 %v8789_v2  ;;  %7111 = vmatprep.mubr.msk.bf16.mxu1 %vm8285_vm0, %v8284_v61 }
 0x351   :  { %7096 = vmatpush3.bf16.msra.mxu1 %v7607_v58 }
 0x352   :  { %7097 = vmatprep.subr.bf16.mxu1 %v8284_v61 }
 0x353   :  { %2850 = vmatpush1.bf16.msra.mxu0 %v8792_v5 }
 0x354   :  { %2851 = vmatprep.subr.bf16.mxu0 %v8796_v8 }
 0x355   :  { %7098 = vmatpush3.bf16.msra.mxu1 %v7608_v44 }
 0x356   :  { %7099 = vmatprep.subr.bf16.mxu1 %v8284_v61 }
 0x357   :  { %2852 = vmatpush1.bf16.msra.mxu0 %v8799_v10 }
 0x358   :  { %2853 = vmatprep.subr.bf16.mxu0 %v8803_v14 }
 0x359   :  { %7100 = vmatpush3.bf16.msra.mxu1 %v7609_v46 }
 0x35a   :  { %7101 = vmatprep.subr.bf16.mxu1 %v8284_v61 }
 0x35b   :  { %2854 = vmatpush1.bf16.msra.mxu0 %v8806_v15 }
 0x35c   :  { %2855 = vmatprep.subr.bf16.mxu0 %v8810_v16 }
 0x35d   :  { %7102 = vmatpush3.bf16.msra.mxu1 %v7610_v48 }
 0x35e   :  { %7103 = vmatprep.subr.bf16.mxu1 %v8284_v61 }
 0x35f   :  { %2856 = vmatpush1.bf16.msra.mxu0 %v8813_v17 }
 0x360   :  { %2857 = vmatprep.subr.bf16.mxu0 %v8817_v18 }
 0x361   :  { %7104 = vmatpush3.bf16.msra.mxu1 %v7611_v49 }
 0x362   :  { %7105 = vmatprep.subr.bf16.mxu1 %v8284_v61 }
 0x363   :  { %2858 = vmatpush1.bf16.msra.mxu0 %v8820_v20 }
 0x364   :  { %2859 = vmatprep.subr.bf16.mxu0 %v8824_v23 }
 0x365   :  { %7106 = vmatpush3.bf16.msra.mxu1 %v7612_v50 }
 0x366   :  { %7107 = vmatprep.subr.bf16.mxu1 %v8284_v61 }
 0x367   :  { %2860 = vmatpush1.bf16.msra.mxu0 %v8827_v24 }
 0x368   :  { %2861 = vmatprep.subr.bf16.mxu0 %v8831_v26 }
 0x369   :  { %7108 = vmatpush3.bf16.msra.mxu1 %v7613_v59  ;;  %v8944_v59 = vld [vmem:[#allocation2 + $0x20] ss:$12 sps:$4 sm:$0xff]  }
 0x36a   :  { %7109 = vmatprep.subr.bf16.mxu1 %v8284_v61 }
 0x36b   :  { %2862 = vmatpush1.bf16.msra.mxu0 %v8834_v28 }
 0x36c   :  { %3116 = vmatprep.subr.bf16.mxu0 %v8838_v30 }
 0x36d   :  { %7110 = vmatpush3.bf16.msra.mxu1 %v7614_v60 }
 0x36e   :  { %7115 = vmatprep.subr.bf16.mxu1 %v8284_v61 }
 0x401   :  { %v2337_v57 = vpop.f32.mrb[48].mxu0  ;;  %v2378_v22 = vpop.f32.mrb[32].mxu1 }
 0x402   :  { %v2387_v29 = vadd.f32 %v2384_v56, %v2337_v57  ;;  %v2339_v9 = vpop.f32.mrb[49].mxu0  ;;  %v7073_v39 = vpop.f32.mrb[33].mxu1  ;;  %v2401_v60 = vadd.f32 %v8743_v4, %v2378_v22  ;;  %v2386_v57 = vunpack.c.l.bf16 %v8944_v59 }
 0x403   :  { %v2341_v11 = vpop.f32.mrb[50].mxu0  ;;  %v2381_v36 = vpop.f32.mrb[34].mxu1  ;;  %v2394_v58 = vadd.f32 %v2385_v34, %v2339_v9  ;;  %v2653_v9 = vunpack.c.l.bf16 %v2410_v12 }
 0x404   :  { %v6366_v37 = vmul.f32 -1.442695, %v2387_v29  ;;  %v2342_v40 = vpop.f32.mrb[51].mxu0  ;;  %v7074_v42 = vpop.f32.mrb[35].mxu1 }
 0x405   :  { %v6367_v44 = vmul.f32 -1.442695, %v2394_v58  ;;  %v2654_v42 = vunpack.c.h.bf16 %v2410_v12 }
 0x406   :  { %7807 = vpow2.f32 %v6366_v37 }
 0x407   :  { %7809 = vpow2.f32 %v6367_v44 }
 0x410   :  { %v7808_v46 = vpop.eup %7807 }
 0x411   :  { %v2391_v48 = vadd.f32 1.0, %v7808_v46  ;;  %v7810_v49 = vpop.eup %7809 }
 0x412   :  { %v2398_v50 = vadd.f32 1.0, %v7810_v49 }
 0x413   :  { %7811 = vrcp.f32 %v2391_v48 }
 0x414   :  { %7813 = vrcp.f32 %v2398_v50 }
 0x41d   :  { %v7812_v56 = vpop.eup %7811 }
 0x41e   :  { %v2402_v29 = vmul.f32 %v7812_v56, %v2401_v60  ;;  %v7814_v49 = vpop.eup %7813 }
 0x41f   :  { %v2405_v60 = vsub.f32 1.0, %v7814_v49 }
 0x420   :  { %v2403_v39 = vadd.f32 %v2402_v29, %v2386_v57  ;;  %v2407_v57 = vmul.f32 %v7814_v49, %v8849_v19  ;;  %v7617_v19 = vld [vmem:[#allocation17 + $0x38] ss:$12 sps:$4 sm:$0xff]  }
 0x421   :  { %v2606_v34 = vpop.f32.mrb[52].mxu0  ;;  %v2647_v11 = vpop.f32.mrb[36].mxu1  ;;  %v7621_v49 = vld [vmem:[#allocation17 + $0x98] ss:$12 sps:$4 sm:$0xff]  }
 0x422   :  { %7815 = vtanh.f32 %v2403_v39  ;;  %v2656_v36 = vadd.f32 %v2653_v9, %v2606_v34  ;;  %v2608_v37 = vpop.f32.mrb[53].mxu0  ;;  %v7093_v40 = vpop.f32.mrb[37].mxu1  ;;  %v7615_v9 = vld [vmem:[#allocation17 + $0x8] ss:$12 sps:$4 sm:$0xff]  }
 0x423   :  { %v2610_v58 = vpop.f32.mrb[54].mxu0  ;;  %v2650_v44 = vpop.f32.mrb[38].mxu1  ;;  %v2663_v22 = vadd.f32 %v2654_v42, %v2608_v37  ;;  %v8962_v40 = vld [vmem:[#allocation3 + $0x38] ss:$12 sps:$4 sm:$0xff]   ;;  %v2670_v42 = vadd.f32 %v8760_v21, %v2647_v11 }
 0x424   :  { %v6392_v46 = vmul.f32 -1.442695, %v2656_v36  ;;  %v2611_v48 = vpop.f32.mrb[55].mxu0  ;;  %v7094_v4 = vpop.f32.mrb[39].mxu1  ;;  %v7616_v36 = vld [vmem:[#allocation17 + $0x20] ss:$12 sps:$4 sm:$0xff]  }
 0x425   :  { %v6393_v51 = vmul.f32 -1.442695, %v2663_v22  ;;  %v7618_v58 = vld [vmem:[#allocation17 + $0x50] ss:$12 sps:$4 sm:$0xff]   ;;  %v7619_v22 = vld [vmem:[#allocation17 + $0x68] ss:$12 sps:$4 sm:$0xff]  }
 0x426   :  { %7817 = vpow2.f32 %v6392_v46  ;;  %v2655_v46 = vunpack.c.h.bf16 %v8962_v40  ;;  %v7620_v21 = vld [vmem:[#allocation17 + $0x80] ss:$12 sps:$4 sm:$0xff]  }
 0x427   :  { %7819 = vpow2.f32 %v6393_v51 }
 0x42c   :  { %v7816_v50 = vpop.eup %7815 }
 0x42d   :  { %v2406_v56 = vmul.f32 %v7816_v50, %v2405_v60 }
 0x42f   :  { %v8949_v29 = vadd.f32 %v2407_v57, %v2406_v56  ;;  %v7622_v56 = vld [vmem:[#allocation17 + $0xb0] ss:$12 sps:$4 sm:$0xff]  }
 0x430   :  { %v7818_v39 = vpop.eup %7817 }
 0x431   :  { %v2660_v12 = vadd.f32 1.0, %v7818_v39  ;;  %v2678_v34 = vpack.c.bf16 %v8949_v29, %v8949_v29  ;;  %v7820_v51 = vpop.eup %7819 }
 0x432   :  { %v2667_v37 = vadd.f32 1.0, %v7820_v51 }
 0x433   :  { %7821 = vrcp.f32 %v2660_v12  ;;  %2680 = vst [vmem:[#allocation4 + $0x8] sm:$0xf] %v2678_v34  ;;  %2880 = vmatmul.mubr.bf16.vlgmr.msra.gmra.mrb[56].mxu0 %v2678_v34  ;;  %7112 = vmatmul.mubr.bf16.vlgmr.msra.gmra.mrb[40].mxu1 %v2678_v34 }
 0x434   :  { %3117 = vmatpush1.bf16.msra.mxu0 %v8851_v38  ;;  %7116 = vmatpush3.bf16.msra.mxu1 %v7615_v9  ;;  %7823 = vrcp.f32 %v2667_v37 }
 0x435   :  { %3118 = vmatprep.subr.bf16.mxu0 %v8855_v43  ;;  %7117 = vmatprep.subr.bf16.mxu1 %v8284_v61 }
 0x436   :  { %3148 = vmatprep.mubr.bf16.mxu0 %v8283_v0  ;;  %7131 = vmatprep.mubr.msk.bf16.mxu1 %vm8285_vm0, %v8284_v61 }
 0x438   :  { %3119 = vmatpush1.bf16.msra.mxu0 %v8858_v13  ;;  %7118 = vmatpush3.bf16.msra.mxu1 %v7616_v36 }
 0x439   :  { %3120 = vmatprep.subr.bf16.mxu0 %v8862_v45  ;;  %7119 = vmatprep.subr.bf16.mxu1 %v8284_v61 }
 0x43c   :  { %3121 = vmatpush1.bf16.msra.mxu0 %v8868_v47  ;;  %7120 = vmatpush3.bf16.msra.mxu1 %v7617_v19 }
 0x43d   :  { %v7822_v44 = vpop.eup %7821  ;;  %3122 = vmatprep.subr.bf16.mxu0 %v8872_v6  ;;  %7121 = vmatprep.subr.bf16.mxu1 %v8284_v61 }
 0x43e   :  { %v2671_v48 = vmul.f32 %v7822_v44, %v2670_v42  ;;  %v7824_v11 = vpop.eup %7823 }
 0x43f   :  { %v2674_v60 = vsub.f32 1.0, %v7824_v11  ;;  %v2676_v39 = vmul.f32 %v7824_v11, %v8910_v41  ;;  %v2930_v11 = vunpack.c.h.bf16 %v8944_v59 }
 0x440   :  { %v2672_v4 = vadd.f32 %v2671_v48, %v2655_v46  ;;  %3123 = vmatpush1.bf16.msra.mxu0 %v8876_v54  ;;  %7122 = vmatpush3.bf16.msra.mxu1 %v7618_v58  ;;  %v9019_v48 = vld [vmem:[%s9496_s7] ss:$0 sm:$0xff] }
 0x441   :  { %3124 = vmatprep.subr.bf16.mxu0 %v8880_v7  ;;  %7123 = vmatprep.subr.bf16.mxu1 %v8284_v61 }
 0x442   :  { %7825 = vtanh.f32 %v2672_v4 }
 0x444   :  { %3125 = vmatpush1.bf16.msra.mxu0 %v8884_v1  ;;  %7124 = vmatpush3.bf16.msra.mxu1 %v7619_v22 }
 0x445   :  { %3126 = vmatprep.subr.bf16.mxu0 %v8888_v25  ;;  %7125 = vmatprep.subr.bf16.mxu1 %v8284_v61 }
 0x448   :  { %3127 = vmatpush1.bf16.msra.mxu0 %v8891_v27  ;;  %7126 = vmatpush3.bf16.msra.mxu1 %v7620_v21  ;;  %v2954_v21 = vld [vmem:[#allocation3 + $0x30] sm:$0xff] }
 0x449   :  { %3128 = vmatprep.subr.bf16.mxu0 %v8895_v31  ;;  %7127 = vmatprep.subr.bf16.mxu1 %v8284_v61 }
 0x44c   :  { %v7826_v50 = vpop.eup %7825  ;;  %3129 = vmatpush1.bf16.msra.mxu0 %v8898_v32  ;;  %7128 = vmatpush3.bf16.msra.mxu1 %v7621_v49 }
 0x44d   :  { %3130 = vmatprep.subr.bf16.mxu0 %v8902_v33  ;;  %7129 = vmatprep.subr.bf16.mxu1 %v8284_v61  ;;  %v2675_v57 = vmul.f32 %v7826_v50, %v2674_v60  ;;  %v3197_v50 = vunpack.c.l.bf16 %v2954_v21 }
 0x44f   :  { %v8982_v9 = vadd.f32 %v2676_v39, %v2675_v57 }
 0x450   :  { %3131 = vmatpush1.bf16.msra.mxu0 %v8905_v35  ;;  %7130 = vmatpush3.bf16.msra.mxu1 %v7622_v56 }
 0x451   :  { %v2681_v12 = vpack.c.bf16 %v8982_v9, %v8982_v9  ;;  %3391 = vmatprep.subr.bf16.mxu0 %v8783_v62  ;;  %7135 = vmatprep.subr.bf16.mxu1 %v8284_v61  ;;  %v7623_v62 = vld [vmem:[#allocation14 + $0x8] ss:$12 sps:$4 sm:$0xff]  }
 0x453   :  { %2683 = vst [vmem:[#allocation5 + $0x14] sm:$0xf] %v2681_v12  ;;  %3149 = vmatmul.mubr.bf16.vlgmr.msra.gmra.mrb[60].mxu0 %v2681_v12  ;;  %7132 = vmatmul.mubr.bf16.vlgmr.msra.gmra.mrb[44].mxu1 %v2681_v12 }
 0x454   :  { %3392 = vmatpush1.bf16.msra.mxu0 %v8785_v63  ;;  %3423 = vmatprep.mubr.bf16.mxu0 %v8283_v0  ;;  %v7624_v63 = vld [vmem:[#allocation14 + $0x20] ss:$12 sps:$4 sm:$0xff]  }
 0x455   :  { %3393 = vmatprep.subr.bf16.mxu0 %v8789_v2  ;;  %7151 = vmatprep.mubr.msk.bf16.mxu1 %vm8285_vm0, %v8284_v61  ;;  %v7625_v2 = vld [vmem:[#allocation14 + $0x38] ss:$12 sps:$4 sm:$0xff]  }
 0x456   :  { %7136 = vmatpush3.bf16.msra.mxu1 %v7623_v62 }
 0x457   :  { %7137 = vmatprep.subr.bf16.mxu1 %v8284_v61 }
 0x458   :  { %3394 = vmatpush1.bf16.msra.mxu0 %v8792_v5  ;;  %v7626_v5 = vld [vmem:[#allocation14 + $0x50] ss:$12 sps:$4 sm:$0xff]  }
 0x459   :  { %3395 = vmatprep.subr.bf16.mxu0 %v8796_v8  ;;  %v7627_v8 = vld [vmem:[#allocation14 + $0x68] ss:$12 sps:$4 sm:$0xff]  }
 0x45a   :  { %7138 = vmatpush3.bf16.msra.mxu1 %v7624_v63  ;;  %v3198_v63 = vunpack.c.h.bf16 %v2954_v21  ;;  %v9085_v21 = vld [vmem:[#allocation14 + $0x30] ss:$12 sps:$4 sm:$0xff]  }
 0x45b   :  { %7139 = vmatprep.subr.bf16.mxu1 %v8284_v61 }
 0x45c   :  { %3396 = vmatpush1.bf16.msra.mxu0 %v8799_v10  ;;  %v7628_v10 = vld [vmem:[#allocation14 + $0x80] ss:$12 sps:$4 sm:$0xff]  }
 0x45d   :  { %3397 = vmatprep.subr.bf16.mxu0 %v8803_v14  ;;  %v7629_v14 = vld [vmem:[#allocation14 + $0x98] ss:$12 sps:$4 sm:$0xff]  }
 0x45e   :  { %7140 = vmatpush3.bf16.msra.mxu1 %v7625_v2 }
 0x45f   :  { %7141 = vmatprep.subr.bf16.mxu1 %v8284_v61 }
 0x460   :  { %3398 = vmatpush1.bf16.msra.mxu0 %v8806_v15  ;;  %v7630_v15 = vld [vmem:[#allocation14 + $0xb0] ss:$12 sps:$4 sm:$0xff]  }
 0x461   :  { %3399 = vmatprep.subr.bf16.mxu0 %v8810_v16  ;;  %v2685_v16 = vld [vmem:[#allocation2 + $0x24] sm:$0xff] }
 0x462   :  { %7142 = vmatpush3.bf16.msra.mxu1 %v7626_v5 }
 0x463   :  { %7143 = vmatprep.subr.bf16.mxu1 %v8284_v61 }
 0x464   :  { %3400 = vmatpush1.bf16.msra.mxu0 %v8813_v17  ;;  %v2928_v17 = vunpack.c.l.bf16 %v2685_v16 }
 0x465   :  { %3401 = vmatprep.subr.bf16.mxu0 %v8817_v18 }
 0x466   :  { %7144 = vmatpush3.bf16.msra.mxu1 %v7627_v8 }
 0x467   :  { %7145 = vmatprep.subr.bf16.mxu1 %v8284_v61 }
 0x468   :  { %3402 = vmatpush1.bf16.msra.mxu0 %v8820_v20 }
 0x469   :  { %3403 = vmatprep.subr.bf16.mxu0 %v8824_v23 }
 0x46a   :  { %7146 = vmatpush3.bf16.msra.mxu1 %v7628_v10 }
 0x46b   :  { %7147 = vmatprep.subr.bf16.mxu1 %v8284_v61 }
 0x46c   :  { %3404 = vmatpush1.bf16.msra.mxu0 %v8827_v24 }
 0x46d   :  { %3405 = vmatprep.subr.bf16.mxu0 %v8831_v26 }
 0x46e   :  { %7148 = vmatpush3.bf16.msra.mxu1 %v7629_v14 }
 0x46f   :  { %7149 = vmatprep.subr.bf16.mxu1 %v8284_v61 }
 0x470   :  { %3406 = vmatpush1.bf16.msra.mxu0 %v8834_v28  ;;  %v2929_v28 = vunpack.c.h.bf16 %v2685_v16 }
 0x471   :  { %3660 = vmatprep.subr.bf16.mxu0 %v8838_v30 }
 0x472   :  { %7150 = vmatpush3.bf16.msra.mxu1 %v7630_v15 }
 0x473   :  { %7155 = vmatprep.subr.bf16.mxu1 %v8284_v61 }
 0x506   :  { %v2881_v18 = vpop.f32.mrb[56].mxu0  ;;  %v2922_v20 = vpop.f32.mrb[40].mxu1 }
 0x507   :  { %v2931_v23 = vadd.f32 %v2928_v17, %v2881_v18  ;;  %v2883_v24 = vpop.f32.mrb[57].mxu0  ;;  %v7113_v26 = vpop.f32.mrb[41].mxu1  ;;  %v2945_v4 = vadd.f32 %v9019_v48, %v2922_v20 }
 0x508   :  { %v2885_v30 = vpop.f32.mrb[58].mxu0  ;;  %v2925_v41 = vpop.f32.mrb[42].mxu1  ;;  %v2938_v19 = vadd.f32 %v2929_v28, %v2883_v24  ;;  %v7631_v28 = vld [vmem:[#allocation17 + $0x8] ss:$12 sps:$4 sm:$0xff]  }
 0x509   :  { %v6418_v34 = vmul.f32 -1.442695, %v2931_v23  ;;  %v2886_v36 = vpop.f32.mrb[59].mxu0  ;;  %v7114_v51 = vpop.f32.mrb[43].mxu1 }
 0x50a   :  { %v6419_v37 = vmul.f32 -1.442695, %v2938_v19  ;;  %v7633_v36 = vld [vmem:[#allocation17 + $0x38] ss:$12 sps:$4 sm:$0xff]   ;;  %v7634_v19 = vld [vmem:[#allocation17 + $0x50] ss:$12 sps:$4 sm:$0xff]  }
 0x50b   :  { %7827 = vpow2.f32 %v6418_v34  ;;  %v7632_v34 = vld [vmem:[#allocation17 + $0x20] ss:$12 sps:$4 sm:$0xff]  }
 0x50c   :  { %7829 = vpow2.f32 %v6419_v37 }
 0x515   :  { %v7828_v42 = vpop.eup %7827 }
 0x516   :  { %v2935_v58 = vadd.f32 1.0, %v7828_v42  ;;  %v7830_v44 = vpop.eup %7829 }
 0x517   :  { %v2942_v46 = vadd.f32 1.0, %v7830_v44 }
 0x518   :  { %7831 = vrcp.f32 %v2935_v58  ;;  %v7635_v58 = vld [vmem:[#allocation17 + $0x68] ss:$12 sps:$4 sm:$0xff]  }
 0x519   :  { %7833 = vrcp.f32 %v2942_v46  ;;  %v9078_v46 = vld [vmem:[#allocation14 + $0x18] ss:$12 sps:$4 sm:$0xff]  }
 0x522   :  { %v7832_v22 = vpop.eup %7831 }
 0x523   :  { %v2946_v49 = vmul.f32 %v7832_v22, %v2945_v4  ;;  %v7834_v16 = vpop.eup %7833  ;;  %v7646_v4 = vld [vmem:[#allocation14 + $0x20] ss:$12 sps:$4 sm:$0xff]  }
 0x524   :  { %v2949_v17 = vsub.f32 1.0, %v7834_v16  ;;  %v2951_v23 = vmul.f32 %v7834_v16, %v8949_v29  ;;  %v9082_v22 = vld [vmem:[#allocation14 + $0x34] ss:$12 sps:$4 sm:$0xff]   ;;  %v9124_v16 = vld [vmem:[#allocation17 + $0x4] ss:$12 sps:$4 sm:$0xff]  }
 0x525   :  { %v2947_v60 = vadd.f32 %v2946_v49, %v2930_v11  ;;  %v7650_v11 = vld [vmem:[#allocation14 + $0x38] ss:$12 sps:$4 sm:$0xff]  }
 0x526   :  { %v3150_v56 = vpop.f32.mrb[60].mxu0  ;;  %v3191_v57 = vpop.f32.mrb[44].mxu1  ;;  %v9089_v49 = vld [vmem:[#allocation14 + $0x4c] ss:$12 sps:$4 sm:$0xff]  }
 0x527   :  { %7835 = vtanh.f32 %v2947_v60  ;;  %v3200_v39 = vadd.f32 %v3197_v50, %v3150_v56  ;;  %v3152_v12 = vpop.f32.mrb[61].mxu0  ;;  %v7133_v62 = vpop.f32.mrb[45].mxu1  ;;  %v9092_v60 = vld [vmem:[#allocation14 + $0x48] ss:$12 sps:$4 sm:$0xff]   ;;  %v7654_v50 = vld [vmem:[#allocation14 + $0x50] ss:$12 sps:$4 sm:$0xff]  }
 0x528   :  { %v3154_v2 = vpop.f32.mrb[62].mxu0  ;;  %v3194_v5 = vpop.f32.mrb[46].mxu1  ;;  %v3207_v15 = vadd.f32 %v3198_v63, %v3152_v12  ;;  %v9096_v56 = vld [vmem:[#allocation14 + $0x64] ss:$12 sps:$4 sm:$0xff]   ;;  %v9103_v12 = vld [vmem:[#allocation14 + $0x7c] ss:$12 sps:$4 sm:$0xff]  }
 0x529   :  { %v6444_v8 = vmul.f32 -1.442695, %v3200_v39  ;;  %v3155_v10 = vpop.f32.mrb[63].mxu0  ;;  %v7134_v14 = vpop.f32.mrb[47].mxu1  ;;  %v7658_v39 = vld [vmem:[#allocation14 + $0x68] ss:$12 sps:$4 sm:$0xff]  }
 0x52a   :  { %v6445_v59 = vmul.f32 -1.442695, %v3207_v15  ;;  %v9106_v62 = vld [vmem:[#allocation14 + $0x78] ss:$12 sps:$4 sm:$0xff]   ;;  %v7662_v63 = vld [vmem:[#allocation14 + $0x80] ss:$12 sps:$4 sm:$0xff]  }
 0x52b   :  { %7837 = vpow2.f32 %v6444_v8  ;;  %v9110_v2 = vld [vmem:[#allocation14 + $0x94] ss:$12 sps:$4 sm:$0xff]   ;;  %v9113_v5 = vld [vmem:[#allocation14 + $0x90] ss:$12 sps:$4 sm:$0xff]   ;;  %v7666_v8 = vld [vmem:[#allocation14 + $0x98] ss:$12 sps:$4 sm:$0xff]  }
 0x52c   :  { %7839 = vpow2.f32 %v6445_v59  ;;  %v9117_v10 = vld [vmem:[#allocation14 + $0xac] ss:$12 sps:$4 sm:$0xff]   ;;  %v9120_v14 = vld [vmem:[#allocation14 + $0xa8] ss:$12 sps:$4 sm:$0xff]   ;;  %v7670_v15 = vld [vmem:[#allocation14 + $0xb0] ss:$12 sps:$4 sm:$0xff]  }
 0x52d   :  { %v3229_v59 = vld [vmem:[#allocation2 + $0x30] sm:$0xff] }
 0x531   :  { %v7836_v18 = vpop.eup %7835 }
 0x532   :  { %v2950_v20 = vmul.f32 %v7836_v18, %v2949_v17  ;;  %v3472_v17 = vunpack.c.l.bf16 %v3229_v59 }
 0x534   :  { %v9024_v24 = vadd.f32 %v2951_v23, %v2950_v20 }
 0x535   :  { %v7838_v26 = vpop.eup %7837 }
 0x536   :  { %v3204_v30 = vadd.f32 1.0, %v7838_v26  ;;  %v3222_v41 = vpack.c.bf16 %v9024_v24, %v9024_v24  ;;  %v7840_v29 = vpop.eup %7839 }
 0x538   :  { %7841 = vrcp.f32 %v3204_v30  ;;  %3224 = vst [vmem:[#allocation4 + $0xc] sm:$0xf] %v3222_v41  ;;  %3424 = vmatmul.mubr.bf16.vlgmr.msra.gmra.mrb[64].mxu0 %v3222_v41  ;;  %7152 = vmatmul.mubr.bf16.vlgmr.msra.gmra.mrb[48].mxu1 %v3222_v41  ;;  %v3473_v30 = vunpack.c.h.bf16 %v3229_v59 }
 0x539   :  { %3661 = vmatpush1.bf16.msra.mxu0 %v8851_v38  ;;  %7156 = vmatpush3.bf16.msra.mxu1 %v7631_v28  ;;  %v3211_v38 = vadd.f32 1.0, %v7840_v29 }
 0x53a   :  { %3662 = vmatprep.subr.bf16.mxu0 %v8855_v43  ;;  %7157 = vmatprep.subr.bf16.mxu1 %v8284_v61  ;;  %v9040_v43 = vld [vmem:[%s9500_s11] ss:$0 sm:$0xff] }
 0x53b   :  { %3692 = vmatprep.mubr.bf16.mxu0 %v8283_v0  ;;  %7171 = vmatprep.mubr.msk.bf16.mxu1 %vm8285_vm0, %v8284_v61  ;;  %v3214_v51 = vadd.f32 %v9040_v43, %v3191_v57  ;;  %7843 = vrcp.f32 %v3211_v38  ;;  %v9099_v57 = vld [vmem:[#allocation14 + $0x60] ss:$12 sps:$4 sm:$0xff]  }
 0x53d   :  { %3663 = vmatpush1.bf16.msra.mxu0 %v8858_v13  ;;  %7158 = vmatpush3.bf16.msra.mxu1 %v7632_v34  ;;  %v3199_v13 = vunpack.c.l.bf16 %v8962_v40 }
 0x53e   :  { %3664 = vmatprep.subr.bf16.mxu0 %v8862_v45  ;;  %7159 = vmatprep.subr.bf16.mxu1 %v8284_v61 }
 0x541   :  { %3665 = vmatpush1.bf16.msra.mxu0 %v8868_v47  ;;  %7160 = vmatpush3.bf16.msra.mxu1 %v7633_v36  ;;  %v7636_v47 = vld [vmem:[#allocation17 + $0x80] ss:$12 sps:$4 sm:$0xff]  }
 0x542   :  { %v7842_v37 = vpop.eup %7841  ;;  %3666 = vmatprep.subr.bf16.mxu0 %v8872_v6  ;;  %7161 = vmatprep.subr.bf16.mxu1 %v8284_v61 }
 0x543   :  { %v3215_v45 = vmul.f32 %v7842_v37, %v3214_v51 }
 0x545   :  { %v3216_v42 = vadd.f32 %v3215_v45, %v3199_v13  ;;  %3667 = vmatpush1.bf16.msra.mxu0 %v8876_v54  ;;  %7162 = vmatpush3.bf16.msra.mxu1 %v7634_v19  ;;  %v7844_v6 = vpop.eup %7843  ;;  %v7637_v54 = vld [vmem:[#allocation17 + $0x98] ss:$12 sps:$4 sm:$0xff]  }
 0x546   :  { %3668 = vmatprep.subr.bf16.mxu0 %v8880_v7  ;;  %7163 = vmatprep.subr.bf16.mxu1 %v8284_v61  ;;  %v3218_v7 = vsub.f32 1.0, %v7844_v6  ;;  %v3220_v44 = vmul.f32 %v7844_v6, %v8982_v9  ;;  %v7642_v9 = vld [vmem:[#allocation14 + $0x8] ss:$12 sps:$4 sm:$0xff]  }
 0x547   :  { %7845 = vtanh.f32 %v3216_v42 }
 0x549   :  { %3669 = vmatpush1.bf16.msra.mxu0 %v8884_v1  ;;  %7164 = vmatpush3.bf16.msra.mxu1 %v7635_v58  ;;  %v7638_v1 = vld [vmem:[#allocation17 + $0xb0] ss:$12 sps:$4 sm:$0xff]  }
 0x54a   :  { %3670 = vmatprep.subr.bf16.mxu0 %v8888_v25  ;;  %7165 = vmatprep.subr.bf16.mxu1 %v8284_v61  ;;  %v9128_v58 = vld [vmem:[#allocation2 + $0x38] ss:$12 sps:$4 sm:$0xff]  }
 0x54d   :  { %3671 = vmatpush1.bf16.msra.mxu0 %v8891_v27  ;;  %7166 = vmatpush3.bf16.msra.mxu1 %v7636_v47 }
 0x54e   :  { %3672 = vmatprep.subr.bf16.mxu0 %v8895_v31  ;;  %7167 = vmatprep.subr.bf16.mxu1 %v8284_v61 }
 0x551   :  { %v7846_v40 = vpop.eup %7845  ;;  %3673 = vmatpush1.bf16.msra.mxu0 %v8898_v32  ;;  %7168 = vmatpush3.bf16.msra.mxu1 %v7637_v54  ;;  %v9069_v32 = vld [vmem:[#allocation14 + $0x4] ss:$12 sps:$4 sm:$0xff]   ;;  %v3498_v54 = vld [vmem:[#allocation3 + $0x24] sm:$0xff] }
 0x552   :  { %3674 = vmatprep.subr.bf16.mxu0 %v8902_v33  ;;  %7169 = vmatprep.subr.bf16.mxu1 %v8284_v61  ;;  %v3219_v25 = vmul.f32 %v7846_v40, %v3218_v7  ;;  %v9071_v33 = vld [vmem:[#allocation14] ss:$12 sps:$4 sm:$0xff]   ;;  %v3474_v7 = vunpack.c.l.bf16 %v9128_v58 }
 0x554   :  { %v9060_v27 = vadd.f32 %v3220_v44, %v3219_v25  ;;  %v3741_v25 = vunpack.c.l.bf16 %v3498_v54 }
 0x555   :  { %3675 = vmatpush1.bf16.msra.mxu0 %v8905_v35  ;;  %7170 = vmatpush3.bf16.msra.mxu1 %v7638_v1  ;;  %v9075_v35 = vld [vmem:[#allocation14 + $0x1c] ss:$12 sps:$4 sm:$0xff]  }
 0x556   :  { %v3225_v31 = vpack.c.bf16 %v9060_v27, %v9060_v27  ;;  %7175 = vmatprep.subr.bf16.mxu1 %v8284_v61  ;;  %3935 = vmatprep.subr.bf16.mxu0 %v9069_v32 }
 0x558   :  { %3227 = vst [vmem:[#allocation5 + $0x10] sm:$0xf] %v3225_v31  ;;  %3693 = vmatmul.mubr.bf16.vlgmr.msra.gmra.mrb[68].mxu0 %v3225_v31  ;;  %7172 = vmatmul.mubr.bf16.vlgmr.msra.gmra.mrb[52].mxu1 %v3225_v31 }
 0x559   :  { %3967 = vmatprep.mubr.bf16.mxu0 %v8283_v0  ;;  %7191 = vmatprep.mubr.msk.bf16.mxu1 %vm8285_vm0, %v8284_v61 }
 0x55a   :  { %3936 = vmatpush1.bf16.msra.mxu0 %v9071_v33  ;;  %7176 = vmatpush3.bf16.msra.mxu1 %v7642_v9 }
 0x55b   :  { %7177 = vmatprep.subr.bf16.mxu1 %v8284_v61  ;;  %3937 = vmatprep.subr.bf16.mxu0 %v9075_v35 }
 0x55e   :  { %3938 = vmatpush1.bf16.msra.mxu0 %v9078_v46  ;;  %7178 = vmatpush3.bf16.msra.mxu1 %v7646_v4 }
 0x55f   :  { %7179 = vmatprep.subr.bf16.mxu1 %v8284_v61  ;;  %3939 = vmatprep.subr.bf16.mxu0 %v9082_v22 }
 0x562   :  { %3940 = vmatpush1.bf16.msra.mxu0 %v9085_v21  ;;  %7180 = vmatpush3.bf16.msra.mxu1 %v7650_v11 }
 0x563   :  { %7181 = vmatprep.subr.bf16.mxu1 %v8284_v61  ;;  %3941 = vmatprep.subr.bf16.mxu0 %v9089_v49 }
 0x566   :  { %3942 = vmatpush1.bf16.msra.mxu0 %v9092_v60  ;;  %7182 = vmatpush3.bf16.msra.mxu1 %v7654_v50  ;;  %v3742_v50 = vunpack.c.h.bf16 %v3498_v54 }
 0x567   :  { %7183 = vmatprep.subr.bf16.mxu1 %v8284_v61  ;;  %3943 = vmatprep.subr.bf16.mxu0 %v9096_v56 }
 0x56a   :  { %3944 = vmatpush1.bf16.msra.mxu0 %v9099_v57  ;;  %7184 = vmatpush3.bf16.msra.mxu1 %v7658_v39 }
 0x56b   :  { %7185 = vmatprep.subr.bf16.mxu1 %v8284_v61  ;;  %3945 = vmatprep.subr.bf16.mxu0 %v9103_v12 }
 0x56e   :  { %3946 = vmatpush1.bf16.msra.mxu0 %v9106_v62  ;;  %7186 = vmatpush3.bf16.msra.mxu1 %v7662_v63 }
 0x56f   :  { %7187 = vmatprep.subr.bf16.mxu1 %v8284_v61  ;;  %3947 = vmatprep.subr.bf16.mxu0 %v9110_v2 }
 0x572   :  { %3948 = vmatpush1.bf16.msra.mxu0 %v9113_v5  ;;  %7188 = vmatpush3.bf16.msra.mxu1 %v7666_v8 }
 0x573   :  { %7189 = vmatprep.subr.bf16.mxu1 %v8284_v61  ;;  %3949 = vmatprep.subr.bf16.mxu0 %v9117_v10 }
 0x576   :  { %3950 = vmatpush1.bf16.msra.mxu0 %v9120_v14  ;;  %7190 = vmatpush3.bf16.msra.mxu1 %v7670_v15 }
 0x577   :  { %7195 = vmatprep.subr.bf16.mxu1 %v8284_v61  ;;  %4204 = vmatprep.subr.bf16.mxu0 %v9124_v16 }
 0x60b   :  { %v3425_v18 = vpop.f32.mrb[64].mxu0  ;;  %v3466_v20 = vpop.f32.mrb[48].mxu1 }
 0x60c   :  { %v3475_v23 = vadd.f32 %v3472_v17, %v3425_v18  ;;  %v3427_v26 = vpop.f32.mrb[65].mxu0  ;;  %v7153_v28 = vpop.f32.mrb[49].mxu1  ;;  %v3489_v47 = vadd.f32 %v9019_v48, %v3466_v20 }
 0x60d   :  { %v3429_v41 = vpop.f32.mrb[66].mxu0  ;;  %v3469_v34 = vpop.f32.mrb[50].mxu1  ;;  %v3482_v51 = vadd.f32 %v3473_v30, %v3427_v26 }
 0x60e   :  { %v6470_v29 = vmul.f32 -1.442695, %v3475_v23  ;;  %v3430_v36 = vpop.f32.mrb[67].mxu0  ;;  %v7154_v38 = vpop.f32.mrb[51].mxu1 }
 0x60f   :  { %v6471_v19 = vmul.f32 -1.442695, %v3482_v51  ;;  %v7674_v36 = vld [vmem:[#allocation17 + $0x8] ss:$12 sps:$4 sm:$0xff]  }
 0x610   :  { %7847 = vpow2.f32 %v6470_v29  ;;  %v9135_v29 = vld [vmem:[#allocation17] ss:$12 sps:$4 sm:$0xff]  }
 0x611   :  { %7849 = vpow2.f32 %v6471_v19  ;;  %v9139_v19 = vld [vmem:[#allocation17 + $0x1c] ss:$12 sps:$4 sm:$0xff]  }
 0x61a   :  { %v7848_v37 = vpop.eup %7847 }
 0x61b   :  { %v3479_v13 = vadd.f32 1.0, %v7848_v37  ;;  %v7850_v45 = vpop.eup %7849  ;;  %v7678_v37 = vld [vmem:[#allocation17 + $0x20] ss:$12 sps:$4 sm:$0xff]  }
 0x61c   :  { %v3486_v42 = vadd.f32 1.0, %v7850_v45 }
 0x61d   :  { %7851 = vrcp.f32 %v3479_v13  ;;  %v9146_v13 = vld [vmem:[#allocation17 + $0x34] ss:$12 sps:$4 sm:$0xff]  }
 0x61e   :  { %7853 = vrcp.f32 %v3486_v42  ;;  %v9152_v42 = vld [vmem:[#allocation17 + $0x30] ss:$12 sps:$4 sm:$0xff]  }
 0x627   :  { %v7852_v6 = vpop.eup %7851 }
 0x628   :  { %v3490_v40 = vmul.f32 %v7852_v6, %v3489_v47  ;;  %v7854_v18 = vpop.eup %7853  ;;  %v7682_v47 = vld [vmem:[#allocation17 + $0x38] ss:$12 sps:$4 sm:$0xff]  }
 0x629   :  { %v3493_v23 = vsub.f32 1.0, %v7854_v18  ;;  %v3495_v30 = vmul.f32 %v7854_v18, %v9024_v24  ;;  %v9142_v24 = vld [vmem:[#allocation17 + $0x18] ss:$12 sps:$4 sm:$0xff]   ;;  %v9184_v18 = vld [vmem:[#allocation17 + $0x90] ss:$12 sps:$4 sm:$0xff]  }
 0x62a   :  { %v3491_v1 = vadd.f32 %v3490_v40, %v3474_v7  ;;  %v9156_v6 = vld [vmem:[#allocation17 + $0x4c] ss:$12 sps:$4 sm:$0xff]  }
 0x62b   :  { %v3694_v44 = vpop.f32.mrb[68].mxu0  ;;  %v3735_v31 = vpop.f32.mrb[52].mxu1  ;;  %v9158_v7 = vld [vmem:[#allocation3 + $0x20] ss:$12 sps:$4 sm:$0xff]  }
 0x62c   :  { %7855 = vtanh.f32 %v3491_v1  ;;  %v3744_v9 = vadd.f32 %v3741_v25, %v3694_v44  ;;  %v3696_v4 = vpop.f32.mrb[69].mxu0  ;;  %v7173_v11 = vpop.f32.mrb[53].mxu1  ;;  %v3758_v40 = vadd.f32 %v9040_v43, %v3735_v31  ;;  %v9162_v1 = vld [vmem:[#allocation17 + $0x48] ss:$12 sps:$4 sm:$0xff]   ;;  %v7686_v25 = vld [vmem:[#allocation17 + $0x50] ss:$12 sps:$4 sm:$0xff]  }
 0x62d   :  { %v3698_v39 = vpop.f32.mrb[70].mxu0  ;;  %v3738_v63 = vpop.f32.mrb[54].mxu1  ;;  %v3751_v17 = vadd.f32 %v3742_v50, %v3696_v4  ;;  %v3743_v4 = vunpack.c.h.bf16 %v9158_v7  ;;  %v9170_v31 = vld [vmem:[#allocation17 + $0x60] ss:$12 sps:$4 sm:$0xff]  }
 0x62e   :  { %v6496_v8 = vmul.f32 -1.442695, %v3744_v9  ;;  %v3699_v15 = vpop.f32.mrb[71].mxu0  ;;  %v7174_v59 = vpop.f32.mrb[55].mxu1  ;;  %v9166_v9 = vld [vmem:[#allocation17 + $0x64] ss:$12 sps:$4 sm:$0xff]  }
 0x62f   :  { %v6497_v20 = vmul.f32 -1.442695, %v3751_v17  ;;  %v7690_v39 = vld [vmem:[#allocation17 + $0x68] ss:$12 sps:$4 sm:$0xff]   ;;  %v7694_v15 = vld [vmem:[#allocation17 + $0x80] ss:$12 sps:$4 sm:$0xff]  }
 0x630   :  { %7857 = vpow2.f32 %v6496_v8  ;;  %v9174_v63 = vld [vmem:[#allocation17 + $0x7c] ss:$12 sps:$4 sm:$0xff]   ;;  %v9177_v8 = vld [vmem:[#allocation17 + $0x78] ss:$12 sps:$4 sm:$0xff]   ;;  %v9181_v59 = vld [vmem:[#allocation17 + $0x94] ss:$12 sps:$4 sm:$0xff]  }
 0x631   :  { %7859 = vpow2.f32 %v6497_v20  ;;  %v7698_v20 = vld [vmem:[#allocation17 + $0x98] ss:$12 sps:$4 sm:$0xff]  }
 0x636   :  { %v7856_v26 = vpop.eup %7855 }
 0x637   :  { %v3494_v28 = vmul.f32 %v7856_v26, %v3493_v23  ;;  %v9188_v23 = vld [vmem:[#allocation17 + $0xac] ss:$12 sps:$4 sm:$0xff]  }
 0x639   :  { %v9133_v41 = vadd.f32 %v3495_v30, %v3494_v28  ;;  %v9191_v30 = vld [vmem:[#allocation17 + $0xa8] ss:$12 sps:$4 sm:$0xff]  }
 0x63a   :  { %v7858_v34 = vpop.eup %7857 }
 0x63b   :  { %v3748_v38 = vadd.f32 1.0, %v7858_v34  ;;  %v3766_v51 = vpack.c.bf16 %v9133_v41, %v9133_v41  ;;  %v7860_v45 = vpop.eup %7859  ;;  %v7702_v34 = vld [vmem:[#allocation17 + $0xb0] ss:$12 sps:$4 sm:$0xff]  }
 0x63c   :  { %v3755_v54 = vadd.f32 1.0, %v7860_v45  ;;  %v7704_v45 = vld [vmem:[#allocation14 + $0x20] ss:$12 sps:$4 sm:$0xff]  }
 0x63d   :  { %7861 = vrcp.f32 %v3748_v38  ;;  %3768 = vst [vmem:[#allocation4 + $0x10] sm:$0xf] %v3766_v51  ;;  %3968 = vmatmul.mubr.bf16.vlgmr.msra.gmra.mrb[72].mxu0 %v3766_v51  ;;  %7192 = vmatmul.mubr.bf16.vlgmr.msra.gmra.mrb[56].mxu1 %v3766_v51 }
 0x63e   :  { %4205 = vmatpush1.bf16.msra.mxu0 %v9135_v29  ;;  %7196 = vmatpush3.bf16.msra.mxu1 %v7674_v36  ;;  %7863 = vrcp.f32 %v3755_v54  ;;  %v7706_v54 = vld [vmem:[#allocation14 + $0x50] ss:$12 sps:$4 sm:$0xff]  }
 0x63f   :  { %4206 = vmatprep.subr.bf16.mxu0 %v9139_v19  ;;  %7197 = vmatprep.subr.bf16.mxu1 %v8284_v61 }
 0x640   :  { %4236 = vmatprep.mubr.bf16.mxu0 %v8283_v0  ;;  %7211 = vmatprep.mubr.msk.bf16.mxu1 %vm8285_vm0, %v8284_v61 }
 0x642   :  { %4207 = vmatpush1.bf16.msra.mxu0 %v9142_v24  ;;  %7198 = vmatpush3.bf16.msra.mxu1 %v7678_v37 }
 0x643   :  { %4208 = vmatprep.subr.bf16.mxu0 %v9146_v13  ;;  %7199 = vmatprep.subr.bf16.mxu1 %v8284_v61 }
 0x646   :  { %4209 = vmatpush1.bf16.msra.mxu0 %v9152_v42  ;;  %7200 = vmatpush3.bf16.msra.mxu1 %v7682_v47  ;;  %v7705_v47 = vld [vmem:[#allocation14 + $0x38] ss:$12 sps:$4 sm:$0xff]  }
 0x647   :  { %v7862_v44 = vpop.eup %7861  ;;  %4210 = vmatprep.subr.bf16.mxu0 %v9156_v6  ;;  %7201 = vmatprep.subr.bf16.mxu1 %v8284_v61 }
 0x648   :  { %v3759_v11 = vmul.f32 %v7862_v44, %v3758_v40  ;;  %v7864_v17 = vpop.eup %7863  ;;  %v7707_v40 = vld [vmem:[#allocation14 + $0x68] ss:$12 sps:$4 sm:$0xff]   ;;  %v7709_v44 = vld [vmem:[#allocation14 + $0x98] ss:$12 sps:$4 sm:$0xff]  }
 0x649   :  { %v3762_v26 = vsub.f32 1.0, %v7864_v17  ;;  %v3764_v38 = vmul.f32 %v7864_v17, %v9060_v27  ;;  %v7703_v27 = vld [vmem:[#allocation14 + $0x8] ss:$12 sps:$4 sm:$0xff]  }
 0x64a   :  { %v3760_v50 = vadd.f32 %v3759_v11, %v3743_v4  ;;  %4211 = vmatpush1.bf16.msra.mxu0 %v9162_v1  ;;  %7202 = vmatpush3.bf16.msra.mxu1 %v7686_v25  ;;  %v7708_v25 = vld [vmem:[#allocation14 + $0x80] ss:$12 sps:$4 sm:$0xff]   ;;  %v7710_v4 = vld [vmem:[#allocation14 + $0xb0] ss:$12 sps:$4 sm:$0xff]  }
 0x64b   :  { %4212 = vmatprep.subr.bf16.mxu0 %v9166_v9  ;;  %7203 = vmatprep.subr.bf16.mxu1 %v8284_v61  ;;  %v3773_v11 = vld [vmem:[#allocation2 + $0x3c] sm:$0xff] }
 0x64c   :  { %7865 = vtanh.f32 %v3760_v50  ;;  %v4016_v50 = vunpack.c.l.bf16 %v3773_v11 }
 0x64e   :  { %4213 = vmatpush1.bf16.msra.mxu0 %v9170_v31  ;;  %7204 = vmatpush3.bf16.msra.mxu1 %v7690_v39 }
 0x64f   :  { %4214 = vmatprep.subr.bf16.mxu0 %v9174_v63  ;;  %7205 = vmatprep.subr.bf16.mxu1 %v8284_v61 }
 0x652   :  { %4215 = vmatpush1.bf16.msra.mxu0 %v9177_v8  ;;  %7206 = vmatpush3.bf16.msra.mxu1 %v7694_v15 }
 0x653   :  { %4216 = vmatprep.subr.bf16.mxu0 %v9181_v59  ;;  %7207 = vmatprep.subr.bf16.mxu1 %v8284_v61 }
 0x656   :  { %v7866_v28 = vpop.eup %7865  ;;  %4217 = vmatpush1.bf16.msra.mxu0 %v9184_v18  ;;  %7208 = vmatpush3.bf16.msra.mxu1 %v7698_v20 }
 0x657   :  { %4218 = vmatprep.subr.bf16.mxu0 %v9188_v23  ;;  %7209 = vmatprep.subr.bf16.mxu1 %v8284_v61  ;;  %v3763_v36 = vmul.f32 %v7866_v28, %v3762_v26  ;;  %v4017_v28 = vunpack.c.h.bf16 %v3773_v11  ;;  %v4018_v11 = vunpack.c.h.bf16 %v9128_v58 }
 0x659   :  { %v9196_v51 = vadd.f32 %v3764_v38, %v3763_v36 }
 0x65a   :  { %4219 = vmatpush1.bf16.msra.mxu0 %v9191_v30  ;;  %7210 = vmatpush3.bf16.msra.mxu1 %v7702_v34 }
 0x65b   :  { %v3769_v37 = vpack.c.bf16 %v9196_v51, %v9196_v51  ;;  %4479 = vmatprep.subr.bf16.mxu0 %v9069_v32  ;;  %7215 = vmatprep.subr.bf16.mxu1 %v8284_v61 }
 0x65d   :  { %3771 = vst [vmem:[#allocation5 + $0xc] sm:$0xf] %v3769_v37  ;;  %4237 = vmatmul.mubr.bf16.vlgmr.msra.gmra.mrb[76].mxu0 %v3769_v37  ;;  %7212 = vmatmul.mubr.bf16.vlgmr.msra.gmra.mrb[60].mxu1 %v3769_v37 }
 0x65e   :  { %4480 = vmatpush1.bf16.msra.mxu0 %v9071_v33  ;;  %4511 = vmatprep.mubr.bf16.mxu0 %v8283_v0 }
 0x65f   :  { %4481 = vmatprep.subr.bf16.mxu0 %v9075_v35  ;;  %7231 = vmatprep.mubr.msk.bf16.mxu1 %vm8285_vm0, %v8284_v61 }
 0x660   :  { %7216 = vmatpush3.bf16.msra.mxu1 %v7703_v27 }
 0x661   :  { %7217 = vmatprep.subr.bf16.mxu1 %v8284_v61 }
 0x662   :  { %4482 = vmatpush1.bf16.msra.mxu0 %v9078_v46 }
 0x663   :  { %4483 = vmatprep.subr.bf16.mxu0 %v9082_v22 }
 0x664   :  { %7218 = vmatpush3.bf16.msra.mxu1 %v7704_v45 }
 0x665   :  { %7219 = vmatprep.subr.bf16.mxu1 %v8284_v61 }
 0x666   :  { %4484 = vmatpush1.bf16.msra.mxu0 %v9085_v21 }
 0x667   :  { %4485 = vmatprep.subr.bf16.mxu0 %v9089_v49 }
 0x668   :  { %7220 = vmatpush3.bf16.msra.mxu1 %v7705_v47 }
 0x669   :  { %7221 = vmatprep.subr.bf16.mxu1 %v8284_v61 }
 0x66a   :  { %4486 = vmatpush1.bf16.msra.mxu0 %v9092_v60 }
 0x66b   :  { %4487 = vmatprep.subr.bf16.mxu0 %v9096_v56 }
 0x66c   :  { %7222 = vmatpush3.bf16.msra.mxu1 %v7706_v54 }
 0x66d   :  { %7223 = vmatprep.subr.bf16.mxu1 %v8284_v61 }
 0x66e   :  { %4488 = vmatpush1.bf16.msra.mxu0 %v9099_v57 }
 0x66f   :  { %4489 = vmatprep.subr.bf16.mxu0 %v9103_v12 }
 0x670   :  { %7224 = vmatpush3.bf16.msra.mxu1 %v7707_v40 }
 0x671   :  { %7225 = vmatprep.subr.bf16.mxu1 %v8284_v61 }
 0x672   :  { %4490 = vmatpush1.bf16.msra.mxu0 %v9106_v62 }
 0x673   :  { %4491 = vmatprep.subr.bf16.mxu0 %v9110_v2 }
 0x674   :  { %7226 = vmatpush3.bf16.msra.mxu1 %v7708_v25 }
 0x675   :  { %7227 = vmatprep.subr.bf16.mxu1 %v8284_v61 }
 0x676   :  { %4492 = vmatpush1.bf16.msra.mxu0 %v9113_v5 }
 0x677   :  { %4493 = vmatprep.subr.bf16.mxu0 %v9117_v10 }
 0x678   :  { %7228 = vmatpush3.bf16.msra.mxu1 %v7709_v44 }
 0x679   :  { %7229 = vmatprep.subr.bf16.mxu1 %v8284_v61 }
 0x67a   :  { %4494 = vmatpush1.bf16.msra.mxu0 %v9120_v14 }
 0x67b   :  { %4748 = vmatprep.subr.bf16.mxu0 %v9124_v16 }
 0x67c   :  { %7230 = vmatpush3.bf16.msra.mxu1 %v7710_v4 }
 0x67d   :  { %7235 = vmatprep.subr.bf16.mxu1 %v8284_v61 }
 0x710   :  { %v3969_v39 = vpop.f32.mrb[72].mxu0  ;;  %v4010_v15 = vpop.f32.mrb[56].mxu1 }
 0x711   :  { %v4019_v17 = vadd.f32 %v4016_v50, %v3969_v39  ;;  %v3971_v20 = vpop.f32.mrb[73].mxu0  ;;  %v7193_v26 = vpop.f32.mrb[57].mxu1  ;;  %v4033_v4 = vadd.f32 %v9019_v48, %v4010_v15  ;;  %v4042_v39 = vld [vmem:[#allocation3 + $0x18] sm:$0xff] }
 0x712   :  { %v3973_v34 = vpop.f32.mrb[74].mxu0  ;;  %v4013_v36 = vpop.f32.mrb[58].mxu1  ;;  %v4026_v45 = vadd.f32 %v4017_v28, %v3971_v20 }
 0x713   :  { %v6522_v38 = vmul.f32 -1.442695, %v4019_v17  ;;  %v3974_v37 = vpop.f32.mrb[75].mxu0  ;;  %v7194_v27 = vpop.f32.mrb[59].mxu1  ;;  %v4285_v34 = vunpack.c.l.bf16 %v4042_v39 }
 0x714   :  { %v6523_v47 = vmul.f32 -1.442695, %v4026_v45  ;;  %v4286_v27 = vunpack.c.h.bf16 %v4042_v39 }
 0x715   :  { %7867 = vpow2.f32 %v6522_v38 }
 0x716   :  { %7869 = vpow2.f32 %v6523_v47 }
 0x71f   :  { %v7868_v54 = vpop.eup %7867 }
 0x720   :  { %v4023_v40 = vadd.f32 1.0, %v7868_v54  ;;  %v7870_v25 = vpop.eup %7869 }
 0x721   :  { %v4030_v44 = vadd.f32 1.0, %v7870_v25 }
 0x722   :  { %7871 = vrcp.f32 %v4023_v40 }
 0x723   :  { %7873 = vrcp.f32 %v4030_v44 }
 0x72c   :  { %v7872_v50 = vpop.eup %7871 }
 0x72d   :  { %v4034_v26 = vmul.f32 %v7872_v50, %v4033_v4  ;;  %v7874_v25 = vpop.eup %7873 }
 0x72e   :  { %v4037_v4 = vsub.f32 1.0, %v7874_v25 }
 0x72f   :  { %v4035_v17 = vadd.f32 %v4034_v26, %v4018_v11  ;;  %v4039_v11 = vmul.f32 %v7874_v25, %v9133_v41 }
 0x730   :  { %v4238_v36 = vpop.f32.mrb[76].mxu0  ;;  %v4279_v20 = vpop.f32.mrb[60].mxu1 }
 0x731   :  { %7875 = vtanh.f32 %v4035_v17  ;;  %v4288_v28 = vadd.f32 %v4285_v34, %v4238_v36  ;;  %v4240_v38 = vpop.f32.mrb[77].mxu0  ;;  %v7213_v37 = vpop.f32.mrb[61].mxu1  ;;  %v7711_v34 = vld [vmem:[#allocation17 + $0x8] ss:$12 sps:$4 sm:$0xff]  }
 0x732   :  { %v4242_v45 = vpop.f32.mrb[78].mxu0  ;;  %v4282_v47 = vpop.f32.mrb[62].mxu1  ;;  %v4295_v15 = vadd.f32 %v4286_v27, %v4240_v38  ;;  %v7713_v38 = vld [vmem:[#allocation17 + $0x38] ss:$12 sps:$4 sm:$0xff]   ;;  %v4302_v27 = vadd.f32 %v9040_v43, %v4279_v20  ;;  %v7716_v43 = vld [vmem:[#allocation17 + $0x80] ss:$12 sps:$4 sm:$0xff]  }
 0x733   :  { %v6548_v54 = vmul.f32 -1.442695, %v4288_v28  ;;  %v4243_v40 = vpop.f32.mrb[79].mxu0  ;;  %v7214_v48 = vpop.f32.mrb[63].mxu1  ;;  %v7712_v28 = vld [vmem:[#allocation17 + $0x20] ss:$12 sps:$4 sm:$0xff]  }
 0x734   :  { %v6549_v58 = vmul.f32 -1.442695, %v4295_v15  ;;  %v7714_v45 = vld [vmem:[#allocation17 + $0x50] ss:$12 sps:$4 sm:$0xff]   ;;  %v7715_v15 = vld [vmem:[#allocation17 + $0x68] ss:$12 sps:$4 sm:$0xff]  }
 0x735   :  { %7877 = vpow2.f32 %v6548_v54  ;;  %v4287_v54 = vunpack.c.l.bf16 %v9158_v7  ;;  %v7717_v20 = vld [vmem:[#allocation17 + $0x98] ss:$12 sps:$4 sm:$0xff]  }
 0x736   :  { %7879 = vpow2.f32 %v6549_v58 }
 0x73b   :  { %v7876_v44 = vpop.eup %7875 }
 0x73c   :  { %v4038_v50 = vmul.f32 %v7876_v44, %v4037_v4  ;;  %v7718_v4 = vld [vmem:[#allocation17 + $0xb0] ss:$12 sps:$4 sm:$0xff]  }
 0x73e   :  { %v9233_v26 = vadd.f32 %v4039_v11, %v4038_v50 }
 0x73f   :  { %v7878_v17 = vpop.eup %7877 }
 0x740   :  { %v4292_v39 = vadd.f32 1.0, %v7878_v17  ;;  %v4310_v36 = vpack.c.bf16 %v9233_v26, %v9233_v26  ;;  %v7880_v41 = vpop.eup %7879 }
 0x741   :  { %v4299_v37 = vadd.f32 1.0, %v7880_v41 }
 0x742   :  { %7881 = vrcp.f32 %v4292_v39  ;;  %4312 = vst [vmem:[#allocation4 + $0x14] sm:$0xf] %v4310_v36  ;;  %4512 = vmatmul.mubr.bf16.vlgmr.msra.gmra.mrb[80].mxu0 %v4310_v36  ;;  %7232 = vmatmul.mubr.bf16.vlgmr.msra.gmra.mrb[64].mxu1 %v4310_v36 }
 0x743   :  { %4749 = vmatpush1.bf16.msra.mxu0 %v9135_v29  ;;  %7236 = vmatpush3.bf16.msra.mxu1 %v7711_v34  ;;  %7883 = vrcp.f32 %v4299_v37 }
 0x744   :  { %4750 = vmatprep.subr.bf16.mxu0 %v9139_v19  ;;  %7237 = vmatprep.subr.bf16.mxu1 %v8284_v61 }
 0x745   :  { %4780 = vmatprep.mubr.bf16.mxu0 %v8283_v0  ;;  %7251 = vmatprep.mubr.msk.bf16.mxu1 %vm8285_vm0, %v8284_v61 }
 0x747   :  { %4751 = vmatpush1.bf16.msra.mxu0 %v9142_v24  ;;  %7238 = vmatpush3.bf16.msra.mxu1 %v7712_v28 }
 0x748   :  { %4752 = vmatprep.subr.bf16.mxu0 %v9146_v13  ;;  %7239 = vmatprep.subr.bf16.mxu1 %v8284_v61 }
 0x74b   :  { %4753 = vmatpush1.bf16.msra.mxu0 %v9152_v42  ;;  %7240 = vmatpush3.bf16.msra.mxu1 %v7713_v38 }
 0x74c   :  { %v7882_v47 = vpop.eup %7881  ;;  %4754 = vmatprep.subr.bf16.mxu0 %v9156_v6  ;;  %7241 = vmatprep.subr.bf16.mxu1 %v8284_v61 }
 0x74d   :  { %v4303_v40 = vmul.f32 %v7882_v47, %v4302_v27  ;;  %v7884_v7 = vpop.eup %7883  ;;  %v9298_v47 = vld [vmem:[#allocation2 + $0x50] ss:$12 sps:$4 sm:$0xff]  }
 0x74e   :  { %v4306_v25 = vsub.f32 1.0, %v7884_v7  ;;  %v4308_v50 = vmul.f32 %v7884_v7, %v9196_v51 }
 0x74f   :  { %v4304_v48 = vadd.f32 %v4303_v40, %v4287_v54  ;;  %4755 = vmatpush1.bf16.msra.mxu0 %v9162_v1  ;;  %7242 = vmatpush3.bf16.msra.mxu1 %v7714_v45  ;;  %v9303_v54 = vld [vmem:[%s9496_s7] ss:$0 sm:$0xff] }
 0x750   :  { %4756 = vmatprep.subr.bf16.mxu0 %v9166_v9  ;;  %7243 = vmatprep.subr.bf16.mxu1 %v8284_v61 }
 0x751   :  { %7885 = vtanh.f32 %v4304_v48 }
 0x753   :  { %4757 = vmatpush1.bf16.msra.mxu0 %v9170_v31  ;;  %7244 = vmatpush3.bf16.msra.mxu1 %v7715_v15  ;;  %v4586_v15 = vld [vmem:[#allocation3 + $0xc] sm:$0xff] }
 0x754   :  { %4758 = vmatprep.subr.bf16.mxu0 %v9174_v63  ;;  %7245 = vmatprep.subr.bf16.mxu1 %v8284_v61 }
 0x757   :  { %4759 = vmatpush1.bf16.msra.mxu0 %v9177_v8  ;;  %7246 = vmatpush3.bf16.msra.mxu1 %v7716_v43  ;;  %v4562_v43 = vunpack.c.l.bf16 %v9298_v47 }
 0x758   :  { %4760 = vmatprep.subr.bf16.mxu0 %v9181_v59  ;;  %7247 = vmatprep.subr.bf16.mxu1 %v8284_v61 }
 0x75b   :  { %v7886_v58 = vpop.eup %7885  ;;  %4761 = vmatpush1.bf16.msra.mxu0 %v9184_v18  ;;  %7248 = vmatpush3.bf16.msra.mxu1 %v7717_v20 }
 0x75c   :  { %4762 = vmatprep.subr.bf16.mxu0 %v9188_v23  ;;  %7249 = vmatprep.subr.bf16.mxu1 %v8284_v61  ;;  %v4307_v44 = vmul.f32 %v7886_v58, %v4306_v25  ;;  %v4829_v25 = vunpack.c.l.bf16 %v4586_v15 }
 0x75e   :  { %v9264_v11 = vadd.f32 %v4308_v50, %v4307_v44 }
 0x75f   :  { %4763 = vmatpush1.bf16.msra.mxu0 %v9191_v30  ;;  %7250 = vmatpush3.bf16.msra.mxu1 %v7718_v4 }
 0x760   :  { %v4313_v17 = vpack.c.bf16 %v9264_v11, %v9264_v11  ;;  %5023 = vmatprep.subr.bf16.mxu0 %v9069_v32  ;;  %7255 = vmatprep.subr.bf16.mxu1 %v8284_v61  ;;  %v7719_v32 = vld [vmem:[#allocation14 + $0x8] ss:$12 sps:$4 sm:$0xff]  }
 0x762   :  { %4315 = vst [vmem:[#allocation5 + $0x8] sm:$0xf] %v4313_v17  ;;  %4781 = vmatmul.mubr.bf16.vlgmr.msra.gmra.mrb[84].mxu0 %v4313_v17  ;;  %7252 = vmatmul.mubr.bf16.vlgmr.msra.gmra.mrb[68].mxu1 %v4313_v17 }
 0x763   :  { %5024 = vmatpush1.bf16.msra.mxu0 %v9071_v33  ;;  %5055 = vmatprep.mubr.bf16.mxu0 %v8283_v0  ;;  %v7720_v33 = vld [vmem:[#allocation14 + $0x20] ss:$12 sps:$4 sm:$0xff]  }
 0x764   :  { %5025 = vmatprep.subr.bf16.mxu0 %v9075_v35  ;;  %7271 = vmatprep.mubr.msk.bf16.mxu1 %vm8285_vm0, %v8284_v61  ;;  %v7721_v35 = vld [vmem:[#allocation14 + $0x38] ss:$12 sps:$4 sm:$0xff]  }
 0x765   :  { %7256 = vmatpush3.bf16.msra.mxu1 %v7719_v32  ;;  %v4830_v32 = vunpack.c.h.bf16 %v4586_v15  ;;  %v7741_v15 = vld [vmem:[#allocation18 + $0x70] sm:$0xff]  }
 0x766   :  { %7257 = vmatprep.subr.bf16.mxu1 %v8284_v61 }
 0x767   :  { %5026 = vmatpush1.bf16.msra.mxu0 %v9078_v46  ;;  %v7722_v46 = vld [vmem:[#allocation14 + $0x50] ss:$12 sps:$4 sm:$0xff]  }
 0x768   :  { %5027 = vmatprep.subr.bf16.mxu0 %v9082_v22  ;;  %v7723_v22 = vld [vmem:[#allocation14 + $0x68] ss:$12 sps:$4 sm:$0xff]  }
 0x769   :  { %7258 = vmatpush3.bf16.msra.mxu1 %v7720_v33 }
 0x76a   :  { %7259 = vmatprep.subr.bf16.mxu1 %v8284_v61 }
 0x76b   :  { %5028 = vmatpush1.bf16.msra.mxu0 %v9085_v21  ;;  %v7724_v21 = vld [vmem:[#allocation14 + $0x80] ss:$12 sps:$4 sm:$0xff]  }
 0x76c   :  { %5029 = vmatprep.subr.bf16.mxu0 %v9089_v49  ;;  %v7725_v49 = vld [vmem:[#allocation14 + $0x98] ss:$12 sps:$4 sm:$0xff]  }
 0x76d   :  { %7260 = vmatpush3.bf16.msra.mxu1 %v7721_v35 }
 0x76e   :  { %7261 = vmatprep.subr.bf16.mxu1 %v8284_v61 }
 0x76f   :  { %5030 = vmatpush1.bf16.msra.mxu0 %v9092_v60  ;;  %v7726_v60 = vld [vmem:[#allocation14 + $0xb0] ss:$12 sps:$4 sm:$0xff]  }
 0x770   :  { %5031 = vmatprep.subr.bf16.mxu0 %v9096_v56  ;;  %v4317_v56 = vld [vmem:[#allocation2 + $0x48] sm:$0xff] }
 0x771   :  { %7262 = vmatpush3.bf16.msra.mxu1 %v7722_v46 }
 0x772   :  { %7263 = vmatprep.subr.bf16.mxu1 %v8284_v61 }
 0x773   :  { %5032 = vmatpush1.bf16.msra.mxu0 %v9099_v57  ;;  %v4560_v57 = vunpack.c.l.bf16 %v4317_v56 }
 0x774   :  { %5033 = vmatprep.subr.bf16.mxu0 %v9103_v12 }
 0x775   :  { %7264 = vmatpush3.bf16.msra.mxu1 %v7723_v22 }
 0x776   :  { %7265 = vmatprep.subr.bf16.mxu1 %v8284_v61 }
 0x777   :  { %5034 = vmatpush1.bf16.msra.mxu0 %v9106_v62 }
 0x778   :  { %5035 = vmatprep.subr.bf16.mxu0 %v9110_v2 }
 0x779   :  { %7266 = vmatpush3.bf16.msra.mxu1 %v7724_v21 }
 0x77a   :  { %7267 = vmatprep.subr.bf16.mxu1 %v8284_v61 }
 0x77b   :  { %5036 = vmatpush1.bf16.msra.mxu0 %v9113_v5 }
 0x77c   :  { %5037 = vmatprep.subr.bf16.mxu0 %v9117_v10 }
 0x77d   :  { %7268 = vmatpush3.bf16.msra.mxu1 %v7725_v49 }
 0x77e   :  { %7269 = vmatprep.subr.bf16.mxu1 %v8284_v61 }
 0x77f   :  { %5038 = vmatpush1.bf16.msra.mxu0 %v9120_v14  ;;  %v4561_v14 = vunpack.c.h.bf16 %v4317_v56 }
 0x780   :  { %5291 = vmatprep.subr.bf16.mxu0 %v9124_v16 }
 0x781   :  { %7270 = vmatpush3.bf16.msra.mxu1 %v7726_v60 }
 0x782   :  { %7275 = vmatprep.subr.bf16.mxu1 %v8284_v61 }
 0x815   :  { %v4513_v12 = vpop.f32.mrb[80].mxu0  ;;  %v4554_v62 = vpop.f32.mrb[64].mxu1 }
 0x816   :  { %v4563_v2 = vadd.f32 %v4560_v57, %v4513_v12  ;;  %v4515_v5 = vpop.f32.mrb[81].mxu0  ;;  %v7233_v10 = vpop.f32.mrb[65].mxu1  ;;  %v4577_v40 = vadd.f32 %v9303_v54, %v4554_v62 }
 0x817   :  { %v4517_v16 = vpop.f32.mrb[82].mxu0  ;;  %v4557_v51 = vpop.f32.mrb[66].mxu1  ;;  %v4570_v28 = vadd.f32 %v4561_v14, %v4515_v5  ;;  %v7727_v14 = vld [vmem:[#allocation17 + $0x8] ss:$12 sps:$4 sm:$0xff]  }
 0x818   :  { %v6574_v34 = vmul.f32 -1.442695, %v4563_v2  ;;  %v4518_v39 = vpop.f32.mrb[83].mxu0  ;;  %v7234_v36 = vpop.f32.mrb[67].mxu1 }
 0x819   :  { %v6575_v41 = vmul.f32 -1.442695, %v4570_v28  ;;  %v7729_v39 = vld [vmem:[#allocation17 + $0x38] ss:$12 sps:$4 sm:$0xff]   ;;  %v9321_v36 = vld [vmem:[#allocation3 + $0x8] ss:$12 sps:$4 sm:$0xff]  }
 0x81a   :  { %7887 = vpow2.f32 %v6574_v34  ;;  %v7728_v34 = vld [vmem:[#allocation17 + $0x20] ss:$12 sps:$4 sm:$0xff]  }
 0x81b   :  { %7889 = vpow2.f32 %v6575_v41 }
 0x824   :  { %v7888_v38 = vpop.eup %7887 }
 0x825   :  { %v4567_v37 = vadd.f32 1.0, %v7888_v38  ;;  %v7890_v27 = vpop.eup %7889 }
 0x826   :  { %v4574_v45 = vadd.f32 1.0, %v7890_v27 }
 0x827   :  { %7891 = vrcp.f32 %v4567_v37  ;;  %v7731_v37 = vld [vmem:[#allocation17 + $0x68] ss:$12 sps:$4 sm:$0xff]  }
 0x828   :  { %7893 = vrcp.f32 %v4574_v45 }
 0x831   :  { %v7892_v48 = vpop.eup %7891 }
 0x832   :  { %v4578_v7 = vmul.f32 %v7892_v48, %v4577_v40  ;;  %v7894_v60 = vpop.eup %7893  ;;  %v7737_v40 = vld [vmem:[#allocation18 + $0x50] sm:$0xff]   ;;  %v7740_v48 = vld [vmem:[#allocation18 + $0x68] sm:$0xff]  }
 0x833   :  { %v4581_v57 = vsub.f32 1.0, %v7894_v60  ;;  %v4583_v2 = vmul.f32 %v7894_v60, %v9233_v26  ;;  %v7759_v60 = vld [vmem:[#allocation20] sm:$0xff]  }
 0x834   :  { %v4579_v20 = vadd.f32 %v4578_v7, %v4562_v43  ;;  %v7742_v43 = vld [vmem:[#allocation18 + $0x78] sm:$0xff]   ;;  %v9351_v7 = vld [vmem:[#allocation18] sm:$0xff]  }
 0x835   :  { %v4782_v58 = vpop.f32.mrb[84].mxu0  ;;  %v4823_v4 = vpop.f32.mrb[68].mxu1 }
 0x836   :  { %7895 = vtanh.f32 %v4579_v20  ;;  %v4832_v44 = vadd.f32 %v4829_v25, %v4782_v58  ;;  %v4784_v50 = vpop.f32.mrb[85].mxu0  ;;  %v7253_v17 = vpop.f32.mrb[69].mxu1  ;;  %v4861_v20 = vld [vmem:[#allocation2 + $0x54] sm:$0xff] }
 0x837   :  { %v4786_v33 = vpop.f32.mrb[86].mxu0  ;;  %v4826_v35 = vpop.f32.mrb[70].mxu1  ;;  %v4839_v49 = vadd.f32 %v4830_v32, %v4784_v50  ;;  %v5104_v25 = vunpack.c.l.bf16 %v4861_v20  ;;  %v5105_v32 = vunpack.c.h.bf16 %v4861_v20 }
 0x838   :  { %v6600_v46 = vmul.f32 -1.442695, %v4832_v44  ;;  %v4787_v22 = vpop.f32.mrb[87].mxu0  ;;  %v7254_v21 = vpop.f32.mrb[71].mxu1 }
 0x839   :  { %v6601_v56 = vmul.f32 -1.442695, %v4839_v49 }
 0x83a   :  { %7897 = vpow2.f32 %v6600_v46 }
 0x83b   :  { %7899 = vpow2.f32 %v6601_v56  ;;  %v7760_v56 = vld [vmem:[#allocation20 + $0x8] sm:$0xff]  }
 0x840   :  { %v7896_v12 = vpop.eup %7895 }
 0x841   :  { %v4582_v62 = vmul.f32 %v7896_v12, %v4581_v57  ;;  %v7761_v12 = vld [vmem:[#allocation20 + $0x10] sm:$0xff]  }
 0x843   :  { %v9308_v5 = vadd.f32 %v4583_v2, %v4582_v62  ;;  %v7762_v62 = vld [vmem:[#allocation20 + $0x18] sm:$0xff]  }
 0x844   :  { %v7898_v10 = vpop.eup %7897 }
 0x845   :  { %v4836_v16 = vadd.f32 1.0, %v7898_v10  ;;  %v4854_v51 = vpack.c.bf16 %v9308_v5, %v9308_v5  ;;  %v7900_v26 = vpop.eup %7899 }
 0x847   :  { %7901 = vrcp.f32 %v4836_v16  ;;  %4856 = vst [vmem:[#allocation4 + $0x18] sm:$0xf] %v4854_v51  ;;  %5056 = vmatmul.mubr.bf16.vlgmr.msra.gmra.mrb[88].mxu0 %v4854_v51  ;;  %7272 = vmatmul.mubr.bf16.vlgmr.msra.gmra.mrb[72].mxu1 %v4854_v51  ;;  %v7764_v16 = vld [vmem:[#allocation20 + $0x28] sm:$0xff]  }
 0x848   :  { %5292 = vmatpush1.bf16.msra.mxu0 %v9135_v29  ;;  %7276 = vmatpush3.bf16.msra.mxu1 %v7727_v14  ;;  %v4843_v29 = vadd.f32 1.0, %v7900_v26  ;;  %v7763_v14 = vld [vmem:[#allocation20 + $0x20] sm:$0xff]  }
 0x849   :  { %5293 = vmatprep.subr.bf16.mxu0 %v9139_v19  ;;  %7277 = vmatprep.subr.bf16.mxu1 %v8284_v61  ;;  %v9326_v19 = vld [vmem:[%s9500_s11] ss:$0 sm:$0xff] }
 0x84a   :  { %5323 = vmatprep.mubr.bf16.mxu0 %v8283_v0  ;;  %7291 = vmatprep.mubr.msk.bf16.mxu1 %vm8285_vm0, %v8284_v61  ;;  %v4846_v0 = vadd.f32 %v9326_v19, %v4823_v4  ;;  %7903 = vrcp.f32 %v4843_v29  ;;  %v5129_v29 = vld [vmem:[#allocation3] sm:$0xff] }
 0x84c   :  { %5294 = vmatpush1.bf16.msra.mxu0 %v9142_v24  ;;  %7278 = vmatpush3.bf16.msra.mxu1 %v7728_v34  ;;  %v7730_v24 = vld [vmem:[#allocation17 + $0x50] ss:$12 sps:$4 sm:$0xff]  }
 0x84d   :  { %5295 = vmatprep.subr.bf16.mxu0 %v9146_v13  ;;  %7279 = vmatprep.subr.bf16.mxu1 %v8284_v61  ;;  %v4831_v13 = vunpack.c.h.bf16 %v9321_v36 }
 0x850   :  { %5296 = vmatpush1.bf16.msra.mxu0 %v9152_v42  ;;  %7280 = vmatpush3.bf16.msra.mxu1 %v7729_v39  ;;  %v7732_v42 = vld [vmem:[#allocation17 + $0x80] ss:$12 sps:$4 sm:$0xff]  }
 0x851   :  { %v7902_v28 = vpop.eup %7901  ;;  %5297 = vmatprep.subr.bf16.mxu0 %v9156_v6  ;;  %7281 = vmatprep.subr.bf16.mxu1 %v8284_v61 }
 0x852   :  { %v4847_v41 = vmul.f32 %v7902_v28, %v4846_v0  ;;  %v5106_v0 = vunpack.c.h.bf16 %v9298_v47 }
 0x854   :  { %v4848_v38 = vadd.f32 %v4847_v41, %v4831_v13  ;;  %5298 = vmatpush1.bf16.msra.mxu0 %v9162_v1  ;;  %7282 = vmatpush3.bf16.msra.mxu1 %v7730_v24  ;;  %v7904_v6 = vpop.eup %7903  ;;  %v7733_v1 = vld [vmem:[#allocation17 + $0x98] ss:$12 sps:$4 sm:$0xff]   ;;  %v5372_v13 = vunpack.c.l.bf16 %v5129_v29 }
 0x855   :  { %5299 = vmatprep.subr.bf16.mxu0 %v9166_v9  ;;  %7283 = vmatprep.subr.bf16.mxu1 %v8284_v61  ;;  %v4850_v9 = vsub.f32 1.0, %v7904_v6  ;;  %v4852_v45 = vmul.f32 %v7904_v6, %v9264_v11  ;;  %v7738_v11 = vld [vmem:[#allocation18 + $0x58] sm:$0xff]  }
 0x856   :  { %7905 = vtanh.f32 %v4848_v38 }
 0x858   :  { %5300 = vmatpush1.bf16.msra.mxu0 %v9170_v31  ;;  %7284 = vmatpush3.bf16.msra.mxu1 %v7731_v37  ;;  %v7734_v31 = vld [vmem:[#allocation17 + $0xb0] ss:$12 sps:$4 sm:$0xff]  }
 0x859   :  { %5301 = vmatprep.subr.bf16.mxu0 %v9174_v63  ;;  %7285 = vmatprep.subr.bf16.mxu1 %v8284_v61 }
 0x85c   :  { %5302 = vmatpush1.bf16.msra.mxu0 %v9177_v8  ;;  %7286 = vmatpush3.bf16.msra.mxu1 %v7732_v42 }
 0x85d   :  { %5303 = vmatprep.subr.bf16.mxu0 %v9181_v59  ;;  %7287 = vmatprep.subr.bf16.mxu1 %v8284_v61 }
 0x860   :  { %v7906_v27 = vpop.eup %7905  ;;  %5304 = vmatpush1.bf16.msra.mxu0 %v9184_v18  ;;  %7288 = vmatpush3.bf16.msra.mxu1 %v7733_v1  ;;  %v7735_v18 = vld [vmem:[#allocation18 + $0x40] sm:$0xff]   ;;  %v5373_v1 = vunpack.c.h.bf16 %v5129_v29 }
 0x861   :  { %5305 = vmatprep.subr.bf16.mxu0 %v9188_v23  ;;  %7289 = vmatprep.subr.bf16.mxu1 %v8284_v61  ;;  %v4851_v63 = vmul.f32 %v7906_v27, %v4850_v9  ;;  %v7736_v23 = vld [vmem:[#allocation18 + $0x48] sm:$0xff]  }
 0x863   :  { %v9346_v8 = vadd.f32 %v4852_v45, %v4851_v63 }
 0x864   :  { %5306 = vmatpush1.bf16.msra.mxu0 %v9191_v30  ;;  %7290 = vmatpush3.bf16.msra.mxu1 %v7734_v31  ;;  %v7739_v30 = vld [vmem:[#allocation18 + $0x60] sm:$0xff]  }
 0x865   :  { %v4857_v59 = vpack.c.bf16 %v9346_v8, %v9346_v8  ;;  %7295 = vmatprep.subr.bf16.mxu0 %v7735_v18  ;;  %7343 = vmatprep.subr.bf16.mxu1 %v7759_v60 }
 0x867   :  { %4859 = vst [vmem:[#allocation5 + $0x4] sm:$0xf] %v4857_v59  ;;  %5324 = vmatmul.mubr.bf16.vlgmr.msra.gmra.mrb[92].mxu0 %v4857_v59  ;;  %7292 = vmatmul.mubr.bf16.vlgmr.msra.gmra.mrb[76].mxu1 %v4857_v59 }
 0x868   :  { %7296 = vmatpush3.bf16.msra.mxu0 %v7735_v18  ;;  %7344 = vmatpush3.bf16.msra.mxu1 %v7759_v60  ;;  %v7745_v60 = vld [vmem:[#allocation5 + $0x8] sm:$0xff]  }
 0x869   :  { %7297 = vmatprep.subr.bf16.mxu0 %v7736_v23  ;;  %7345 = vmatprep.subr.bf16.mxu1 %v7760_v56 }
 0x86c   :  { %7298 = vmatpush3.bf16.msra.mxu0 %v7736_v23  ;;  %7346 = vmatpush3.bf16.msra.mxu1 %v7760_v56  ;;  %v7746_v56 = vld [vmem:[#allocation5 + $0x10] sm:$0xff]  }
 0x86d   :  { %7299 = vmatprep.subr.bf16.mxu0 %v7737_v40  ;;  %7347 = vmatprep.subr.bf16.mxu1 %v7761_v12 }
 0x870   :  { %7300 = vmatpush3.bf16.msra.mxu0 %v7737_v40  ;;  %7348 = vmatpush3.bf16.msra.mxu1 %v7761_v12  ;;  %v7751_v12 = vld [vmem:[#allocation18 + $0x18] sm:$0xff]  }
 0x871   :  { %7301 = vmatprep.subr.bf16.mxu0 %v7738_v11  ;;  %7349 = vmatprep.subr.bf16.mxu1 %v7762_v62 }
 0x874   :  { %7302 = vmatpush3.bf16.msra.mxu0 %v7738_v11  ;;  %7350 = vmatpush3.bf16.msra.mxu1 %v7762_v62  ;;  %v7752_v62 = vld [vmem:[#allocation18 + $0x20] sm:$0xff]  }
 0x875   :  { %7303 = vmatprep.subr.bf16.mxu0 %v7739_v30  ;;  %7351 = vmatprep.subr.bf16.mxu1 %v7763_v14 }
 0x878   :  { %7304 = vmatpush3.bf16.msra.mxu0 %v7739_v30  ;;  %7352 = vmatpush3.bf16.msra.mxu1 %v7763_v14  ;;  %v7756_v14 = vld [vmem:[#allocation4 + $0x8] sm:$0xff]  }
 0x879   :  { %7305 = vmatprep.subr.bf16.mxu0 %v7740_v48  ;;  %7353 = vmatprep.subr.bf16.mxu1 %v7764_v16 }
 0x87c   :  { %7306 = vmatpush3.bf16.msra.mxu0 %v7740_v48  ;;  %7354 = vmatpush3.bf16.msra.mxu1 %v7764_v16  ;;  %v7757_v16 = vld [vmem:[#allocation4 + $0x10] sm:$0xff]  }
 0x87d   :  { %7307 = vmatprep.subr.bf16.mxu0 %v7741_v15 }
 0x880   :  { %7308 = vmatpush3.bf16.msra.mxu0 %v7741_v15 }
 0x881   :  { %7309 = vmatprep.subr.bf16.mxu0 %v7742_v43 }
 0x884   :  { %7310 = vmatpush3.bf16.msra.mxu0 %v7742_v43 }
 0x885   :  { %7319 = vmatprep.subr.bf16.mxu0 %v9351_v7 }
 0x91a   :  { %v5057_v58 = vpop.f32.mrb[88].mxu0  ;;  %v5098_v4 = vpop.f32.mrb[72].mxu1 }
 0x91b   :  { %v5107_v44 = vadd.f32 %v5104_v25, %v5057_v58  ;;  %v5059_v50 = vpop.f32.mrb[89].mxu0  ;;  %v7273_v17 = vpop.f32.mrb[73].mxu1  ;;  %v5121_v26 = vadd.f32 %v9303_v54, %v5098_v4 }
 0x91c   :  { %v5061_v33 = vpop.f32.mrb[90].mxu0  ;;  %v5101_v35 = vpop.f32.mrb[74].mxu1  ;;  %v5114_v49 = vadd.f32 %v5105_v32, %v5059_v50 }
 0x91d   :  { %v6626_v46 = vmul.f32 -1.442695, %v5107_v44  ;;  %v5062_v22 = vpop.f32.mrb[91].mxu0  ;;  %v7274_v21 = vpop.f32.mrb[75].mxu1  ;;  %v5374_v44 = vunpack.c.l.bf16 %v9321_v36  ;;  %v7748_v36 = vld [vmem:[#allocation18 + $0x10] sm:$0xff]  }
 0x91e   :  { %v6627_v57 = vmul.f32 -1.442695, %v5114_v49 }
 0x91f   :  { %7907 = vpow2.f32 %v6626_v46 }
 0x920   :  { %7909 = vpow2.f32 %v6627_v57  ;;  %v7749_v57 = vld [vmem:[#allocation5 + $0x18] sm:$0xff]  }
 0x929   :  { %v7908_v2 = vpop.eup %7907 }
 0x92a   :  { %v5111_v10 = vadd.f32 1.0, %v7908_v2  ;;  %v7910_v51 = vpop.eup %7909  ;;  %v7753_v2 = vld [vmem:[#allocation18 + $0x28] sm:$0xff]  }
 0x92b   :  { %v5118_v34 = vadd.f32 1.0, %v7910_v51 }
 0x92c   :  { %7911 = vrcp.f32 %v5111_v10  ;;  %v7754_v10 = vld [vmem:[#allocation18 + $0x30] sm:$0xff]  }
 0x92d   :  { %7913 = vrcp.f32 %v5118_v34  ;;  %v7765_v34 = vld [vmem:[#allocation20 + $0x30] sm:$0xff]  }
 0x92e   :  { %7355 = vmatprep.subr.bf16.mxu1 %v7765_v34 }
 0x92f   :  { %7356 = vmatpush3.bf16.msra.mxu1 %v7765_v34 }
 0x936   :  { %v7912_v39 = vpop.eup %7911 }
 0x937   :  { %v5122_v24 = vmul.f32 %v7912_v39, %v5121_v26  ;;  %v7914_v59 = vpop.eup %7913  ;;  %v7766_v26 = vld [vmem:[#allocation20 + $0x38] sm:$0xff]   ;;  %v6678_v39 = vld [vmem:[%s9502_s13] ss:$0 sm:$0xff] }
 0x938   :  { %v5125_v18 = vsub.f32 1.0, %v7914_v59  ;;  %v5127_v11 = vmul.f32 %v7914_v59, %v9308_v5  ;;  %7357 = vmatprep.subr.bf16.mxu1 %v7766_v26 }
 0x939   :  { %v5123_v28 = vadd.f32 %v5122_v24, %v5106_v0  ;;  %7358 = vmatpush3.bf16.msra.mxu1 %v7766_v26 }
 0x93a   :  { %v5325_v41 = vpop.f32.mrb[92].mxu0  ;;  %v5366_v38 = vpop.f32.mrb[76].mxu1 }
 0x93b   :  { %7915 = vtanh.f32 %v5123_v28  ;;  %v5375_v37 = vadd.f32 %v5372_v13, %v5325_v41  ;;  %v5327_v42 = vpop.f32.mrb[93].mxu0  ;;  %v7293_v6 = vpop.f32.mrb[77].mxu1  ;;  %v5389_v58 = vadd.f32 %v9326_v19, %v5366_v38  ;;  %v7747_v19 = vld [vmem:[#allocation18 + $0x8] sm:$0xff]  }
 0x93c   :  { %v5329_v9 = vpop.f32.mrb[94].mxu0  ;;  %v5369_v27 = vpop.f32.mrb[78].mxu1  ;;  %v5382_v45 = vadd.f32 %v5373_v1, %v5327_v42 }
 0x93d   :  { %v6652_v31 = vmul.f32 -1.442695, %v5375_v37  ;;  %v5330_v54 = vpop.f32.mrb[95].mxu0  ;;  %v7294_v63 = vpop.f32.mrb[79].mxu1 }
 0x93e   :  { %v6653_v47 = vmul.f32 -1.442695, %v5382_v45 }
 0x93f   :  { %7917 = vpow2.f32 %v6652_v31 }
 0x940   :  { %7919 = vpow2.f32 %v6653_v47 }
 0x945   :  { %v7916_v23 = vpop.eup %7915 }
 0x946   :  { %v5126_v40 = vmul.f32 %v7916_v23, %v5125_v18 }
 0x948   :  { %v5128_v30 = vadd.f32 %v5127_v11, %v5126_v40 }
 0x949   :  { %v7918_v48 = vpop.eup %7917 }
 0x94a   :  { %v5397_v15 = vpack.c.bf16 %v5128_v30, %v5128_v30  ;;  %5402 = vst [vmem:[#allocation22] sm:$0xff] %v5128_v30  ;;  %v5379_v43 = vadd.f32 1.0, %v7918_v48  ;;  %v7920_v20 = vpop.eup %7919 }
 0x94b   :  { %v5386_v25 = vadd.f32 1.0, %v7920_v20 }
 0x94c   :  { %5399 = vst [vmem:[#allocation4 + $0x1c] sm:$0xf] %v5397_v15  ;;  %7921 = vrcp.f32 %v5379_v43 }
 0x94d   :  { %7923 = vrcp.f32 %v5386_v25  ;;  %v6679_v25 = vld [vmem:[%s9504_s15] ss:$0 sm:$0xff] }
 0x953   :  { %v7758_v51 = vld [vmem:[#allocation4 + $0x18] sm:$0xff]  }
 0x956   :  { %v7922_v4 = vpop.eup %7921 }
 0x957   :  { %v5390_v50 = vmul.f32 %v7922_v4, %v5389_v58  ;;  %v7924_v5 = vpop.eup %7923 }
 0x958   :  { %v5393_v32 = vsub.f32 1.0, %v7924_v5  ;;  %v5395_v46 = vmul.f32 %v7924_v5, %v9346_v8  ;;  %v7750_v8 = vld [vmem:[#allocation4] sm:$0xff]  }
 0x959   :  { %v5391_v17 = vadd.f32 %v5390_v50, %v5374_v44 }
 0x95b   :  { %7925 = vtanh.f32 %v5391_v17 }
 0x965   :  { %v7926_v33 = vpop.eup %7925 }
 0x966   :  { %v5394_v35 = vmul.f32 %v7926_v33, %v5393_v32 }
 0x968   :  { %v5396_v22 = vadd.f32 %v5395_v46, %v5394_v35 }
 0x96a   :  { %v5400_v21 = vpack.c.bf16 %v5396_v22, %v5396_v22  ;;  %5403 = vst [vmem:[#allocation24] sm:$0xff] %v5396_v22 }
 0x96c   :  { %5401 = vst [vmem:[#allocation5] sm:$0xf] %v5400_v21 }
 0x973   :  { %v7743_v49 = vld [vmem:[#allocation5] sm:$0xff]  }
 0x974   :  { %7311 = vmatprep.mubr.bf16.mxu0 %v7743_v49 }
 0x975   :  { %7312 = vmatmul.mubr.bf16.vlgmr.msra.gmra.mrb[96].mxu0 %v7745_v60 }
 0x976   :  { %7320 = vmatpush3.bf16.msra.mxu0 %v9351_v7  ;;  %7315 = vmatprep.mubr.bf16.mxu0 %v7746_v56  ;;  %v7755_v7 = vld [vmem:[#allocation18 + $0x38] sm:$0xff]  }
 0x977   :  { %7321 = vmatprep.subr.bf16.mxu0 %v7747_v19 }
 0x97a   :  { %7322 = vmatpush3.bf16.msra.mxu0 %v7747_v19  ;;  %v6688_v19 = vld [vmem:[%s9505_s16] ss:$0 sm:$0xff]  ;;  %s8286_s16 = smov [#allocation22]  }
 0x97b   :  { %7323 = vmatprep.subr.bf16.mxu0 %v7748_v36  ;;  %s6108_s14 = sshll.u32 %s8286_s16, 4  ;;  %s6109_s14 = int_to_ptr.vmem [resolvable:$true] %s6108_s14 }
 0x97c   :  { %s8166_s23 = scalar_lea.vmem %s6109_s14, 128  ;;  %p8171_p3 = scmp.lt.s32.totalorder %s6109_s14, %s6109_s14 }
 0x97d   :  { %7316 = vmatmul.mubr.bf16.gmra.mrb[100].mxu0 %v7749_v57  ;;  %p8167_p2 = scmp.ne.s32.totalorder %s6109_s14, %s8166_s23  ;;  %p8172_p4 = scmp.lt.s32.totalorder %s8166_s23, %s8166_s23 }
 0x97e   :  { %7324 = vmatpush3.bf16.msra.mxu0 %v7748_v36  ;;  %7335 = vmatprep.mubr.bf16.mxu0 %v7750_v8 }
 0x97f   :  { %7325 = vmatprep.subr.bf16.mxu0 %v7751_v12  ;;  %p8173_p5 = por %p8172_p4, %p8171_p3 }
 0x981   :  { %p8174_p6 = pnand %p8173_p5, %p8167_p2 }
 0x982   :  { %7326 = vmatpush3.bf16.msra.mxu0 %v7751_v12 }
 0x983   :  { %7327 = vmatprep.subr.bf16.mxu0 %v7752_v62 }
 0x986   :  { %7328 = vmatpush3.bf16.msra.mxu0 %v7752_v62 }
 0x987   :  { %7329 = vmatprep.subr.bf16.mxu0 %v7753_v2 }
 0x98a   :  { %7330 = vmatpush3.bf16.msra.mxu0 %v7753_v2 }
 0x98b   :  { %7331 = vmatprep.subr.bf16.mxu0 %v7754_v10 }
 0x98e   :  { %7332 = vmatpush3.bf16.msra.mxu0 %v7754_v10 }
 0x98f   :  { %7333 = vmatprep.subr.bf16.mxu0 %v7755_v7 }
 0x992   :  { %7334 = vmatpush3.bf16.msra.mxu0 %v7755_v7 }
 0x995   :  { %7336 = vmatmul.mubr.bf16.vlgmr.msra.gmra.mrb[96].mxu0 %v7756_v14 }
 0x996   :  { %7339 = vmatprep.mubr.bf16.mxu0 %v7757_v16 }
 0x99d   :  { %7340 = vmatmul.mubr.bf16.gmra.mrb[100].mxu0 %v7758_v51 }
 0xa68   :  { %v7337_v29 = vpop.f32.mrb[96].mxu0 }
 0xa69   :  { %v5696_v0 = vpop.f32.mrb[97].mxu0  ;;  %v9366_v13 = vadd.f32 %v7337_v29, %v6678_v39 }
 0xa6a   :  { %v9364_v24 = vadd.f32 %v6678_v39, %v5696_v0  ;;  %v7338_v28 = vpop.f32.mrb[98].mxu0 }
 0xa6b   :  { %v9368_v41 = vadd.f32 %v7338_v28, %v6678_v39  ;;  %v5699_v38 = vpop.f32.mrb[99].mxu0  ;;  %v5744_v9 = vmax.f32 %v9366_v13, 0.0 }
 0xa6c   :  { %v9370_v37 = vadd.f32 %v6678_v39, %v5699_v38  ;;  %v5742_v6 = vmax.f32 %v9364_v24, 0.0  ;;  %v9534_v38 = vlaneseq }
 0xa6d   :  { %v5745_v42 = vmax.f32 %v9368_v41, 0.0 }
 0xa6e   :  { %v5743_v1 = vmax.f32 %v9370_v37, 0.0 }
 0xa6f   :  { %v5751_v54 = vpack.c.bf16 %v5745_v42, %v5744_v9 }
 0xa70   :  { %v5750_v27 = vpack.c.bf16 %v5743_v1, %v5742_v6  ;;  %v7341_v31 = vpop.f32.mrb[100].mxu0 }
 0xa71   :  { %v5712_v63 = vpop.f32.mrb[101].mxu0  ;;  %v9386_v47 = vadd.f32 %v7341_v31, %v6678_v39 }
 0xa72   :  { %v9384_v45 = vadd.f32 %v6678_v39, %v5712_v63  ;;  %v7342_v59 = vpop.f32.mrb[102].mxu0  ;;  %7359 = vmatprep.mubr.bf16.mxu1 %v5750_v27  ;;  %v5946_v27 = vand.u32 127, %v9534_v38 }
 0xa73   :  { %v9388_v18 = vadd.f32 %v7342_v59, %v6678_v39  ;;  %v5715_v23 = vpop.f32.mrb[103].mxu0  ;;  %7360 = vmatmul.mubr.bf16.vlgmr.msra.gmra.mrb[80].mxu1 %v5751_v54  ;;  %v5748_v15 = vmax.f32 %v9386_v47, 0.0 }
 0xa74   :  { %v9390_v40 = vadd.f32 %v6678_v39, %v5715_v23  ;;  %v5746_v30 = vmax.f32 %v9384_v45, 0.0  ;;  %v5949_v63 = vsub.s32 %v5946_v27, %v8669_v52 }
 0xa75   :  { %v5749_v11 = vmax.f32 %v9388_v18, 0.0 }
 0xa76   :  { %v5747_v48 = vmax.f32 %v9390_v40, 0.0 }
 0xa77   :  { %v5753_v20 = vpack.c.bf16 %v5749_v11, %v5748_v15 }
 0xa78   :  { %v5752_v43 = vpack.c.bf16 %v5747_v48, %v5746_v30 }
 0xa7a   :  { %7363 = vmatprep.mubr.bf16.mxu1 %v5752_v43 }
 0xa7b   :  { %7364 = vmatmul.mubr.bf16.gmra.mrb[84].mxu1 %v5753_v20 }
 0xb46   :  { %v7361_v58 = vpop.f32.mrb[80].mxu1 }
 0xb47   :  { %v5868_v4 = vadd.f32 %v7361_v58, %v6679_v25  ;;  %v5859_v44 = vpop.f32.mrb[81].mxu1 }
 0xb48   :  { %v5860_v50 = vadd.f32 %v6679_v25, %v5859_v44  ;;  %v7362_v17 = vpop.f32.mrb[82].mxu1 }
 0xb49   :  { %7927 = vtanh.f32 %v5868_v4  ;;  %v5871_v5 = vadd.f32 %v7362_v17, %v6679_v25  ;;  %v5862_v32 = vpop.f32.mrb[83].mxu1 }
 0xb4a   :  { %7929 = vtanh.f32 %v5860_v50  ;;  %v5863_v33 = vadd.f32 %v6679_v25, %v5862_v32 }
 0xb4b   :  { %7931 = vtanh.f32 %v5871_v5 }
 0xb4c   :  { %7933 = vtanh.f32 %v5863_v33 }
 0xb4e   :  { %v7365_v35 = vpop.f32.mrb[84].mxu1 }
 0xb4f   :  { %v5884_v46 = vadd.f32 %v7365_v35, %v6679_v25  ;;  %v5875_v22 = vpop.f32.mrb[85].mxu1 }
 0xb50   :  { %v5876_v21 = vadd.f32 %v6679_v25, %v5875_v22  ;;  %v7366_v49 = vpop.f32.mrb[86].mxu1  ;;  %v6689_v22 = vld [vmem:[#allocation9] ss:$0 sm:$0xff] }
 0xb51   :  { %v5878_v60 = vpop.f32.mrb[87].mxu1  ;;  %v5887_v56 = vadd.f32 %v7366_v49, %v6679_v25  ;;  %vm5936_vm8 = vcmp.lt.s32.totalorder %v8669_v52, %v6689_v22 }
 0xb52   :  { %7935 = vtanh.f32 %v5876_v21  ;;  %v5879_v36 = vadd.f32 %v6679_v25, %v5878_v60 }
 0xb53   :  { %v7928_v57 = vpop.eup %7927  ;;  %7937 = vtanh.f32 %v5884_v46 }
 0xb54   :  { %v7930_v12 = vpop.eup %7929  ;;  %7939 = vtanh.f32 %v5879_v36  ;;  %v5907_v8 = vmul.f32 %v7928_v57, %v6688_v19 }
 0xb55   :  { %v7932_v62 = vpop.eup %7931  ;;  %v5905_v2 = vmul.f32 %v7930_v12, %v6688_v19  ;;  %7941 = vtanh.f32 %v5887_v56 }
 0xb56   :  { %v7934_v10 = vpop.eup %7933  ;;  %5917 = vadd.xlane.f32.xlu1 %v5907_v8  ;;  %v5908_v7 = vmul.f32 %v7932_v62, %v6688_v19 }
 0xb57   :  { %5913 = vadd.xlane.f32.xlu0 %v5905_v2  ;;  %v5906_v14 = vmul.f32 %v7934_v10, %v6688_v19 }
 0xb5a   :  { %5919 = vadd.xlane.f32.xlu1 %v5908_v7 }
 0xb5b   :  { %5915 = vadd.xlane.f32.xlu0 %v5906_v14 }
 0xb5c   :  { %v7936_v16 = vpop.eup %7935 }
 0xb5d   :  { %v7938_v51 = vpop.eup %7937  ;;  %v5909_v34 = vmul.f32 %v7936_v16, %v6688_v19 }
 0xb5e   :  { %v7940_v26 = vpop.eup %7939  ;;  %v5911_v0 = vmul.f32 %v7938_v51, %v6688_v19 }
 0xb5f   :  { %5921 = vadd.xlane.f32.xlu0 %v5909_v34  ;;  %v5910_v39 = vmul.f32 %v7940_v26, %v6688_v19  ;;  %v7942_v29 = vpop.eup %7941  ;;  %v6690_v34 = vsel %vm5936_vm8, 1.0, %v8284_v61 }
 0xb60   :  { %v5912_v28 = vmul.f32 %v7942_v29, %v6688_v19 }
 0xb61   :  { %5923 = vadd.xlane.f32.xlu1 %v5910_v39 }
 0xb63   :  { %5925 = vadd.xlane.f32.xlu0 %v5911_v0 }
 0xb65   :  { %5927 = vadd.xlane.f32.xlu1 %v5912_v28 }
 0xbe3   :  { %v5918_v31 = vpop.xlane.xlu1 %5917 }
 0xbe4   :  { %v5914_v54 = vpop.xlane.xlu0 %5913  ;;  %v5958_v25 = vrot.slane %v5918_v31, %v5949_v63 }
 0xbe5   :  { %v5950_v43 = vrot.slane %v5914_v54, %v5949_v63 }
 0xbe7   :  { %v5920_v59 = vpop.xlane.xlu1 %5919 }
 0xbe8   :  { %v5916_v23 = vpop.xlane.xlu0 %5915  ;;  %v5962_v58 = vrot.slane %v5920_v59, %v5949_v63 }
 0xbe9   :  { %v5954_v20 = vrot.slane %v5916_v23, %v5949_v63 }
 0xbeb   :  { %v5980_v4 = vsel %vm5979_vm1, %v5954_v20, %v5950_v43  ;;  %v6050_v20 = vsub.s32 4, %v8669_v52 }
 0xbec   :  { %v5982_v44 = vsel %vm5981_vm2, %v5958_v25, %v5980_v4  ;;  %v5922_v50 = vpop.xlane.xlu0 %5921  ;;  %v6043_v4 = vsub.s32 3, %v8669_v52 }
 0xbed   :  { %v5984_v17 = vsel %vm5983_vm3, %v5962_v58, %v5982_v44  ;;  %v5966_v5 = vrot.slane %v5922_v50, %v5949_v63  ;;  %v6064_v44 = vsub.s32 6, %v8669_v52 }
 0xbee   :  { %v5924_v32 = vpop.xlane.xlu1 %5923 }
 0xbef   :  { %v5986_v33 = vsel %vm5985_vm4, %v5966_v5, %v5984_v17  ;;  %v5970_v35 = vrot.slane %v5924_v32, %v5949_v63  ;;  %v6057_v5 = vsub.s32 5, %v8669_v52 }
 0xbf0   :  { %v5926_v46 = vpop.xlane.xlu0 %5925 }
 0xbf1   :  { %v5988_v21 = vsel %vm5987_vm5, %v5970_v35, %v5986_v33  ;;  %v5974_v49 = vrot.slane %v5926_v46, %v5949_v63 }
 0xbf2   :  { %v5928_v60 = vpop.xlane.xlu1 %5927 }
 0xbf3   :  { %v5990_v19 = vsel %vm5989_vm6, %v5974_v49, %v5988_v21  ;;  %v5978_v56 = vrot.slane %v5928_v60, %v5949_v63 }
 0xbf5   :  { %v5992_v36 = vsel %vm5991_vm7, %v5978_v56, %v5990_v19 }
 0xbf6   :  { %v5994_v57 = vsel %vm5936_vm8, %v5992_v36, -1e+30 }
 0xbf7   :  { %v5996_v12 = vsel %vm5995_vm9, %v5994_v57, -inf }
 0xbf8   :  { %v5997_v8 = vrot.slane %v5996_v12, 4 }
 0xbfa   :  { %v5998_v62 = vmax.f32 %v5996_v12, %v5997_v8 }
 0xbfc   :  { %v5999_v2 = vrot.slane %v5998_v62, 2 }
 0xbfe   :  { %v6000_v10 = vmax.f32 %v5998_v62, %v5999_v2 }
 0xc00   :  { %v6001_v7 = vrot.slane %v6000_v10, 1 }
 0xc02   :  { %v6002_v14 = vmax.f32 %v6000_v10, %v6001_v7 }
 0xc04   :  { %v6003_v16 = vsub.f32 %v5994_v57, %v6002_v14 }
 0xc06   :  { %v6004_v51 = vmul.f32 1.442695, %v6003_v16 }
 0xc08   :  { %7943 = vpow2.f32 %v6004_v51 }
 0xc12   :  { %v7944_v26 = vpop.eup %7943 }
 0xc13   :  { %v6008_v39 = vmul.f32 %v7944_v26, %v6690_v34 }
 0xc15   :  { %v6009_v29 = vsel %vm5995_vm9, %v6008_v39, 0.0 }
 0xc16   :  { %v6010_v0 = vrot.slane %v6009_v29, 4 }
 0xc18   :  { %v6011_v28 = vadd.f32 %v6010_v0, %v6009_v29 }
 0xc1a   :  { %v6012_v38 = vrot.slane %v6011_v28, 2 }
 0xc1c   :  { %v6013_v27 = vadd.f32 %v6012_v38, %v6011_v28 }
 0xc1e   :  { %v6014_v31 = vrot.slane %v6013_v27, 1 }
 0xc20   :  { %v6015_v54 = vadd.f32 %v6014_v31, %v6013_v27 }
 0xc22   :  { %v6016_v63 = vmax.f32 %v6015_v54, 1e-30 }
 0xc24   :  { %7945 = vrcp.f32 %v6016_v63 }
 0xc2e   :  { %v7946_v59 = vpop.eup %7945 }
 0xc2f   :  { %v6018_v23 = vmul.f32 %v7946_v59, %v6008_v39 }
 0xc31   :  { %6019 = vst.msk [vmem:[#allocation25] sm:$0xff] %vm5995_vm9, %v6018_v23  ;;  %v6030_v43 = vrot.slane %v6018_v23, %v8678_v55  ;;  %v6023_v61 = vrot.slane %v6018_v23, %v8672_v53  ;;  %v6037_v25 = vrot.slane %v6018_v23, %v8690_v3  ;;  %v6051_v58 = vrot.slane %v6018_v23, %v6050_v20 }
 0xc32   :  { %v6044_v50 = vrot.slane %v6018_v23, %v6043_v4  ;;  %v6065_v17 = vrot.slane %v6018_v23, %v6064_v44 }
 0xc33   :  { %6032 = vbcast.lane.b32.xlu1 %v6030_v43, 256  ;;  %6025 = vbcast.lane.b32.xlu0 %v6023_v61, 256 }
 0xc37   :  { %6039 = vbcast.lane.b32.xlu1 %v6037_v25, 256  ;;  %6053 = vbcast.lane.b32.xlu0 %v6051_v58, 256 }
 0xc3b   :  { %6046 = vbcast.lane.b32.xlu1 %v6044_v50, 256  ;;  %6067 = vbcast.lane.b32.xlu0 %v6065_v17, 256 }
 0xc3c   :  { %8177 = shalt.err (!%p8174_p6)
}
 0xc3d   :  { %s8178_s28 = scalar_lea.hbm %s9507_s18, 128 }
 0xc3e   :  { %p8179_p7 = scmp.ne.s32.totalorder %s9507_s18, %s8178_s28  ;;  %p8182_p8 = scmp.lt.u32.totalorder %s8178_s28, %s9507_s18 }
 0xc40   :  { %p8184_p9 = pnand %p8182_p8, %p8179_p7 }
 0xc42   :  { %8187 = shalt.err (!%p8184_p9)
}
 0xc43   :  { %6111 = dma.vmem_to_hbm [thread:$0]  %s6109_s14, 128, %s9507_s18, [#allocation23]   ;;  %v6058_v53 = vrot.slane %v6018_v23, %v6057_v5  ;;  %v6071_v55 = vsub.s32 7, %v8669_v52 }
 0xc44   :  { %s8287_s27 = smov [#allocation24]   ;;  %s8288_s8 = smov [#allocation25]  }
 0xc45   :  { %s6118_s30 = sshll.u32 %s8287_s27, 4  ;;  %s6128_s2 = sshll.u32 %s8288_s8, 4  ;;  %6060 = vbcast.lane.b32.xlu1 %v6058_v53, 256  ;;  %s6119_s30 = int_to_ptr.vmem [resolvable:$true] %s6118_s30  ;;  %s6129_s2 = int_to_ptr.vmem [resolvable:$true] %s6128_s2 }
 0xc46   :  { %s8188_s12 = scalar_lea.vmem %s6119_s30, 128  ;;  %p8193_p11 = scmp.lt.s32.totalorder %s6119_s30, %s6119_s30 }
 0xc47   :  { %p8189_p10 = scmp.ne.s32.totalorder %s6119_s30, %s8188_s12  ;;  %p8194_p12 = scmp.lt.s32.totalorder %s8188_s12, %s8188_s12 }
 0xc49   :  { %p8195_p13 = por %p8194_p12, %p8193_p11 }
 0xc4b   :  { %p8196_p0 = pnand %p8195_p13, %p8189_p10 }
 0xc4d   :  { %8199 = shalt.err (!%p8196_p0)
}
 0xc4e   :  { %s8200_s18 = scalar_lea.hbm %s9508_s19, 128 }
 0xc4f   :  { %p8201_p1 = scmp.ne.s32.totalorder %s9508_s19, %s8200_s18  ;;  %p8204_p2 = scmp.lt.u32.totalorder %s8200_s18, %s9508_s19 }
 0xc51   :  { %p8206_p3 = pnand %p8204_p2, %p8201_p1 }
 0xc53   :  { %8209 = shalt.err (!%p8206_p3)
}
 0xc54   :  { %6121 = dma.vmem_to_hbm [thread:$0]  %s6119_s30, 128, %s9508_s19, [#allocation23]   ;;  %v6072_v52 = vrot.slane %v6018_v23, %v6071_v55 }
 0xc55   :  { %s8210_s9 = scalar_lea.vmem %s6129_s2, 128  ;;  %p8215_p5 = scmp.lt.s32.totalorder %s6129_s2, %s6129_s2 }
 0xc56   :  { %p8211_p4 = scmp.ne.s32.totalorder %s6129_s2, %s8210_s9  ;;  %p8216_p6 = scmp.lt.s32.totalorder %s8210_s9, %s8210_s9 }
 0xc58   :  { %p8217_p7 = por %p8216_p6, %p8215_p5 }
 0xc5a   :  { %p8218_p8 = pnand %p8217_p7, %p8211_p4 }
 0xc5c   :  { %8221 = shalt.err (!%p8218_p8)
}
 0xc5d   :  { %s8222_s16 = scalar_lea.hbm %s9509_s20, 128 }
 0xc5e   :  { %p8223_p9 = scmp.ne.s32.totalorder %s9509_s20, %s8222_s16  ;;  %p8226_p10 = scmp.lt.u32.totalorder %s8222_s16, %s9509_s20 }
 0xc60   :  { %p8228_p11 = pnand %p8226_p10, %p8223_p9 }
 0xc62   :  { %8231 = shalt.err (!%p8228_p11)
}
 0xc63   :  { %6131 = dma.vmem_to_hbm [thread:$0]  %s6129_s2, 128, %s9509_s20, [#allocation26]   ;;  %6074 = vbcast.lane.b32.xlu1 %v6072_v52, 256 }
 0xc64   :  { %s8289_s20 = smov [#allocation21]  }
 0xc65   :  { %s6098_s6 = sshll.u32 %s8289_s20, 4  ;;  %s6099_s6 = int_to_ptr.vmem [resolvable:$true] %s6098_s6 }
 0xc66   :  { %s8232_s21 = scalar_lea.vmem %s6099_s6, 128  ;;  %p8237_p13 = scmp.lt.s32.totalorder %s6099_s6, %s6099_s6 }
 0xc67   :  { %p8233_p12 = scmp.ne.s32.totalorder %s6099_s6, %s8232_s21  ;;  %p8238_p0 = scmp.lt.s32.totalorder %s8232_s21, %s8232_s21 }
 0xc69   :  { %p8239_p1 = por %p8238_p0, %p8237_p13 }
 0xc6b   :  { %p8240_p2 = pnand %p8239_p1, %p8233_p12 }
 0xca5   :  { %v6033_v3 = vpop.permute.xlu1 %6032  ;;  %v6026_v32 = vpop.permute.xlu0 %6025 }
 0xca6   :  { %v6077_v33 = vmul.f32 %v6033_v3, %v5743_v1  ;;  %v6076_v35 = vmul.f32 %v6026_v32, %v5742_v6 }
 0xca8   :  { %v6084_v49 = vadd.f32 %v6077_v33, %v6076_v35 }
 0xca9   :  { %v6040_v46 = vpop.permute.xlu1 %6039  ;;  %v6054_v21 = vpop.permute.xlu0 %6053 }
 0xcaa   :  { %v6078_v22 = vmul.f32 %v6040_v46, %v5744_v9  ;;  %v6080_v36 = vmul.f32 %v6054_v21, %v5746_v30 }
 0xcac   :  { %v6085_v19 = vadd.f32 %v6084_v49, %v6078_v22 }
 0xcad   :  { %v6047_v60 = vpop.permute.xlu1 %6046  ;;  %v6068_v37 = vpop.permute.xlu0 %6067 }
 0xcae   :  { %v6079_v56 = vmul.f32 %v6047_v60, %v5745_v42  ;;  %v6082_v13 = vmul.f32 %v6068_v37, %v5748_v15 }
 0xcb0   :  { %v6086_v57 = vadd.f32 %v6085_v19, %v6079_v56 }
 0xcb2   :  { %v6087_v6 = vadd.f32 %v6086_v57, %v6080_v36 }
 0xcb7   :  { %v6061_v1 = vpop.permute.xlu1 %6060 }
 0xcb8   :  { %v6081_v24 = vmul.f32 %v6061_v1, %v5747_v48 }
 0xcba   :  { %v6088_v9 = vadd.f32 %v6087_v6, %v6081_v24 }
 0xcbc   :  { %v6089_v42 = vadd.f32 %v6088_v9, %v6082_v13 }
 0xcd5   :  { %v6075_v12 = vpop.permute.xlu1 %6074 }
 0xcd6   :  { %v6083_v41 = vmul.f32 %v6075_v12, %v5749_v11 }
 0xcd8   :  { %v6090_v45 = vadd.f32 %v6089_v42, %v6083_v41 }
 0xcda   :  { %6091 = vst [vmem:[#allocation21] sm:$0xff] %v6090_v45 }
 0xcdb   :  { %8243 = shalt.err (!%p8240_p2)
}
 0xcdc   :  { %s9535_s29 = sld [smem:[#allocation40_spill]] }
 0xce2   :  { %s8244_s5 = scalar_lea.hbm %s9535_s29, 128 }
 0xce3   :  { %p8245_p3 = scmp.ne.s32.totalorder %s9535_s29, %s8244_s5  ;;  %p8248_p4 = scmp.lt.u32.totalorder %s8244_s5, %s9535_s29 }
 0xce5   :  { %p8250_p5 = pnand %p8248_p4, %p8245_p3 }
 0xce7   :  { %8253 = shalt.err (!%p8250_p5)
}
 0xce8   :  { %6101 = dma.vmem_to_hbm [thread:$0]  %s6099_s6, 128, %s9535_s29, [#allocation8]  }
 0xce9   :  { %8264 = dma.done.wait [#allocation8], 128  }
 0xcea   :  { %8265 = vsyncadd [#allocation8], 4294967168 }
 0xceb   :  { %8266 = dma.done.wait [#allocation23], 256  }
 0xcec   :  { %8267 = vsyncadd [#allocation23], 4294967040 }
 0xced   :  { %8268 = dma.done.wait [#allocation26], 128  }
 0xcee   :  { %8269 = vsyncadd [#allocation26], 4294967168 }
 0xcef   :  { %6144 = vsyncpa [#allocation7], 1 }
 0xcf0   :  { %6145 = vsyncpa [#allocation10], 1 }
 0xcf1   :  { %6146 = vsyncpa [#allocation13], 1 }
 0xcf2   :  { %6147 = vsyncpa [#allocation16], 1 }
 0xcf3   :  { %6148 = vsyncpa [#allocation19], 1 }
 0xcf4   :  { %6149 = vsyncpa [#allocation8], 1 }
 0xcf5   :  { %6150 = vsyncpa [#allocation23], 1 }
 0xcf6   :  { %6151 = vsyncpa [#allocation26], 1 }

</bundles_post_ra>
